<compile_context>
chip_gen: v7x
topology: tpu7x:2x2x1
jax: 0.10.0
libtpu: 0.0.40
codegen_flags: <defaults>
</compile_context>

<pallas_src>
import functools

import numpy as np

import jax
import jax.numpy as jnp
from jax.experimental import pallas as pl
from jax.experimental.pallas import tpu as pltpu

EPS = 1e-5  # nn.BatchNorm2d default eps


def _silu(x):
    return x * jax.nn.sigmoid(x)


def _bn_train_cs(x, gamma, beta):
    """Training-mode BatchNorm, channel-sublane layout.

    x: (N, C, S)  gamma/beta: (1, C, 1).  Per-channel stats over (N, S).
    Two-pass centred variance (numerically safe), one fused scale/shift apply.
    """
    n = x.shape[0] * x.shape[2]
    s1 = jnp.sum(jnp.sum(x, axis=2, keepdims=True), axis=0, keepdims=True)
    mean = s1 * (1.0 / n)                                     # (1, C, 1)
    d = x - mean
    var = jnp.sum(jnp.sum(d * d, axis=2, keepdims=True), axis=0, keepdims=True) * (1.0 / n)
    scale = jax.lax.rsqrt(var + EPS) * gamma
    shift = beta - mean * scale
    return x * scale + shift


def _conv1x1_cs(x, w):
    """1x1 conv in channel-sublane layout, exact f32 VPU FMAs.

    x: (N, K, S), w: (K, Cout, 1) pre-shaped by the wrapper (broadcast hoisted).
    Returns (N, Cout, S).  Tiny K (4/16) would leave the MXU >95% idle, so the
    contraction is an unrolled broadcast-mul-add chain on lane-dense tiles.
    """
    K = w.shape[0]
    acc = x[:, 0:1, :] * w[0]
    for c in range(1, K):
        acc = acc + x[:, c:c + 1, :] * w[c]
    return acc


def mbconv_kernel(
    x_ref,                                   # (N, Cin, S)        VMEM
    exp_w_ref, exp_g_ref, exp_be_ref,        # (Cin,Chid,1),(1,Chid,1)x2
    dw_w_ref, dw_m_ref,                      # (KH*KW,Chid,1),(KH*KW,1,S)
    dw_g_ref, dw_be_ref,                     # (1,Chid,1)x2
    se_w1_ref, se_b1_ref,                    # (Chid,Cse,1),(1,Cse,1)
    se_w2_ref, se_b2_ref,                    # (Cse,Chid,1),(1,Chid,1)
    pr_w_ref, pr_g_ref, pr_be_ref,           # (Chid,Cout,1),(1,Cout,1)x2
    sd_ref,                                  # (N,)               SMEM
    out_ref,                                 # (N, Cout, Sout)    VMEM
    *, N, H, W, Chid, KH, KW, stride, skip,
):
    # PyTorch passes a single int padding = (kernel_size[0]-1)//2 applied to
    # BOTH spatial axes.
    ph = (KH - 1) // 2
    pw = ph
    Hout = (H + 2 * ph - KH) // stride + 1
    Wout = (W + 2 * pw - KW) // stride + 1
    S = H * W

    x = x_ref[...]                                            # (N, Cin, S)

    # ---- expansion: 1x1 conv (bias cancels under train-mode BN) + BN + SiLU ----
    y = _conv1x1_cs(x, exp_w_ref[...])                        # (N, Chid, S)
    y = _silu(_bn_train_cs(y, exp_g_ref[...], exp_be_ref[...]))

    # ---- depthwise conv: lane rolls (XLU) + boundary masks folded into taps ----
    # wm[t] = dw_w[t] (per-channel, sublane bcast) * mask[t] (per-position, lane
    # bcast); computed once (hoisted), so the tap loop is 1 roll + 1 FMA per tap.
    wm = dw_w_ref[...] * dw_m_ref[...]                        # (KH*KW, Chid, S)
    acc = None
    for kh in range(KH):
        dh = kh - ph
        for kw in range(KW):
            dw_ = kw - pw
            off = dh * W + dw_                                # flattened src offset
            src = y if off == 0 else pltpu.roll(y, (-off) % S, axis=2)
            term = src * wm[kh * KW + kw]
            acc = term if acc is None else acc + term

    # restrict / decimate the full-resolution result to the conv output grid
    if stride == 1:
        if Hout != H or Wout != W:      # non-square kernel corner case
            acc = acc.reshape(N, Chid, H, W)[:, :, :Hout, :Wout]
            acc = acc.reshape(N, Chid, Hout * Wout)
    else:
        # wrapper guarantees H == stride*Hout and W == stride*Wout
        acc = acc.reshape(N, Chid, Hout, stride, Wout, stride)[:, :, :, 0, :, 0]
        acc = acc.reshape(N, Chid, Hout * Wout)

    h = _bn_train_cs(acc, dw_g_ref[...], dw_be_ref[...])      # (N, Chid, Sout)

    # ---- squeeze-and-excitation ----
    pooled = jnp.mean(h, axis=2, keepdims=True)               # (N, Chid, 1)
    se = _silu(_conv1x1_cs(pooled, se_w1_ref[...]) + se_b1_ref[...])
    se = jax.nn.sigmoid(_conv1x1_cs(se, se_w2_ref[...]) + se_b2_ref[...])
    h = h * se                                                # lane-broadcast scale

    # ---- projection: 1x1 conv (bias cancels under train-mode BN) + BN ----
    p = _bn_train_cs(_conv1x1_cs(h, pr_w_ref[...]), pr_g_ref[...], pr_be_ref[...])

    # ---- skip + stochastic depth (per-sample scalar from SMEM) ----
    if skip:
        for n in range(N):                                    # N small & static
            out_ref[n] = p[n] + x[n] * sd_ref[n]
    else:
        out_ref[...] = p


def _dw_tap_masks(H, W, KH, KW, ph, pw):
    """Per-tap 0/1 validity masks over the flattened H*W grid (compile-time)."""
    hh, ww = np.meshgrid(np.arange(H), np.arange(W), indexing="ij")
    masks = np.zeros((KH * KW, 1, H * W), np.float32)
    for kh in range(KH):
        for kw in range(KW):
            dh, dw_ = kh - ph, kw - pw
            valid = ((hh + dh >= 0) & (hh + dh < H) &
                     (ww + dw_ >= 0) & (ww + dw_ < W))
            masks[kh * KW + kw, 0, :] = valid.reshape(-1).astype(np.float32)
    return jnp.asarray(masks)


def mbconv_forward(x_nchw, params, *, kernel_size, stride, skip, sd_scale):
    N, Cin, H, W = x_nchw.shape
    KH, KW = kernel_size
    ph = (KH - 1) // 2
    pw = ph
    Hout = (H + 2 * ph - KH) // stride + 1
    Wout = (W + 2 * pw - KW) // stride + 1
    Chid = params['exp_w'].shape[1]
    Cse = params['se_w1'].shape[1]
    Cout = params['pr_w'].shape[1]
    S = H * W
    Sout = Hout * Wout

    if skip:
        assert stride == 1 and Cin == Cout, "skip requires stride==1 and Cin==Cout"
    if stride > 1:
        # decimation-by-reshape path; general case not needed for EfficientNet.
        if not (KH == KW and H % stride == 0 and W % stride == 0):
            # TODO(synk): general strided/non-square depthwise decimation.
            raise NotImplementedError("stride>1 requires square kernel and "
                                      "stride-divisible H, W")

    # Channel-sublane / spatial-lane layout: NCHW -> (N, C, H*W) is a pure reshape.
    x = x_nchw.reshape(N, Cin, S).astype(jnp.float32)

    # Pre-shape all parameters once (broadcast hoisting happens here, not per-tap).
    # NOTE: conv biases are omitted because a per-channel bias directly before
    # training-mode (batch-stats) BatchNorm cancels exactly.  Do NOT reuse this
    # kernel with eval-mode / running-stats BN.
    def col3(w):   # (K, C) -> (K, C, 1)
        return w.reshape(w.shape[0], w.shape[1], 1).astype(jnp.float32)

    def chan3(v):  # (1, C) -> (1, C, 1)
        return v.reshape(1, -1, 1).astype(jnp.float32)

    inputs = (
        x,
        col3(params['exp_w']), chan3(params['exp_g']), chan3(params['exp_be']),
        params['dw_w'].reshape(KH * KW, Chid, 1).astype(jnp.float32),
        _dw_tap_masks(H, W, KH, KW, ph, pw),
        chan3(params['dw_g']), chan3(params['dw_be']),
        col3(params['se_w1']), chan3(params['se_b1']),
        col3(params['se_w2']), chan3(params['se_b2']),
        col3(params['pr_w']), chan3(params['pr_g']), chan3(params['pr_be']),
        jnp.asarray(sd_scale, jnp.float32).reshape(N),        # SMEM scalars
    )

    kern = functools.partial(
        mbconv_kernel,
        N=N, H=H, W=W, Chid=Chid, KH=KH, KW=KW, stride=stride, skip=skip,
    )

    vmem = pl.BlockSpec(memory_space=pltpu.MemorySpace.VMEM)
    smem = pl.BlockSpec(memory_space=pltpu.MemorySpace.SMEM)
    in_specs = [vmem] * (len(inputs) - 1) + [smem]

    # VMEM budget from the buffers actually resident (input, output, a few
    # (N,Chid,S) intermediates, masked tap weights) with 2x headroom; capped at
    # 48 MiB so a v7x TensorCore (64 MiB physical) keeps compiler scratch room.
    f32b = 4
    est = f32b * (
        N * Cin * S
        + N * Cout * Sout
        + 4 * N * Chid * S
        + KH * KW * Chid * S
    )
    vmem_limit = int(min(48 * 1024 * 1024, max(4 * 1024 * 1024, 2 * est)))

    out = pl.pallas_call(
        kern,
        out_shape=jax.ShapeDtypeStruct((N, Cout, Sout), jnp.float32),
        in_specs=in_specs,
        out_specs=vmem,
        compiler_params=pltpu.CompilerParams(vmem_limit_bytes=vmem_limit),
    )(*inputs)

    return out.reshape(N, Cout, Hout, Wout)                   # NCHW, pure reshape


def init_params(key, Cin, Cout, Chid, Cse, KH, KW):
    """Deterministic synthetic parameters (channel-last 2-D layouts).

    Conv biases are generated and used by the reference; the Pallas kernel
    omits them because a per-channel bias before training-mode BN cancels.
    """
    ks = jax.random.split(key, 10)

    def u(k, shape, scale=0.1):
        return jax.random.uniform(k, shape, jnp.float32, -scale, scale)

    return dict(
        # expansion 1x1 conv:  torch weight (Chid, Cin, 1, 1) -> (Cin, Chid)
        exp_w=u(ks[0], (Cin, Chid)), exp_b=u(ks[1], (1, Chid)),
        exp_g=jnp.ones((1, Chid), jnp.float32), exp_be=jnp.zeros((1, Chid), jnp.float32),
        # depthwise conv:      torch weight (Chid, 1, KH, KW) -> (KH*KW, Chid)
        dw_w=u(ks[2], (KH * KW, Chid)), dw_b=u(ks[3], (1, Chid)),
        dw_g=jnp.ones((1, Chid), jnp.float32), dw_be=jnp.zeros((1, Chid), jnp.float32),
        # squeeze-and-excitation (EfficientNet-style 1x1 convs on pooled vector)
        se_w1=u(ks[4], (Chid, Cse)), se_b1=u(ks[5], (1, Cse)),
        se_w2=u(ks[6], (Cse, Chid)), se_b2=u(ks[7], (1, Chid)),
        # projection 1x1 conv: torch weight (Cout, Chid, 1, 1) -> (Chid, Cout)
        pr_w=u(ks[8], (Chid, Cout)), pr_b=u(ks[9], (1, Cout)),
        pr_g=jnp.ones((1, Cout), jnp.float32), pr_be=jnp.zeros((1, Cout), jnp.float32),
    )


def mbconv_reference(x_nchw, params, *, kernel_size, stride, skip, sd_scale):
    """Pure-JAX reference (NHWC, HIGHEST precision, WITH conv biases)."""
    KH, KW = kernel_size
    ph = (KH - 1) // 2
    pw = ph
    x = jnp.transpose(x_nchw, (0, 2, 3, 1)).astype(jnp.float32)
    N, H, W, Cin = x.shape
    Chid = params['exp_w'].shape[1]
    hp = jax.lax.Precision.HIGHEST

    def bn(v, g, b):
        m = jnp.mean(v, axis=(0, 1, 2), keepdims=True)
        var = jnp.mean((v - m) ** 2, axis=(0, 1, 2), keepdims=True)
        return (v - m) * jax.lax.rsqrt(var + EPS) * g.reshape(1, 1, 1, -1) + b.reshape(1, 1, 1, -1)

    y = jnp.einsum('nhwc,cd->nhwd', x, params['exp_w'], precision=hp) + params['exp_b'].reshape(1, 1, 1, -1)
    y = jax.nn.silu(bn(y, params['exp_g'], params['exp_be']))

    dw_w = params['dw_w'].reshape(KH, KW, 1, Chid)
    z = jax.lax.conv_general_dilated(
        y, dw_w, window_strides=(stride, stride), padding=[(ph, ph), (pw, pw)],
        dimension_numbers=('NHWC', 'HWIO', 'NHWC'),
        feature_group_count=Chid, precision=hp,
    ) + params['dw_b'].reshape(1, 1, 1, -1)
    z = bn(z, params['dw_g'], params['dw_be'])

    pooled = jnp.mean(z, axis=(1, 2))
    s = jax.nn.silu(jnp.dot(pooled, params['se_w1'], precision=hp) + params['se_b1'])
    s = jax.nn.sigmoid(jnp.dot(s, params['se_w2'], precision=hp) + params['se_b2'])
    z = z * s.reshape(N, 1, 1, Chid)

    p = jnp.einsum('nhwc,cd->nhwd', z, params['pr_w'], precision=hp) + params['pr_b'].reshape(1, 1, 1, -1)
    p = bn(p, params['pr_g'], params['pr_be'])

    if skip:
        p = p + x * sd_scale.reshape(N, 1, 1, 1)
    return jnp.transpose(p, (0, 3, 1, 2))


if __name__ == "__main__":
    # MBConv config (small): Cin=Cout=4, kernel 3x3, stride 1 -> skip active.
    N, Cin, H, W = 2, 4, 16, 16
    Cout = 4
    kernel_size = (3, 3)
    stride = 1
    expansion_ratio = 4
    se_ratio = 0.25
    sd_prob = 0.1

    Chid = Cin * expansion_ratio                  # 16
    Cse = max(1, int(Chid * se_ratio))            # 4
    skip = (stride == 1 and Cin == Cout)

    key = jax.random.PRNGKey(0)
    kx, kp, ksd = jax.random.split(key, 3)
    x = jax.random.normal(kx, (N, Cin, H, W), jnp.float32)
    params = init_params(kp, Cin, Cout, Chid, Cse, *kernel_size)

    # stochastic_depth(mode='row', training): per-sample Bernoulli(1-p) / (1-p)
    keep = jax.random.bernoulli(ksd, 1.0 - sd_prob, (N,)).astype(jnp.float32)
    sd_scale = keep / (1.0 - sd_prob)             # (N,) per-sample scale

    out = mbconv_forward(x, params, kernel_size=kernel_size, stride=stride,
                         skip=skip, sd_scale=sd_scale)
    out = jax.block_until_ready(out)
    assert out.shape == (N, Cout, H, W), out.shape

    ref = mbconv_reference(x, params, kernel_size=kernel_size, stride=stride,
                           skip=skip, sd_scale=sd_scale)
    ref = jax.block_until_ready(ref)
    if not jnp.allclose(out, ref, atol=2e-3, rtol=2e-3):
        raise AssertionError(
            f"Pallas kernel mismatch vs reference: max abs err = "
            f"{float(jnp.max(jnp.abs(out - ref)))}")

    print("KERNEL_OK")
</pallas_src>

<mosaic_0001>
module attributes {stable_mosaic.version = 11 : i64} {
  func.func @mbconv_kernel(%arg0: memref<2x4x256xf32, #tpu.memory_space<vmem>>, %arg1: memref<4x16x1xf32, #tpu.memory_space<vmem>>, %arg2: memref<1x16x1xf32, #tpu.memory_space<vmem>>, %arg3: memref<1x16x1xf32, #tpu.memory_space<vmem>>, %arg4: memref<9x16x1xf32, #tpu.memory_space<vmem>>, %arg5: memref<9x1x256xf32, #tpu.memory_space<vmem>>, %arg6: memref<1x16x1xf32, #tpu.memory_space<vmem>>, %arg7: memref<1x16x1xf32, #tpu.memory_space<vmem>>, %arg8: memref<16x4x1xf32, #tpu.memory_space<vmem>>, %arg9: memref<1x4x1xf32, #tpu.memory_space<vmem>>, %arg10: memref<4x16x1xf32, #tpu.memory_space<vmem>>, %arg11: memref<1x16x1xf32, #tpu.memory_space<vmem>>, %arg12: memref<16x4x1xf32, #tpu.memory_space<vmem>>, %arg13: memref<1x4x1xf32, #tpu.memory_space<vmem>>, %arg14: memref<1x4x1xf32, #tpu.memory_space<vmem>>, %arg15: memref<2xf32, #tpu.memory_space<smem>>, %arg16: memref<2x4x256xf32, #tpu.memory_space<vmem>>) attributes {dimension_semantics = [], scalar_prefetch = 0 : i64, scratch_operands = 0 : i64, tpu.core_type = #tpu.core_type<tc>} {
    %c0 = arith.constant 0 : index
    %c0_0 = arith.constant 0 : index
    %c0_1 = arith.constant 0 : index
    %0 = vector.load %arg0[%c0, %c0_0, %c0_1] : memref<2x4x256xf32, #tpu.memory_space<vmem>>, vector<2x4x256xf32>
    %c0_2 = arith.constant 0 : index
    %c0_3 = arith.constant 0 : index
    %c0_4 = arith.constant 0 : index
    %1 = vector.load %arg1[%c0_2, %c0_3, %c0_4] : memref<4x16x1xf32, #tpu.memory_space<vmem>>, vector<4x16x1xf32>
    %2 = vector.extract_strided_slice %0 {offsets = [0, 0, 0], sizes = [2, 1, 256], strides = [1, 1, 1]} : vector<2x4x256xf32> to vector<2x1x256xf32>
    %3 = vector.extract_strided_slice %1 {offsets = [0, 0, 0], sizes = [1, 16, 1], strides = [1, 1, 1]} : vector<4x16x1xf32> to vector<1x16x1xf32>
    %4 = vector.shape_cast %3 : vector<1x16x1xf32> to vector<16x1xf32>
    %5 = vector.shape_cast %4 : vector<16x1xf32> to vector<1x16x1xf32>
    %6 = vector.broadcast %2 : vector<2x1x256xf32> to vector<2x16x256xf32>
    %7 = vector.broadcast %5 : vector<1x16x1xf32> to vector<2x16x256xf32>
    %8 = arith.mulf %6, %7 : vector<2x16x256xf32>
    %9 = vector.extract_strided_slice %0 {offsets = [0, 1, 0], sizes = [2, 1, 256], strides = [1, 1, 1]} : vector<2x4x256xf32> to vector<2x1x256xf32>
    %10 = vector.extract_strided_slice %1 {offsets = [1, 0, 0], sizes = [1, 16, 1], strides = [1, 1, 1]} : vector<4x16x1xf32> to vector<1x16x1xf32>
    %11 = vector.shape_cast %10 : vector<1x16x1xf32> to vector<16x1xf32>
    %12 = vector.shape_cast %11 : vector<16x1xf32> to vector<1x16x1xf32>
    %13 = vector.broadcast %9 : vector<2x1x256xf32> to vector<2x16x256xf32>
    %14 = vector.broadcast %12 : vector<1x16x1xf32> to vector<2x16x256xf32>
    %15 = arith.mulf %13, %14 : vector<2x16x256xf32>
    %16 = arith.addf %8, %15 : vector<2x16x256xf32>
    %17 = vector.extract_strided_slice %0 {offsets = [0, 2, 0], sizes = [2, 1, 256], strides = [1, 1, 1]} : vector<2x4x256xf32> to vector<2x1x256xf32>
    %18 = vector.extract_strided_slice %1 {offsets = [2, 0, 0], sizes = [1, 16, 1], strides = [1, 1, 1]} : vector<4x16x1xf32> to vector<1x16x1xf32>
    %19 = vector.shape_cast %18 : vector<1x16x1xf32> to vector<16x1xf32>
    %20 = vector.shape_cast %19 : vector<16x1xf32> to vector<1x16x1xf32>
    %21 = vector.broadcast %17 : vector<2x1x256xf32> to vector<2x16x256xf32>
    %22 = vector.broadcast %20 : vector<1x16x1xf32> to vector<2x16x256xf32>
    %23 = arith.mulf %21, %22 : vector<2x16x256xf32>
    %24 = arith.addf %16, %23 : vector<2x16x256xf32>
    %25 = vector.extract_strided_slice %0 {offsets = [0, 3, 0], sizes = [2, 1, 256], strides = [1, 1, 1]} : vector<2x4x256xf32> to vector<2x1x256xf32>
    %26 = vector.extract_strided_slice %1 {offsets = [3, 0, 0], sizes = [1, 16, 1], strides = [1, 1, 1]} : vector<4x16x1xf32> to vector<1x16x1xf32>
    %27 = vector.shape_cast %26 : vector<1x16x1xf32> to vector<16x1xf32>
    %28 = vector.shape_cast %27 : vector<16x1xf32> to vector<1x16x1xf32>
    %29 = vector.broadcast %25 : vector<2x1x256xf32> to vector<2x16x256xf32>
    %30 = vector.broadcast %28 : vector<1x16x1xf32> to vector<2x16x256xf32>
    %31 = arith.mulf %29, %30 : vector<2x16x256xf32>
    %32 = arith.addf %24, %31 : vector<2x16x256xf32>
    %c0_5 = arith.constant 0 : index
    %c0_6 = arith.constant 0 : index
    %c0_7 = arith.constant 0 : index
    %33 = vector.load %arg2[%c0_5, %c0_6, %c0_7] : memref<1x16x1xf32, #tpu.memory_space<vmem>>, vector<1x16x1xf32>
    %c0_8 = arith.constant 0 : index
    %c0_9 = arith.constant 0 : index
    %c0_10 = arith.constant 0 : index
    %34 = vector.load %arg3[%c0_8, %c0_9, %c0_10] : memref<1x16x1xf32, #tpu.memory_space<vmem>>, vector<1x16x1xf32>
    %cst = arith.constant dense<0.000000e+00> : vector<2x16xf32>
    %35 = vector.multi_reduction <add>, %32, %cst [2] : vector<2x16x256xf32> to vector<2x16xf32>
    %36 = vector.shape_cast %35 : vector<2x16xf32> to vector<2x16x1xf32>
    %cst_11 = arith.constant dense<0.000000e+00> : vector<16x1xf32>
    %37 = vector.multi_reduction <add>, %36, %cst_11 [0] : vector<2x16x1xf32> to vector<16x1xf32>
    %38 = vector.shape_cast %37 : vector<16x1xf32> to vector<1x16x1xf32>
    %cst_12 = arith.constant 0.001953125 : f32
    %39 = vector.broadcast %cst_12 : f32 to vector<1x16x1xf32>
    %40 = arith.mulf %38, %39 : vector<1x16x1xf32>
    %41 = vector.broadcast %40 : vector<1x16x1xf32> to vector<2x16x256xf32>
    %42 = arith.subf %32, %41 : vector<2x16x256xf32>
    %43 = arith.mulf %42, %42 : vector<2x16x256xf32>
    %cst_13 = arith.constant dense<0.000000e+00> : vector<2x16xf32>
    %44 = vector.multi_reduction <add>, %43, %cst_13 [2] : vector<2x16x256xf32> to vector<2x16xf32>
    %45 = vector.shape_cast %44 : vector<2x16xf32> to vector<2x16x1xf32>
    %cst_14 = arith.constant dense<0.000000e+00> : vector<16x1xf32>
    %46 = vector.multi_reduction <add>, %45, %cst_14 [0] : vector<2x16x1xf32> to vector<16x1xf32>
    %47 = vector.shape_cast %46 : vector<16x1xf32> to vector<1x16x1xf32>
    %cst_15 = arith.constant 0.001953125 : f32
    %48 = vector.broadcast %cst_15 : f32 to vector<1x16x1xf32>
    %49 = arith.mulf %47, %48 : vector<1x16x1xf32>
    %cst_16 = arith.constant 9.99999974E-6 : f32
    %50 = vector.broadcast %cst_16 : f32 to vector<1x16x1xf32>
    %51 = arith.addf %49, %50 : vector<1x16x1xf32>
    %52 = math.rsqrt %51 : vector<1x16x1xf32>
    %53 = arith.mulf %52, %33 : vector<1x16x1xf32>
    %54 = arith.mulf %40, %53 : vector<1x16x1xf32>
    %55 = arith.subf %34, %54 : vector<1x16x1xf32>
    %56 = vector.broadcast %53 : vector<1x16x1xf32> to vector<2x16x256xf32>
    %57 = arith.mulf %32, %56 : vector<2x16x256xf32>
    %58 = vector.broadcast %55 : vector<1x16x1xf32> to vector<2x16x256xf32>
    %59 = arith.addf %57, %58 : vector<2x16x256xf32>
    %60 = arith.negf %59 : vector<2x16x256xf32>
    %61 = math.exp %60 : vector<2x16x256xf32>
    %cst_17 = arith.constant 1.000000e+00 : f32
    %62 = vector.broadcast %cst_17 : f32 to vector<2x16x256xf32>
    %63 = arith.addf %62, %61 : vector<2x16x256xf32>
    %64 = arith.divf %62, %63 : vector<2x16x256xf32>
    %65 = arith.mulf %59, %64 : vector<2x16x256xf32>
    %c0_18 = arith.constant 0 : index
    %c0_19 = arith.constant 0 : index
    %c0_20 = arith.constant 0 : index
    %66 = vector.load %arg4[%c0_18, %c0_19, %c0_20] : memref<9x16x1xf32, #tpu.memory_space<vmem>>, vector<9x16x1xf32>
    %c0_21 = arith.constant 0 : index
    %c0_22 = arith.constant 0 : index
    %c0_23 = arith.constant 0 : index
    %67 = vector.load %arg5[%c0_21, %c0_22, %c0_23] : memref<9x1x256xf32, #tpu.memory_space<vmem>>, vector<9x1x256xf32>
    %68 = vector.broadcast %66 : vector<9x16x1xf32> to vector<9x16x256xf32>
    %69 = vector.broadcast %67 : vector<9x1x256xf32> to vector<9x16x256xf32>
    %70 = arith.mulf %68, %69 : vector<9x16x256xf32>
    %c17_i32 = arith.constant 17 : i32
    %71 = tpu.dynamic_rotate %65 by %c17_i32 dim 2 : vector<2x16x256xf32>, i32 -> vector<2x16x256xf32>
    %72 = vector.extract_strided_slice %70 {offsets = [0, 0, 0], sizes = [1, 16, 256], strides = [1, 1, 1]} : vector<9x16x256xf32> to vector<1x16x256xf32>
    %73 = vector.shape_cast %72 : vector<1x16x256xf32> to vector<16x256xf32>
    %74 = vector.shape_cast %73 : vector<16x256xf32> to vector<1x16x256xf32>
    %75 = vector.broadcast %74 : vector<1x16x256xf32> to vector<2x16x256xf32>
    %76 = arith.mulf %71, %75 : vector<2x16x256xf32>
    %c16_i32 = arith.constant 16 : i32
    %77 = tpu.dynamic_rotate %65 by %c16_i32 dim 2 : vector<2x16x256xf32>, i32 -> vector<2x16x256xf32>
    %78 = vector.extract_strided_slice %70 {offsets = [1, 0, 0], sizes = [1, 16, 256], strides = [1, 1, 1]} : vector<9x16x256xf32> to vector<1x16x256xf32>
    %79 = vector.shape_cast %78 : vector<1x16x256xf32> to vector<16x256xf32>
    %80 = vector.shape_cast %79 : vector<16x256xf32> to vector<1x16x256xf32>
    %81 = vector.broadcast %80 : vector<1x16x256xf32> to vector<2x16x256xf32>
    %82 = arith.mulf %77, %81 : vector<2x16x256xf32>
    %83 = arith.addf %76, %82 : vector<2x16x256xf32>
    %c15_i32 = arith.constant 15 : i32
    %84 = tpu.dynamic_rotate %65 by %c15_i32 dim 2 : vector<2x16x256xf32>, i32 -> vector<2x16x256xf32>
    %85 = vector.extract_strided_slice %70 {offsets = [2, 0, 0], sizes = [1, 16, 256], strides = [1, 1, 1]} : vector<9x16x256xf32> to vector<1x16x256xf32>
    %86 = vector.shape_cast %85 : vector<1x16x256xf32> to vector<16x256xf32>
    %87 = vector.shape_cast %86 : vector<16x256xf32> to vector<1x16x256xf32>
    %88 = vector.broadcast %87 : vector<1x16x256xf32> to vector<2x16x256xf32>
    %89 = arith.mulf %84, %88 : vector<2x16x256xf32>
    %90 = arith.addf %83, %89 : vector<2x16x256xf32>
    %c1_i32 = arith.constant 1 : i32
    %91 = tpu.dynamic_rotate %65 by %c1_i32 dim 2 : vector<2x16x256xf32>, i32 -> vector<2x16x256xf32>
    %92 = vector.extract_strided_slice %70 {offsets = [3, 0, 0], sizes = [1, 16, 256], strides = [1, 1, 1]} : vector<9x16x256xf32> to vector<1x16x256xf32>
    %93 = vector.shape_cast %92 : vector<1x16x256xf32> to vector<16x256xf32>
    %94 = vector.shape_cast %93 : vector<16x256xf32> to vector<1x16x256xf32>
    %95 = vector.broadcast %94 : vector<1x16x256xf32> to vector<2x16x256xf32>
    %96 = arith.mulf %91, %95 : vector<2x16x256xf32>
    %97 = arith.addf %90, %96 : vector<2x16x256xf32>
    %98 = vector.extract_strided_slice %70 {offsets = [4, 0, 0], sizes = [1, 16, 256], strides = [1, 1, 1]} : vector<9x16x256xf32> to vector<1x16x256xf32>
    %99 = vector.shape_cast %98 : vector<1x16x256xf32> to vector<16x256xf32>
    %100 = vector.shape_cast %99 : vector<16x256xf32> to vector<1x16x256xf32>
    %101 = vector.broadcast %100 : vector<1x16x256xf32> to vector<2x16x256xf32>
    %102 = arith.mulf %65, %101 : vector<2x16x256xf32>
    %103 = arith.addf %97, %102 : vector<2x16x256xf32>
    %c255_i32 = arith.constant 255 : i32
    %104 = tpu.dynamic_rotate %65 by %c255_i32 dim 2 : vector<2x16x256xf32>, i32 -> vector<2x16x256xf32>
    %105 = vector.extract_strided_slice %70 {offsets = [5, 0, 0], sizes = [1, 16, 256], strides = [1, 1, 1]} : vector<9x16x256xf32> to vector<1x16x256xf32>
    %106 = vector.shape_cast %105 : vector<1x16x256xf32> to vector<16x256xf32>
    %107 = vector.shape_cast %106 : vector<16x256xf32> to vector<1x16x256xf32>
    %108 = vector.broadcast %107 : vector<1x16x256xf32> to vector<2x16x256xf32>
    %109 = arith.mulf %104, %108 : vector<2x16x256xf32>
    %110 = arith.addf %103, %109 : vector<2x16x256xf32>
    %c241_i32 = arith.constant 241 : i32
    %111 = tpu.dynamic_rotate %65 by %c241_i32 dim 2 : vector<2x16x256xf32>, i32 -> vector<2x16x256xf32>
    %112 = vector.extract_strided_slice %70 {offsets = [6, 0, 0], sizes = [1, 16, 256], strides = [1, 1, 1]} : vector<9x16x256xf32> to vector<1x16x256xf32>
    %113 = vector.shape_cast %112 : vector<1x16x256xf32> to vector<16x256xf32>
    %114 = vector.shape_cast %113 : vector<16x256xf32> to vector<1x16x256xf32>
    %115 = vector.broadcast %114 : vector<1x16x256xf32> to vector<2x16x256xf32>
    %116 = arith.mulf %111, %115 : vector<2x16x256xf32>
    %117 = arith.addf %110, %116 : vector<2x16x256xf32>
    %c240_i32 = arith.constant 240 : i32
    %118 = tpu.dynamic_rotate %65 by %c240_i32 dim 2 : vector<2x16x256xf32>, i32 -> vector<2x16x256xf32>
    %119 = vector.extract_strided_slice %70 {offsets = [7, 0, 0], sizes = [1, 16, 256], strides = [1, 1, 1]} : vector<9x16x256xf32> to vector<1x16x256xf32>
    %120 = vector.shape_cast %119 : vector<1x16x256xf32> to vector<16x256xf32>
    %121 = vector.shape_cast %120 : vector<16x256xf32> to vector<1x16x256xf32>
    %122 = vector.broadcast %121 : vector<1x16x256xf32> to vector<2x16x256xf32>
    %123 = arith.mulf %118, %122 : vector<2x16x256xf32>
    %124 = arith.addf %117, %123 : vector<2x16x256xf32>
    %c239_i32 = arith.constant 239 : i32
    %125 = tpu.dynamic_rotate %65 by %c239_i32 dim 2 : vector<2x16x256xf32>, i32 -> vector<2x16x256xf32>
    %126 = vector.extract_strided_slice %70 {offsets = [8, 0, 0], sizes = [1, 16, 256], strides = [1, 1, 1]} : vector<9x16x256xf32> to vector<1x16x256xf32>
    %127 = vector.shape_cast %126 : vector<1x16x256xf32> to vector<16x256xf32>
    %128 = vector.shape_cast %127 : vector<16x256xf32> to vector<1x16x256xf32>
    %129 = vector.broadcast %128 : vector<1x16x256xf32> to vector<2x16x256xf32>
    %130 = arith.mulf %125, %129 : vector<2x16x256xf32>
    %131 = arith.addf %124, %130 : vector<2x16x256xf32>
    %c0_24 = arith.constant 0 : index
    %c0_25 = arith.constant 0 : index
    %c0_26 = arith.constant 0 : index
    %132 = vector.load %arg6[%c0_24, %c0_25, %c0_26] : memref<1x16x1xf32, #tpu.memory_space<vmem>>, vector<1x16x1xf32>
    %c0_27 = arith.constant 0 : index
    %c0_28 = arith.constant 0 : index
    %c0_29 = arith.constant 0 : index
    %133 = vector.load %arg7[%c0_27, %c0_28, %c0_29] : memref<1x16x1xf32, #tpu.memory_space<vmem>>, vector<1x16x1xf32>
    %cst_30 = arith.constant dense<0.000000e+00> : vector<2x16xf32>
    %134 = vector.multi_reduction <add>, %131, %cst_30 [2] : vector<2x16x256xf32> to vector<2x16xf32>
    %135 = vector.shape_cast %134 : vector<2x16xf32> to vector<2x16x1xf32>
    %cst_31 = arith.constant dense<0.000000e+00> : vector<16x1xf32>
    %136 = vector.multi_reduction <add>, %135, %cst_31 [0] : vector<2x16x1xf32> to vector<16x1xf32>
    %137 = vector.shape_cast %136 : vector<16x1xf32> to vector<1x16x1xf32>
    %cst_32 = arith.constant 0.001953125 : f32
    %138 = vector.broadcast %cst_32 : f32 to vector<1x16x1xf32>
    %139 = arith.mulf %137, %138 : vector<1x16x1xf32>
    %140 = vector.broadcast %139 : vector<1x16x1xf32> to vector<2x16x256xf32>
    %141 = arith.subf %131, %140 : vector<2x16x256xf32>
    %142 = arith.mulf %141, %141 : vector<2x16x256xf32>
    %cst_33 = arith.constant dense<0.000000e+00> : vector<2x16xf32>
    %143 = vector.multi_reduction <add>, %142, %cst_33 [2] : vector<2x16x256xf32> to vector<2x16xf32>
    %144 = vector.shape_cast %143 : vector<2x16xf32> to vector<2x16x1xf32>
    %cst_34 = arith.constant dense<0.000000e+00> : vector<16x1xf32>
    %145 = vector.multi_reduction <add>, %144, %cst_34 [0] : vector<2x16x1xf32> to vector<16x1xf32>
    %146 = vector.shape_cast %145 : vector<16x1xf32> to vector<1x16x1xf32>
    %cst_35 = arith.constant 0.001953125 : f32
    %147 = vector.broadcast %cst_35 : f32 to vector<1x16x1xf32>
    %148 = arith.mulf %146, %147 : vector<1x16x1xf32>
    %cst_36 = arith.constant 9.99999974E-6 : f32
    %149 = vector.broadcast %cst_36 : f32 to vector<1x16x1xf32>
    %150 = arith.addf %148, %149 : vector<1x16x1xf32>
    %151 = math.rsqrt %150 : vector<1x16x1xf32>
    %152 = arith.mulf %151, %132 : vector<1x16x1xf32>
    %153 = arith.mulf %139, %152 : vector<1x16x1xf32>
    %154 = arith.subf %133, %153 : vector<1x16x1xf32>
    %155 = vector.broadcast %152 : vector<1x16x1xf32> to vector<2x16x256xf32>
    %156 = arith.mulf %131, %155 : vector<2x16x256xf32>
    %157 = vector.broadcast %154 : vector<1x16x1xf32> to vector<2x16x256xf32>
    %158 = arith.addf %156, %157 : vector<2x16x256xf32>
    %cst_37 = arith.constant dense<0.000000e+00> : vector<2x16xf32>
    %159 = vector.multi_reduction <add>, %158, %cst_37 [2] : vector<2x16x256xf32> to vector<2x16xf32>
    %160 = vector.shape_cast %159 : vector<2x16xf32> to vector<2x16x1xf32>
    %cst_38 = arith.constant 2.560000e+02 : f32
    %161 = vector.broadcast %cst_38 : f32 to vector<2x16x1xf32>
    %162 = arith.divf %160, %161 : vector<2x16x1xf32>
    %c0_39 = arith.constant 0 : index
    %c0_40 = arith.constant 0 : index
    %c0_41 = arith.constant 0 : index
    %163 = vector.load %arg8[%c0_39, %c0_40, %c0_41] : memref<16x4x1xf32, #tpu.memory_space<vmem>>, vector<16x4x1xf32>
    %164 = vector.extract_strided_slice %162 {offsets = [0, 0, 0], sizes = [2, 1, 1], strides = [1, 1, 1]} : vector<2x16x1xf32> to vector<2x1x1xf32>
    %165 = vector.extract_strided_slice %163 {offsets = [0, 0, 0], sizes = [1, 4, 1], strides = [1, 1, 1]} : vector<16x4x1xf32> to vector<1x4x1xf32>
    %166 = vector.shape_cast %165 : vector<1x4x1xf32> to vector<4x1xf32>
    %167 = vector.shape_cast %166 : vector<4x1xf32> to vector<1x4x1xf32>
    %168 = vector.broadcast %164 : vector<2x1x1xf32> to vector<2x4x1xf32>
    %169 = vector.broadcast %167 : vector<1x4x1xf32> to vector<2x4x1xf32>
    %170 = arith.mulf %168, %169 : vector<2x4x1xf32>
    %171 = vector.extract_strided_slice %162 {offsets = [0, 1, 0], sizes = [2, 1, 1], strides = [1, 1, 1]} : vector<2x16x1xf32> to vector<2x1x1xf32>
    %172 = vector.extract_strided_slice %163 {offsets = [1, 0, 0], sizes = [1, 4, 1], strides = [1, 1, 1]} : vector<16x4x1xf32> to vector<1x4x1xf32>
    %173 = vector.shape_cast %172 : vector<1x4x1xf32> to vector<4x1xf32>
    %174 = vector.shape_cast %173 : vector<4x1xf32> to vector<1x4x1xf32>
    %175 = vector.broadcast %171 : vector<2x1x1xf32> to vector<2x4x1xf32>
    %176 = vector.broadcast %174 : vector<1x4x1xf32> to vector<2x4x1xf32>
    %177 = arith.mulf %175, %176 : vector<2x4x1xf32>
    %178 = arith.addf %170, %177 : vector<2x4x1xf32>
    %179 = vector.extract_strided_slice %162 {offsets = [0, 2, 0], sizes = [2, 1, 1], strides = [1, 1, 1]} : vector<2x16x1xf32> to vector<2x1x1xf32>
    %180 = vector.extract_strided_slice %163 {offsets = [2, 0, 0], sizes = [1, 4, 1], strides = [1, 1, 1]} : vector<16x4x1xf32> to vector<1x4x1xf32>
    %181 = vector.shape_cast %180 : vector<1x4x1xf32> to vector<4x1xf32>
    %182 = vector.shape_cast %181 : vector<4x1xf32> to vector<1x4x1xf32>
    %183 = vector.broadcast %179 : vector<2x1x1xf32> to vector<2x4x1xf32>
    %184 = vector.broadcast %182 : vector<1x4x1xf32> to vector<2x4x1xf32>
    %185 = arith.mulf %183, %184 : vector<2x4x1xf32>
    %186 = arith.addf %178, %185 : vector<2x4x1xf32>
    %187 = vector.extract_strided_slice %162 {offsets = [0, 3, 0], sizes = [2, 1, 1], strides = [1, 1, 1]} : vector<2x16x1xf32> to vector<2x1x1xf32>
    %188 = vector.extract_strided_slice %163 {offsets = [3, 0, 0], sizes = [1, 4, 1], strides = [1, 1, 1]} : vector<16x4x1xf32> to vector<1x4x1xf32>
    %189 = vector.shape_cast %188 : vector<1x4x1xf32> to vector<4x1xf32>
    %190 = vector.shape_cast %189 : vector<4x1xf32> to vector<1x4x1xf32>
    %191 = vector.broadcast %187 : vector<2x1x1xf32> to vector<2x4x1xf32>
    %192 = vector.broadcast %190 : vector<1x4x1xf32> to vector<2x4x1xf32>
    %193 = arith.mulf %191, %192 : vector<2x4x1xf32>
    %194 = arith.addf %186, %193 : vector<2x4x1xf32>
    %195 = vector.extract_strided_slice %162 {offsets = [0, 4, 0], sizes = [2, 1, 1], strides = [1, 1, 1]} : vector<2x16x1xf32> to vector<2x1x1xf32>
    %196 = vector.extract_strided_slice %163 {offsets = [4, 0, 0], sizes = [1, 4, 1], strides = [1, 1, 1]} : vector<16x4x1xf32> to vector<1x4x1xf32>
    %197 = vector.shape_cast %196 : vector<1x4x1xf32> to vector<4x1xf32>
    %198 = vector.shape_cast %197 : vector<4x1xf32> to vector<1x4x1xf32>
    %199 = vector.broadcast %195 : vector<2x1x1xf32> to vector<2x4x1xf32>
    %200 = vector.broadcast %198 : vector<1x4x1xf32> to vector<2x4x1xf32>
    %201 = arith.mulf %199, %200 : vector<2x4x1xf32>
    %202 = arith.addf %194, %201 : vector<2x4x1xf32>
    %203 = vector.extract_strided_slice %162 {offsets = [0, 5, 0], sizes = [2, 1, 1], strides = [1, 1, 1]} : vector<2x16x1xf32> to vector<2x1x1xf32>
    %204 = vector.extract_strided_slice %163 {offsets = [5, 0, 0], sizes = [1, 4, 1], strides = [1, 1, 1]} : vector<16x4x1xf32> to vector<1x4x1xf32>
    %205 = vector.shape_cast %204 : vector<1x4x1xf32> to vector<4x1xf32>
    %206 = vector.shape_cast %205 : vector<4x1xf32> to vector<1x4x1xf32>
    %207 = vector.broadcast %203 : vector<2x1x1xf32> to vector<2x4x1xf32>
    %208 = vector.broadcast %206 : vector<1x4x1xf32> to vector<2x4x1xf32>
    %209 = arith.mulf %207, %208 : vector<2x4x1xf32>
    %210 = arith.addf %202, %209 : vector<2x4x1xf32>
    %211 = vector.extract_strided_slice %162 {offsets = [0, 6, 0], sizes = [2, 1, 1], strides = [1, 1, 1]} : vector<2x16x1xf32> to vector<2x1x1xf32>
    %212 = vector.extract_strided_slice %163 {offsets = [6, 0, 0], sizes = [1, 4, 1], strides = [1, 1, 1]} : vector<16x4x1xf32> to vector<1x4x1xf32>
    %213 = vector.shape_cast %212 : vector<1x4x1xf32> to vector<4x1xf32>
    %214 = vector.shape_cast %213 : vector<4x1xf32> to vector<1x4x1xf32>
    %215 = vector.broadcast %211 : vector<2x1x1xf32> to vector<2x4x1xf32>
    %216 = vector.broadcast %214 : vector<1x4x1xf32> to vector<2x4x1xf32>
    %217 = arith.mulf %215, %216 : vector<2x4x1xf32>
    %218 = arith.addf %210, %217 : vector<2x4x1xf32>
    %219 = vector.extract_strided_slice %162 {offsets = [0, 7, 0], sizes = [2, 1, 1], strides = [1, 1, 1]} : vector<2x16x1xf32> to vector<2x1x1xf32>
    %220 = vector.extract_strided_slice %163 {offsets = [7, 0, 0], sizes = [1, 4, 1], strides = [1, 1, 1]} : vector<16x4x1xf32> to vector<1x4x1xf32>
    %221 = vector.shape_cast %220 : vector<1x4x1xf32> to vector<4x1xf32>
    %222 = vector.shape_cast %221 : vector<4x1xf32> to vector<1x4x1xf32>
    %223 = vector.broadcast %219 : vector<2x1x1xf32> to vector<2x4x1xf32>
    %224 = vector.broadcast %222 : vector<1x4x1xf32> to vector<2x4x1xf32>
    %225 = arith.mulf %223, %224 : vector<2x4x1xf32>
    %226 = arith.addf %218, %225 : vector<2x4x1xf32>
    %227 = vector.extract_strided_slice %162 {offsets = [0, 8, 0], sizes = [2, 1, 1], strides = [1, 1, 1]} : vector<2x16x1xf32> to vector<2x1x1xf32>
    %228 = vector.extract_strided_slice %163 {offsets = [8, 0, 0], sizes = [1, 4, 1], strides = [1, 1, 1]} : vector<16x4x1xf32> to vector<1x4x1xf32>
    %229 = vector.shape_cast %228 : vector<1x4x1xf32> to vector<4x1xf32>
    %230 = vector.shape_cast %229 : vector<4x1xf32> to vector<1x4x1xf32>
    %231 = vector.broadcast %227 : vector<2x1x1xf32> to vector<2x4x1xf32>
    %232 = vector.broadcast %230 : vector<1x4x1xf32> to vector<2x4x1xf32>
    %233 = arith.mulf %231, %232 : vector<2x4x1xf32>
    %234 = arith.addf %226, %233 : vector<2x4x1xf32>
    %235 = vector.extract_strided_slice %162 {offsets = [0, 9, 0], sizes = [2, 1, 1], strides = [1, 1, 1]} : vector<2x16x1xf32> to vector<2x1x1xf32>
    %236 = vector.extract_strided_slice %163 {offsets = [9, 0, 0], sizes = [1, 4, 1], strides = [1, 1, 1]} : vector<16x4x1xf32> to vector<1x4x1xf32>
    %237 = vector.shape_cast %236 : vector<1x4x1xf32> to vector<4x1xf32>
    %238 = vector.shape_cast %237 : vector<4x1xf32> to vector<1x4x1xf32>
    %239 = vector.broadcast %235 : vector<2x1x1xf32> to vector<2x4x1xf32>
    %240 = vector.broadcast %238 : vector<1x4x1xf32> to vector<2x4x1xf32>
    %241 = arith.mulf %239, %240 : vector<2x4x1xf32>
    %242 = arith.addf %234, %241 : vector<2x4x1xf32>
    %243 = vector.extract_strided_slice %162 {offsets = [0, 10, 0], sizes = [2, 1, 1], strides = [1, 1, 1]} : vector<2x16x1xf32> to vector<2x1x1xf32>
    %244 = vector.extract_strided_slice %163 {offsets = [10, 0, 0], sizes = [1, 4, 1], strides = [1, 1, 1]} : vector<16x4x1xf32> to vector<1x4x1xf32>
    %245 = vector.shape_cast %244 : vector<1x4x1xf32> to vector<4x1xf32>
    %246 = vector.shape_cast %245 : vector<4x1xf32> to vector<1x4x1xf32>
    %247 = vector.broadcast %243 : vector<2x1x1xf32> to vector<2x4x1xf32>
    %248 = vector.broadcast %246 : vector<1x4x1xf32> to vector<2x4x1xf32>
    %249 = arith.mulf %247, %248 : vector<2x4x1xf32>
    %250 = arith.addf %242, %249 : vector<2x4x1xf32>
    %251 = vector.extract_strided_slice %162 {offsets = [0, 11, 0], sizes = [2, 1, 1], strides = [1, 1, 1]} : vector<2x16x1xf32> to vector<2x1x1xf32>
    %252 = vector.extract_strided_slice %163 {offsets = [11, 0, 0], sizes = [1, 4, 1], strides = [1, 1, 1]} : vector<16x4x1xf32> to vector<1x4x1xf32>
    %253 = vector.shape_cast %252 : vector<1x4x1xf32> to vector<4x1xf32>
    %254 = vector.shape_cast %253 : vector<4x1xf32> to vector<1x4x1xf32>
    %255 = vector.broadcast %251 : vector<2x1x1xf32> to vector<2x4x1xf32>
    %256 = vector.broadcast %254 : vector<1x4x1xf32> to vector<2x4x1xf32>
    %257 = arith.mulf %255, %256 : vector<2x4x1xf32>
    %258 = arith.addf %250, %257 : vector<2x4x1xf32>
    %259 = vector.extract_strided_slice %162 {offsets = [0, 12, 0], sizes = [2, 1, 1], strides = [1, 1, 1]} : vector<2x16x1xf32> to vector<2x1x1xf32>
    %260 = vector.extract_strided_slice %163 {offsets = [12, 0, 0], sizes = [1, 4, 1], strides = [1, 1, 1]} : vector<16x4x1xf32> to vector<1x4x1xf32>
    %261 = vector.shape_cast %260 : vector<1x4x1xf32> to vector<4x1xf32>
    %262 = vector.shape_cast %261 : vector<4x1xf32> to vector<1x4x1xf32>
    %263 = vector.broadcast %259 : vector<2x1x1xf32> to vector<2x4x1xf32>
    %264 = vector.broadcast %262 : vector<1x4x1xf32> to vector<2x4x1xf32>
    %265 = arith.mulf %263, %264 : vector<2x4x1xf32>
    %266 = arith.addf %258, %265 : vector<2x4x1xf32>
    %267 = vector.extract_strided_slice %162 {offsets = [0, 13, 0], sizes = [2, 1, 1], strides = [1, 1, 1]} : vector<2x16x1xf32> to vector<2x1x1xf32>
    %268 = vector.extract_strided_slice %163 {offsets = [13, 0, 0], sizes = [1, 4, 1], strides = [1, 1, 1]} : vector<16x4x1xf32> to vector<1x4x1xf32>
    %269 = vector.shape_cast %268 : vector<1x4x1xf32> to vector<4x1xf32>
    %270 = vector.shape_cast %269 : vector<4x1xf32> to vector<1x4x1xf32>
    %271 = vector.broadcast %267 : vector<2x1x1xf32> to vector<2x4x1xf32>
    %272 = vector.broadcast %270 : vector<1x4x1xf32> to vector<2x4x1xf32>
    %273 = arith.mulf %271, %272 : vector<2x4x1xf32>
    %274 = arith.addf %266, %273 : vector<2x4x1xf32>
    %275 = vector.extract_strided_slice %162 {offsets = [0, 14, 0], sizes = [2, 1, 1], strides = [1, 1, 1]} : vector<2x16x1xf32> to vector<2x1x1xf32>
    %276 = vector.extract_strided_slice %163 {offsets = [14, 0, 0], sizes = [1, 4, 1], strides = [1, 1, 1]} : vector<16x4x1xf32> to vector<1x4x1xf32>
    %277 = vector.shape_cast %276 : vector<1x4x1xf32> to vector<4x1xf32>
    %278 = vector.shape_cast %277 : vector<4x1xf32> to vector<1x4x1xf32>
    %279 = vector.broadcast %275 : vector<2x1x1xf32> to vector<2x4x1xf32>
    %280 = vector.broadcast %278 : vector<1x4x1xf32> to vector<2x4x1xf32>
    %281 = arith.mulf %279, %280 : vector<2x4x1xf32>
    %282 = arith.addf %274, %281 : vector<2x4x1xf32>
    %283 = vector.extract_strided_slice %162 {offsets = [0, 15, 0], sizes = [2, 1, 1], strides = [1, 1, 1]} : vector<2x16x1xf32> to vector<2x1x1xf32>
    %284 = vector.extract_strided_slice %163 {offsets = [15, 0, 0], sizes = [1, 4, 1], strides = [1, 1, 1]} : vector<16x4x1xf32> to vector<1x4x1xf32>
    %285 = vector.shape_cast %284 : vector<1x4x1xf32> to vector<4x1xf32>
    %286 = vector.shape_cast %285 : vector<4x1xf32> to vector<1x4x1xf32>
    %287 = vector.broadcast %283 : vector<2x1x1xf32> to vector<2x4x1xf32>
    %288 = vector.broadcast %286 : vector<1x4x1xf32> to vector<2x4x1xf32>
    %289 = arith.mulf %287, %288 : vector<2x4x1xf32>
    %290 = arith.addf %282, %289 : vector<2x4x1xf32>
    %c0_42 = arith.constant 0 : index
    %c0_43 = arith.constant 0 : index
    %c0_44 = arith.constant 0 : index
    %291 = vector.load %arg9[%c0_42, %c0_43, %c0_44] : memref<1x4x1xf32, #tpu.memory_space<vmem>>, vector<1x4x1xf32>
    %292 = vector.broadcast %291 : vector<1x4x1xf32> to vector<2x4x1xf32>
    %293 = arith.addf %290, %292 : vector<2x4x1xf32>
    %294 = arith.negf %293 : vector<2x4x1xf32>
    %295 = math.exp %294 : vector<2x4x1xf32>
    %cst_45 = arith.constant 1.000000e+00 : f32
    %296 = vector.broadcast %cst_45 : f32 to vector<2x4x1xf32>
    %297 = arith.addf %296, %295 : vector<2x4x1xf32>
    %298 = arith.divf %296, %297 : vector<2x4x1xf32>
    %299 = arith.mulf %293, %298 : vector<2x4x1xf32>
    %c0_46 = arith.constant 0 : index
    %c0_47 = arith.constant 0 : index
    %c0_48 = arith.constant 0 : index
    %300 = vector.load %arg10[%c0_46, %c0_47, %c0_48] : memref<4x16x1xf32, #tpu.memory_space<vmem>>, vector<4x16x1xf32>
    %301 = vector.extract_strided_slice %299 {offsets = [0, 0, 0], sizes = [2, 1, 1], strides = [1, 1, 1]} : vector<2x4x1xf32> to vector<2x1x1xf32>
    %302 = vector.extract_strided_slice %300 {offsets = [0, 0, 0], sizes = [1, 16, 1], strides = [1, 1, 1]} : vector<4x16x1xf32> to vector<1x16x1xf32>
    %303 = vector.shape_cast %302 : vector<1x16x1xf32> to vector<16x1xf32>
    %304 = vector.shape_cast %303 : vector<16x1xf32> to vector<1x16x1xf32>
    %305 = vector.broadcast %301 : vector<2x1x1xf32> to vector<2x16x1xf32>
    %306 = vector.broadcast %304 : vector<1x16x1xf32> to vector<2x16x1xf32>
    %307 = arith.mulf %305, %306 : vector<2x16x1xf32>
    %308 = vector.extract_strided_slice %299 {offsets = [0, 1, 0], sizes = [2, 1, 1], strides = [1, 1, 1]} : vector<2x4x1xf32> to vector<2x1x1xf32>
    %309 = vector.extract_strided_slice %300 {offsets = [1, 0, 0], sizes = [1, 16, 1], strides = [1, 1, 1]} : vector<4x16x1xf32> to vector<1x16x1xf32>
    %310 = vector.shape_cast %309 : vector<1x16x1xf32> to vector<16x1xf32>
    %311 = vector.shape_cast %310 : vector<16x1xf32> to vector<1x16x1xf32>
    %312 = vector.broadcast %308 : vector<2x1x1xf32> to vector<2x16x1xf32>
    %313 = vector.broadcast %311 : vector<1x16x1xf32> to vector<2x16x1xf32>
    %314 = arith.mulf %312, %313 : vector<2x16x1xf32>
    %315 = arith.addf %307, %314 : vector<2x16x1xf32>
    %316 = vector.extract_strided_slice %299 {offsets = [0, 2, 0], sizes = [2, 1, 1], strides = [1, 1, 1]} : vector<2x4x1xf32> to vector<2x1x1xf32>
    %317 = vector.extract_strided_slice %300 {offsets = [2, 0, 0], sizes = [1, 16, 1], strides = [1, 1, 1]} : vector<4x16x1xf32> to vector<1x16x1xf32>
    %318 = vector.shape_cast %317 : vector<1x16x1xf32> to vector<16x1xf32>
    %319 = vector.shape_cast %318 : vector<16x1xf32> to vector<1x16x1xf32>
    %320 = vector.broadcast %316 : vector<2x1x1xf32> to vector<2x16x1xf32>
    %321 = vector.broadcast %319 : vector<1x16x1xf32> to vector<2x16x1xf32>
    %322 = arith.mulf %320, %321 : vector<2x16x1xf32>
    %323 = arith.addf %315, %322 : vector<2x16x1xf32>
    %324 = vector.extract_strided_slice %299 {offsets = [0, 3, 0], sizes = [2, 1, 1], strides = [1, 1, 1]} : vector<2x4x1xf32> to vector<2x1x1xf32>
    %325 = vector.extract_strided_slice %300 {offsets = [3, 0, 0], sizes = [1, 16, 1], strides = [1, 1, 1]} : vector<4x16x1xf32> to vector<1x16x1xf32>
    %326 = vector.shape_cast %325 : vector<1x16x1xf32> to vector<16x1xf32>
    %327 = vector.shape_cast %326 : vector<16x1xf32> to vector<1x16x1xf32>
    %328 = vector.broadcast %324 : vector<2x1x1xf32> to vector<2x16x1xf32>
    %329 = vector.broadcast %327 : vector<1x16x1xf32> to vector<2x16x1xf32>
    %330 = arith.mulf %328, %329 : vector<2x16x1xf32>
    %331 = arith.addf %323, %330 : vector<2x16x1xf32>
    %c0_49 = arith.constant 0 : index
    %c0_50 = arith.constant 0 : index
    %c0_51 = arith.constant 0 : index
    %332 = vector.load %arg11[%c0_49, %c0_50, %c0_51] : memref<1x16x1xf32, #tpu.memory_space<vmem>>, vector<1x16x1xf32>
    %333 = vector.broadcast %332 : vector<1x16x1xf32> to vector<2x16x1xf32>
    %334 = arith.addf %331, %333 : vector<2x16x1xf32>
    %335 = arith.negf %334 : vector<2x16x1xf32>
    %336 = math.exp %335 : vector<2x16x1xf32>
    %cst_52 = arith.constant 1.000000e+00 : f32
    %337 = vector.broadcast %cst_52 : f32 to vector<2x16x1xf32>
    %338 = arith.addf %337, %336 : vector<2x16x1xf32>
    %339 = arith.divf %337, %338 : vector<2x16x1xf32>
    %340 = vector.broadcast %339 : vector<2x16x1xf32> to vector<2x16x256xf32>
    %341 = arith.mulf %158, %340 : vector<2x16x256xf32>
    %c0_53 = arith.constant 0 : index
    %c0_54 = arith.constant 0 : index
    %c0_55 = arith.constant 0 : index
    %342 = vector.load %arg12[%c0_53, %c0_54, %c0_55] : memref<16x4x1xf32, #tpu.memory_space<vmem>>, vector<16x4x1xf32>
    %343 = vector.extract_strided_slice %341 {offsets = [0, 0, 0], sizes = [2, 1, 256], strides = [1, 1, 1]} : vector<2x16x256xf32> to vector<2x1x256xf32>
    %344 = vector.extract_strided_slice %342 {offsets = [0, 0, 0], sizes = [1, 4, 1], strides = [1, 1, 1]} : vector<16x4x1xf32> to vector<1x4x1xf32>
    %345 = vector.shape_cast %344 : vector<1x4x1xf32> to vector<4x1xf32>
    %346 = vector.shape_cast %345 : vector<4x1xf32> to vector<1x4x1xf32>
    %347 = vector.broadcast %343 : vector<2x1x256xf32> to vector<2x4x256xf32>
    %348 = vector.broadcast %346 : vector<1x4x1xf32> to vector<2x4x256xf32>
    %349 = arith.mulf %347, %348 : vector<2x4x256xf32>
    %350 = vector.extract_strided_slice %341 {offsets = [0, 1, 0], sizes = [2, 1, 256], strides = [1, 1, 1]} : vector<2x16x256xf32> to vector<2x1x256xf32>
    %351 = vector.extract_strided_slice %342 {offsets = [1, 0, 0], sizes = [1, 4, 1], strides = [1, 1, 1]} : vector<16x4x1xf32> to vector<1x4x1xf32>
    %352 = vector.shape_cast %351 : vector<1x4x1xf32> to vector<4x1xf32>
    %353 = vector.shape_cast %352 : vector<4x1xf32> to vector<1x4x1xf32>
    %354 = vector.broadcast %350 : vector<2x1x256xf32> to vector<2x4x256xf32>
    %355 = vector.broadcast %353 : vector<1x4x1xf32> to vector<2x4x256xf32>
    %356 = arith.mulf %354, %355 : vector<2x4x256xf32>
    %357 = arith.addf %349, %356 : vector<2x4x256xf32>
    %358 = vector.extract_strided_slice %341 {offsets = [0, 2, 0], sizes = [2, 1, 256], strides = [1, 1, 1]} : vector<2x16x256xf32> to vector<2x1x256xf32>
    %359 = vector.extract_strided_slice %342 {offsets = [2, 0, 0], sizes = [1, 4, 1], strides = [1, 1, 1]} : vector<16x4x1xf32> to vector<1x4x1xf32>
    %360 = vector.shape_cast %359 : vector<1x4x1xf32> to vector<4x1xf32>
    %361 = vector.shape_cast %360 : vector<4x1xf32> to vector<1x4x1xf32>
    %362 = vector.broadcast %358 : vector<2x1x256xf32> to vector<2x4x256xf32>
    %363 = vector.broadcast %361 : vector<1x4x1xf32> to vector<2x4x256xf32>
    %364 = arith.mulf %362, %363 : vector<2x4x256xf32>
    %365 = arith.addf %357, %364 : vector<2x4x256xf32>
    %366 = vector.extract_strided_slice %341 {offsets = [0, 3, 0], sizes = [2, 1, 256], strides = [1, 1, 1]} : vector<2x16x256xf32> to vector<2x1x256xf32>
    %367 = vector.extract_strided_slice %342 {offsets = [3, 0, 0], sizes = [1, 4, 1], strides = [1, 1, 1]} : vector<16x4x1xf32> to vector<1x4x1xf32>
    %368 = vector.shape_cast %367 : vector<1x4x1xf32> to vector<4x1xf32>
    %369 = vector.shape_cast %368 : vector<4x1xf32> to vector<1x4x1xf32>
    %370 = vector.broadcast %366 : vector<2x1x256xf32> to vector<2x4x256xf32>
    %371 = vector.broadcast %369 : vector<1x4x1xf32> to vector<2x4x256xf32>
    %372 = arith.mulf %370, %371 : vector<2x4x256xf32>
    %373 = arith.addf %365, %372 : vector<2x4x256xf32>
    %374 = vector.extract_strided_slice %341 {offsets = [0, 4, 0], sizes = [2, 1, 256], strides = [1, 1, 1]} : vector<2x16x256xf32> to vector<2x1x256xf32>
    %375 = vector.extract_strided_slice %342 {offsets = [4, 0, 0], sizes = [1, 4, 1], strides = [1, 1, 1]} : vector<16x4x1xf32> to vector<1x4x1xf32>
    %376 = vector.shape_cast %375 : vector<1x4x1xf32> to vector<4x1xf32>
    %377 = vector.shape_cast %376 : vector<4x1xf32> to vector<1x4x1xf32>
    %378 = vector.broadcast %374 : vector<2x1x256xf32> to vector<2x4x256xf32>
    %379 = vector.broadcast %377 : vector<1x4x1xf32> to vector<2x4x256xf32>
    %380 = arith.mulf %378, %379 : vector<2x4x256xf32>
    %381 = arith.addf %373, %380 : vector<2x4x256xf32>
    %382 = vector.extract_strided_slice %341 {offsets = [0, 5, 0], sizes = [2, 1, 256], strides = [1, 1, 1]} : vector<2x16x256xf32> to vector<2x1x256xf32>
    %383 = vector.extract_strided_slice %342 {offsets = [5, 0, 0], sizes = [1, 4, 1], strides = [1, 1, 1]} : vector<16x4x1xf32> to vector<1x4x1xf32>
    %384 = vector.shape_cast %383 : vector<1x4x1xf32> to vector<4x1xf32>
    %385 = vector.shape_cast %384 : vector<4x1xf32> to vector<1x4x1xf32>
    %386 = vector.broadcast %382 : vector<2x1x256xf32> to vector<2x4x256xf32>
    %387 = vector.broadcast %385 : vector<1x4x1xf32> to vector<2x4x256xf32>
    %388 = arith.mulf %386, %387 : vector<2x4x256xf32>
    %389 = arith.addf %381, %388 : vector<2x4x256xf32>
    %390 = vector.extract_strided_slice %341 {offsets = [0, 6, 0], sizes = [2, 1, 256], strides = [1, 1, 1]} : vector<2x16x256xf32> to vector<2x1x256xf32>
    %391 = vector.extract_strided_slice %342 {offsets = [6, 0, 0], sizes = [1, 4, 1], strides = [1, 1, 1]} : vector<16x4x1xf32> to vector<1x4x1xf32>
    %392 = vector.shape_cast %391 : vector<1x4x1xf32> to vector<4x1xf32>
    %393 = vector.shape_cast %392 : vector<4x1xf32> to vector<1x4x1xf32>
    %394 = vector.broadcast %390 : vector<2x1x256xf32> to vector<2x4x256xf32>
    %395 = vector.broadcast %393 : vector<1x4x1xf32> to vector<2x4x256xf32>
    %396 = arith.mulf %394, %395 : vector<2x4x256xf32>
    %397 = arith.addf %389, %396 : vector<2x4x256xf32>
    %398 = vector.extract_strided_slice %341 {offsets = [0, 7, 0], sizes = [2, 1, 256], strides = [1, 1, 1]} : vector<2x16x256xf32> to vector<2x1x256xf32>
    %399 = vector.extract_strided_slice %342 {offsets = [7, 0, 0], sizes = [1, 4, 1], strides = [1, 1, 1]} : vector<16x4x1xf32> to vector<1x4x1xf32>
    %400 = vector.shape_cast %399 : vector<1x4x1xf32> to vector<4x1xf32>
    %401 = vector.shape_cast %400 : vector<4x1xf32> to vector<1x4x1xf32>
    %402 = vector.broadcast %398 : vector<2x1x256xf32> to vector<2x4x256xf32>
    %403 = vector.broadcast %401 : vector<1x4x1xf32> to vector<2x4x256xf32>
    %404 = arith.mulf %402, %403 : vector<2x4x256xf32>
    %405 = arith.addf %397, %404 : vector<2x4x256xf32>
    %406 = vector.extract_strided_slice %341 {offsets = [0, 8, 0], sizes = [2, 1, 256], strides = [1, 1, 1]} : vector<2x16x256xf32> to vector<2x1x256xf32>
    %407 = vector.extract_strided_slice %342 {offsets = [8, 0, 0], sizes = [1, 4, 1], strides = [1, 1, 1]} : vector<16x4x1xf32> to vector<1x4x1xf32>
    %408 = vector.shape_cast %407 : vector<1x4x1xf32> to vector<4x1xf32>
    %409 = vector.shape_cast %408 : vector<4x1xf32> to vector<1x4x1xf32>
    %410 = vector.broadcast %406 : vector<2x1x256xf32> to vector<2x4x256xf32>
    %411 = vector.broadcast %409 : vector<1x4x1xf32> to vector<2x4x256xf32>
    %412 = arith.mulf %410, %411 : vector<2x4x256xf32>
    %413 = arith.addf %405, %412 : vector<2x4x256xf32>
    %414 = vector.extract_strided_slice %341 {offsets = [0, 9, 0], sizes = [2, 1, 256], strides = [1, 1, 1]} : vector<2x16x256xf32> to vector<2x1x256xf32>
    %415 = vector.extract_strided_slice %342 {offsets = [9, 0, 0], sizes = [1, 4, 1], strides = [1, 1, 1]} : vector<16x4x1xf32> to vector<1x4x1xf32>
    %416 = vector.shape_cast %415 : vector<1x4x1xf32> to vector<4x1xf32>
    %417 = vector.shape_cast %416 : vector<4x1xf32> to vector<1x4x1xf32>
    %418 = vector.broadcast %414 : vector<2x1x256xf32> to vector<2x4x256xf32>
    %419 = vector.broadcast %417 : vector<1x4x1xf32> to vector<2x4x256xf32>
    %420 = arith.mulf %418, %419 : vector<2x4x256xf32>
    %421 = arith.addf %413, %420 : vector<2x4x256xf32>
    %422 = vector.extract_strided_slice %341 {offsets = [0, 10, 0], sizes = [2, 1, 256], strides = [1, 1, 1]} : vector<2x16x256xf32> to vector<2x1x256xf32>
    %423 = vector.extract_strided_slice %342 {offsets = [10, 0, 0], sizes = [1, 4, 1], strides = [1, 1, 1]} : vector<16x4x1xf32> to vector<1x4x1xf32>
    %424 = vector.shape_cast %423 : vector<1x4x1xf32> to vector<4x1xf32>
    %425 = vector.shape_cast %424 : vector<4x1xf32> to vector<1x4x1xf32>
    %426 = vector.broadcast %422 : vector<2x1x256xf32> to vector<2x4x256xf32>
    %427 = vector.broadcast %425 : vector<1x4x1xf32> to vector<2x4x256xf32>
    %428 = arith.mulf %426, %427 : vector<2x4x256xf32>
    %429 = arith.addf %421, %428 : vector<2x4x256xf32>
    %430 = vector.extract_strided_slice %341 {offsets = [0, 11, 0], sizes = [2, 1, 256], strides = [1, 1, 1]} : vector<2x16x256xf32> to vector<2x1x256xf32>
    %431 = vector.extract_strided_slice %342 {offsets = [11, 0, 0], sizes = [1, 4, 1], strides = [1, 1, 1]} : vector<16x4x1xf32> to vector<1x4x1xf32>
    %432 = vector.shape_cast %431 : vector<1x4x1xf32> to vector<4x1xf32>
    %433 = vector.shape_cast %432 : vector<4x1xf32> to vector<1x4x1xf32>
    %434 = vector.broadcast %430 : vector<2x1x256xf32> to vector<2x4x256xf32>
    %435 = vector.broadcast %433 : vector<1x4x1xf32> to vector<2x4x256xf32>
    %436 = arith.mulf %434, %435 : vector<2x4x256xf32>
    %437 = arith.addf %429, %436 : vector<2x4x256xf32>
    %438 = vector.extract_strided_slice %341 {offsets = [0, 12, 0], sizes = [2, 1, 256], strides = [1, 1, 1]} : vector<2x16x256xf32> to vector<2x1x256xf32>
    %439 = vector.extract_strided_slice %342 {offsets = [12, 0, 0], sizes = [1, 4, 1], strides = [1, 1, 1]} : vector<16x4x1xf32> to vector<1x4x1xf32>
    %440 = vector.shape_cast %439 : vector<1x4x1xf32> to vector<4x1xf32>
    %441 = vector.shape_cast %440 : vector<4x1xf32> to vector<1x4x1xf32>
    %442 = vector.broadcast %438 : vector<2x1x256xf32> to vector<2x4x256xf32>
    %443 = vector.broadcast %441 : vector<1x4x1xf32> to vector<2x4x256xf32>
    %444 = arith.mulf %442, %443 : vector<2x4x256xf32>
    %445 = arith.addf %437, %444 : vector<2x4x256xf32>
    %446 = vector.extract_strided_slice %341 {offsets = [0, 13, 0], sizes = [2, 1, 256], strides = [1, 1, 1]} : vector<2x16x256xf32> to vector<2x1x256xf32>
    %447 = vector.extract_strided_slice %342 {offsets = [13, 0, 0], sizes = [1, 4, 1], strides = [1, 1, 1]} : vector<16x4x1xf32> to vector<1x4x1xf32>
    %448 = vector.shape_cast %447 : vector<1x4x1xf32> to vector<4x1xf32>
    %449 = vector.shape_cast %448 : vector<4x1xf32> to vector<1x4x1xf32>
    %450 = vector.broadcast %446 : vector<2x1x256xf32> to vector<2x4x256xf32>
    %451 = vector.broadcast %449 : vector<1x4x1xf32> to vector<2x4x256xf32>
    %452 = arith.mulf %450, %451 : vector<2x4x256xf32>
    %453 = arith.addf %445, %452 : vector<2x4x256xf32>
    %454 = vector.extract_strided_slice %341 {offsets = [0, 14, 0], sizes = [2, 1, 256], strides = [1, 1, 1]} : vector<2x16x256xf32> to vector<2x1x256xf32>
    %455 = vector.extract_strided_slice %342 {offsets = [14, 0, 0], sizes = [1, 4, 1], strides = [1, 1, 1]} : vector<16x4x1xf32> to vector<1x4x1xf32>
    %456 = vector.shape_cast %455 : vector<1x4x1xf32> to vector<4x1xf32>
    %457 = vector.shape_cast %456 : vector<4x1xf32> to vector<1x4x1xf32>
    %458 = vector.broadcast %454 : vector<2x1x256xf32> to vector<2x4x256xf32>
    %459 = vector.broadcast %457 : vector<1x4x1xf32> to vector<2x4x256xf32>
    %460 = arith.mulf %458, %459 : vector<2x4x256xf32>
    %461 = arith.addf %453, %460 : vector<2x4x256xf32>
    %462 = vector.extract_strided_slice %341 {offsets = [0, 15, 0], sizes = [2, 1, 256], strides = [1, 1, 1]} : vector<2x16x256xf32> to vector<2x1x256xf32>
    %463 = vector.extract_strided_slice %342 {offsets = [15, 0, 0], sizes = [1, 4, 1], strides = [1, 1, 1]} : vector<16x4x1xf32> to vector<1x4x1xf32>
    %464 = vector.shape_cast %463 : vector<1x4x1xf32> to vector<4x1xf32>
    %465 = vector.shape_cast %464 : vector<4x1xf32> to vector<1x4x1xf32>
    %466 = vector.broadcast %462 : vector<2x1x256xf32> to vector<2x4x256xf32>
    %467 = vector.broadcast %465 : vector<1x4x1xf32> to vector<2x4x256xf32>
    %468 = arith.mulf %466, %467 : vector<2x4x256xf32>
    %469 = arith.addf %461, %468 : vector<2x4x256xf32>
    %c0_56 = arith.constant 0 : index
    %c0_57 = arith.constant 0 : index
    %c0_58 = arith.constant 0 : index
    %470 = vector.load %arg13[%c0_56, %c0_57, %c0_58] : memref<1x4x1xf32, #tpu.memory_space<vmem>>, vector<1x4x1xf32>
    %c0_59 = arith.constant 0 : index
    %c0_60 = arith.constant 0 : index
    %c0_61 = arith.constant 0 : index
    %471 = vector.load %arg14[%c0_59, %c0_60, %c0_61] : memref<1x4x1xf32, #tpu.memory_space<vmem>>, vector<1x4x1xf32>
    %cst_62 = arith.constant dense<0.000000e+00> : vector<2x4xf32>
    %472 = vector.multi_reduction <add>, %469, %cst_62 [2] : vector<2x4x256xf32> to vector<2x4xf32>
    %473 = vector.shape_cast %472 : vector<2x4xf32> to vector<2x4x1xf32>
    %cst_63 = arith.constant dense<0.000000e+00> : vector<4x1xf32>
    %474 = vector.multi_reduction <add>, %473, %cst_63 [0] : vector<2x4x1xf32> to vector<4x1xf32>
    %475 = vector.shape_cast %474 : vector<4x1xf32> to vector<1x4x1xf32>
    %cst_64 = arith.constant 0.001953125 : f32
    %476 = vector.broadcast %cst_64 : f32 to vector<1x4x1xf32>
    %477 = arith.mulf %475, %476 : vector<1x4x1xf32>
    %478 = vector.broadcast %477 : vector<1x4x1xf32> to vector<2x4x256xf32>
    %479 = arith.subf %469, %478 : vector<2x4x256xf32>
    %480 = arith.mulf %479, %479 : vector<2x4x256xf32>
    %cst_65 = arith.constant dense<0.000000e+00> : vector<2x4xf32>
    %481 = vector.multi_reduction <add>, %480, %cst_65 [2] : vector<2x4x256xf32> to vector<2x4xf32>
    %482 = vector.shape_cast %481 : vector<2x4xf32> to vector<2x4x1xf32>
    %cst_66 = arith.constant dense<0.000000e+00> : vector<4x1xf32>
    %483 = vector.multi_reduction <add>, %482, %cst_66 [0] : vector<2x4x1xf32> to vector<4x1xf32>
    %484 = vector.shape_cast %483 : vector<4x1xf32> to vector<1x4x1xf32>
    %cst_67 = arith.constant 0.001953125 : f32
    %485 = vector.broadcast %cst_67 : f32 to vector<1x4x1xf32>
    %486 = arith.mulf %484, %485 : vector<1x4x1xf32>
    %cst_68 = arith.constant 9.99999974E-6 : f32
    %487 = vector.broadcast %cst_68 : f32 to vector<1x4x1xf32>
    %488 = arith.addf %486, %487 : vector<1x4x1xf32>
    %489 = math.rsqrt %488 : vector<1x4x1xf32>
    %490 = arith.mulf %489, %470 : vector<1x4x1xf32>
    %491 = arith.mulf %477, %490 : vector<1x4x1xf32>
    %492 = arith.subf %471, %491 : vector<1x4x1xf32>
    %493 = vector.broadcast %490 : vector<1x4x1xf32> to vector<2x4x256xf32>
    %494 = arith.mulf %469, %493 : vector<2x4x256xf32>
    %495 = vector.broadcast %492 : vector<1x4x1xf32> to vector<2x4x256xf32>
    %496 = arith.addf %494, %495 : vector<2x4x256xf32>
    %497 = vector.extract_strided_slice %496 {offsets = [0, 0, 0], sizes = [1, 4, 256], strides = [1, 1, 1]} : vector<2x4x256xf32> to vector<1x4x256xf32>
    %498 = vector.shape_cast %497 : vector<1x4x256xf32> to vector<4x256xf32>
    %499 = vector.extract_strided_slice %0 {offsets = [0, 0, 0], sizes = [1, 4, 256], strides = [1, 1, 1]} : vector<2x4x256xf32> to vector<1x4x256xf32>
    %500 = vector.shape_cast %499 : vector<1x4x256xf32> to vector<4x256xf32>
    %c0_69 = arith.constant 0 : index
    %501 = memref.load %arg15[%c0_69] : memref<2xf32, #tpu.memory_space<smem>>
    %502 = vector.broadcast %501 : f32 to vector<4x256xf32>
    %503 = arith.mulf %500, %502 : vector<4x256xf32>
    %504 = arith.addf %498, %503 : vector<4x256xf32>
    %c0_70 = arith.constant 0 : index
    %c0_71 = arith.constant 0 : index
    %c0_72 = arith.constant 0 : index
    %505 = vector.load %arg16[%c0_70, %c0_71, %c0_72] : memref<2x4x256xf32, #tpu.memory_space<vmem>>, vector<1x4x256xf32>
    %506 = vector.shape_cast %505 : vector<1x4x256xf32> to vector<4x256xf32>
    %507 = vector.shape_cast %504 : vector<4x256xf32> to vector<1x4x256xf32>
    tpu.vector_store %arg16[%c0_70, %c0_71, %c0_72], %507 {strides = array<i32>} : memref<2x4x256xf32, #tpu.memory_space<vmem>>, vector<1x4x256xf32>,
    %508 = vector.extract_strided_slice %496 {offsets = [1, 0, 0], sizes = [1, 4, 256], strides = [1, 1, 1]} : vector<2x4x256xf32> to vector<1x4x256xf32>
    %509 = vector.shape_cast %508 : vector<1x4x256xf32> to vector<4x256xf32>
    %510 = vector.extract_strided_slice %0 {offsets = [1, 0, 0], sizes = [1, 4, 256], strides = [1, 1, 1]} : vector<2x4x256xf32> to vector<1x4x256xf32>
    %511 = vector.shape_cast %510 : vector<1x4x256xf32> to vector<4x256xf32>
    %c1 = arith.constant 1 : index
    %512 = memref.load %arg15[%c1] : memref<2xf32, #tpu.memory_space<smem>>
    %513 = vector.broadcast %512 : f32 to vector<4x256xf32>
    %514 = arith.mulf %511, %513 : vector<4x256xf32>
    %515 = arith.addf %509, %514 : vector<4x256xf32>
    %c1_73 = arith.constant 1 : index
    %c0_74 = arith.constant 0 : index
    %c0_75 = arith.constant 0 : index
    %516 = vector.load %arg16[%c1_73, %c0_74, %c0_75] : memref<2x4x256xf32, #tpu.memory_space<vmem>>, vector<1x4x256xf32>
    %517 = vector.shape_cast %516 : vector<1x4x256xf32> to vector<4x256xf32>
    %518 = vector.shape_cast %515 : vector<4x256xf32> to vector<1x4x256xf32>
    tpu.vector_store %arg16[%c1_73, %c0_74, %c0_75], %518 {strides = array<i32>} : memref<2x4x256xf32, #tpu.memory_space<vmem>>, vector<1x4x256xf32>,
    return
  }
}

</mosaic_0001>

<bundles_post_ra>
// kernel: tpu_custom_call.1
= control target key start
LH: loop header
LB: loop body
LE: loop exit
PB: predicated region body
PF: predicated region fallthrough
CT: control target
= control target key end

     0   :  { %s3672_s0 = inlined_call_operand.vmem [shape: f32[2,4,256], index: 0, kind: input, shape index: {}]   ;;  %s3673_s1 = inlined_call_operand.vmem [shape: f32[4,16,1], index: 1, kind: input, shape index: {}]   ;;  %s3674_s2 = inlined_call_operand.vmem [shape: f32[1,16,1], index: 2, kind: input, shape index: {}]   ;;  %s3675_s3 = inlined_call_operand.vmem [shape: f32[1,16,1], index: 3, kind: input, shape index: {}]   ;;  %s3676_s4 = inlined_call_operand.vmem [shape: f32[9,16,1], index: 4, kind: input, shape index: {}]   ;;  %s3677_s5 = inlined_call_operand.vmem [shape: f32[9,1,256], index: 5, kind: input, shape index: {}]   ;;  %s3678_s6 = inlined_call_operand.vmem [shape: f32[1,16,1], index: 6, kind: input, shape index: {}]   ;;  %s3679_s7 = inlined_call_operand.vmem [shape: f32[1,16,1], index: 7, kind: input, shape index: {}]   ;;  %s3680_s8 = inlined_call_operand.vmem [shape: f32[16,4,1], index: 8, kind: input, shape index: {}]   ;;  %s3681_s9 = inlined_call_operand.vmem [shape: f32[1,4,1], index: 9, kind: input, shape index: {}]   ;;  %s3682_s10 = inlined_call_operand.vmem [shape: f32[4,16,1], index: 10, kind: input, shape index: {}]   ;;  %s3683_s11 = inlined_call_operand.vmem [shape: f32[1,16,1], index: 11, kind: input, shape index: {}]   ;;  %s3684_s12 = inlined_call_operand.vmem [shape: f32[16,4,1], index: 12, kind: input, shape index: {}]   ;;  %s3685_s13 = inlined_call_operand.vmem [shape: f32[1,4,1], index: 13, kind: input, shape index: {}]   ;;  %s3686_s14 = inlined_call_operand.vmem [shape: f32[1,4,1], index: 14, kind: input, shape index: {}]   ;;  %s3687_s15 = inlined_call_operand.vmem [shape: f32[2], index: 15, kind: input, shape index: {}]   ;;  %s3688_s16 = inlined_call_operand.hbm [shape: f32[2,4,256], index: 16, kind: output, shape index: {}]  }
   0x1   :  { %3738 = sst [smem:[#allocation47_spill]] %s3672_s0 }
   0x2   :  { %21 = vsyncpa [#allocation4], 0 }
   0x3   :  { %22 = vsyncpa [#allocation3], 0  ;;  %s59_s23 = sshll.u32 %s3687_s15, 4  ;;  %s60_s23 = int_to_ptr.vmem [resolvable:$true] %s59_s23 }
   0x4   :  { %s2207_s24 = scalar_lea.vmem %s60_s23, 16  ;;  %p2212_p1 = scmp.lt.s32.totalorder %s60_s23, %s60_s23 }
   0x5   :  { %p2208_p0 = scmp.ne.s32.totalorder %s60_s23, %s2207_s24  ;;  %p2213_p2 = scmp.lt.s32.totalorder %s2207_s24, %s2207_s24 }
   0x7   :  { %p2214_p3 = por %p2213_p2, %p2212_p1 }
   0x9   :  { %p2215_p4 = pnand %p2214_p3, %p2208_p0 }
   0xb   :  { %2218 = shalt.err (!%p2215_p4)
}
   0xc   :  { %s2245_s25 = smov [#allocation2]  }
   0xd   :  { %62 = dma.vmem_to_smem %s60_s23, 16, %s2245_s25, [#allocation4]  }
   0xe   :  { %2241 = dma.done.wait [#allocation4], 16  }
   0xf   :  { %2242 = vsyncadd [#allocation4], 4294967280 }
  0x10   :  { %66 = sfence }
  0x11   :  { %v73_v0 = vld [vmem:[%s3673_s1 + $0x20] sm:$0xff]  ;;  %v2246_v2 = vmov 0   ;;  %v75_v3 = vld [vmem:[%s3673_s1 + $0x30] sm:$0xff]  ;;  %v72_v5 = vld [vmem:[%s3673_s1 + $0x18] sm:$0xff]  ;;  %v3690_v9 = vlaneseq  ;;  %s3742_s28 = sld [smem:[#allocation47_spill]]  ;;  %s2249_s25 = smov 15  }
  0x12   :  { %v69_v1 = vld [vmem:[%s3673_s1] sm:$0xff]  ;;  %2138 = vset.pattern.permute.xlu1 %v2246_v2  ;;  %2137 = vset.pattern.permute.xlu0 %v2246_v2  ;;  %v71_v4 = vld [vmem:[%s3673_s1 + $0x10] sm:$0xff]  ;;  %v70_v6 = vld [vmem:[%s3673_s1 + $0x8] sm:$0xff]  ;;  %s2250_s26 = smov 1   ;;  %s2251_s27 = smov 127   ;;  %vm2005_vm8 = vcmask 1043456  }
  0x13   :  { %233 = vperm.xlu1 %2138, %v73_v0   ;;  %117 = vperm.xlu0 %2137, %v69_v1   ;;  %v76_v7 = vld [vmem:[%s3673_s1 + $0x38] sm:$0xff]  ;;  %v74_v8 = vld [vmem:[%s3673_s1 + $0x28] sm:$0xff]  ;;  %v80_v10 = vshrl.u32 %v3690_v9, 7  ;;  %s2252_s29 = smov 113   ;;  %s2253_s15 = smov 112  }
  0x14   :  { %s2254_s1 = smov 111  }
  0x15   :  { %v2371_v11 = vsub.s32 0, %v80_v10  ;;  %v2373_v12 = vsub.s32 4, %v80_v10  ;;  %v2375_v13 = vsub.s32 1, %v80_v10  ;;  %v2383_v16 = vsub.s32 5, %v80_v10 }
  0x16   :  { %v2385_v17 = vsub.s32 2, %v80_v10  ;;  %v2387_v18 = vsub.s32 6, %v80_v10  ;;  %v2389_v19 = vsub.s32 3, %v80_v10  ;;  %v2391_v20 = vsub.s32 7, %v80_v10 }
  0x17   :  { %295 = vperm.xlu1 %2138, %v75_v3   ;;  %171 = vperm.xlu0 %2137, %v71_v4   ;;  %3739 = vst [vmem:[#allocation8_spill] sm:$0xff] %v2371_v11  ;;  %3740 = vst [vmem:[#allocation9_spill] sm:$0xff] %v2373_v12  ;;  %v67_v14 = vld [vmem:[%s3742_s28] sm:$0xff]  ;;  %v68_v15 = vld [vmem:[%s3742_s28 + $0x8] sm:$0xff] }
  0x18   :  { %3741 = vst [vmem:[#allocation10_spill] sm:$0xff] %v2375_v13  ;;  %3743 = vst [vmem:[#allocation11_spill] sm:$0xff] %v2383_v16  ;;  %v82_v21 = vrot.slane %v67_v14, %v2371_v11  ;;  %v86_v22 = vrot.slane %v67_v14, %v2373_v12  ;;  %v90_v23 = vrot.slane %v68_v15, %v2371_v11 }
  0x19   :  { %3744 = vst [vmem:[#allocation12_spill] sm:$0xff] %v2385_v17  ;;  %3745 = vst [vmem:[#allocation13_spill] sm:$0xff] %v2387_v18  ;;  %v94_v24 = vrot.slane %v68_v15, %v2373_v12  ;;  %v136_v25 = vrot.slane %v67_v14, %v2375_v13  ;;  %v140_v26 = vrot.slane %v67_v14, %v2383_v16 }
  0x1a   :  { %3746 = vst [vmem:[#allocation14_spill] sm:$0xff] %v2389_v19  ;;  %3747 = vst [vmem:[#allocation15_spill] sm:$0xff] %v2391_v20  ;;  %v144_v27 = vrot.slane %v68_v15, %v2375_v13  ;;  %v148_v28 = vrot.slane %v68_v15, %v2383_v16  ;;  %v198_v29 = vrot.slane %v67_v14, %v2385_v17  ;;  %v495_v16 = vld [vmem:[%s3677_s5 + $0x8] sm:$0x3] }
  0x1b   :  { %176 = vperm.xlu1 %2138, %v72_v5   ;;  %122 = vperm.xlu0 %2137, %v70_v6   ;;  %v202_v30 = vrot.slane %v67_v14, %v2387_v18  ;;  %v206_v31 = vrot.slane %v68_v15, %v2385_v17  ;;  %v210_v32 = vrot.slane %v68_v15, %v2387_v18 }
  0x1c   :  { %v268_v33 = vrot.slane %v68_v15, %v2389_v19  ;;  %v272_v34 = vrot.slane %v68_v15, %v2391_v20  ;;  %v260_v35 = vrot.slane %v67_v14, %v2389_v19  ;;  %v264_v36 = vrot.slane %v67_v14, %v2391_v20 }
  0x1d   :  { %v102_v39 = vrot.slane %v82_v21, %v2371_v11  ;;  %v106_v40 = vrot.slane %v86_v22, %v2371_v11  ;;  %v110_v41 = vrot.slane %v90_v23, %v2371_v11  ;;  %v114_v42 = vrot.slane %v94_v24, %v2371_v11 }
  0x1e   :  { %v156_v43 = vrot.slane %v136_v25, %v2375_v13  ;;  %v160_v44 = vrot.slane %v140_v26, %v2375_v13  ;;  %v164_v45 = vrot.slane %v144_v27, %v2375_v13  ;;  %v168_v46 = vrot.slane %v148_v28, %v2375_v13 }
  0x1f   :  { %300 = vperm.xlu1 %2138, %v76_v7   ;;  %238 = vperm.xlu0 %2137, %v74_v8   ;;  %v218_v47 = vrot.slane %v198_v29, %v2385_v17  ;;  %v222_v48 = vrot.slane %v202_v30, %v2385_v17  ;;  %v226_v49 = vrot.slane %v206_v31, %v2385_v17 }
  0x20   :  { %v230_v50 = vrot.slane %v210_v32, %v2385_v17  ;;  %v2422_v51 = vrot.slane %v268_v33, %v2389_v19  ;;  %v2425_v52 = vrot.slane %v272_v34, %v2389_v19  ;;  %v280_v53 = vrot.slane %v260_v35, %v2389_v19 }
  0x21   :  { %v284_v54 = vrot.slane %v264_v36, %v2389_v19 }
  0x92   :  { %v234_v37 = vpop.permute.xlu1 %233  ;;  %v118_v38 = vpop.permute.xlu0 %117 }
  0x93   :  { %v125_v55 = vmul.f32 %v118_v38, %v102_v39  ;;  %v126_v56 = vmul.f32 %v118_v38, %v106_v40  ;;  %v129_v57 = vmul.f32 %v118_v38, %v110_v41  ;;  %v130_v58 = vmul.f32 %v118_v38, %v114_v42 }
  0x94   :  { %v241_v1 = vmul.f32 %v234_v37, %v218_v47  ;;  %v242_v2 = vmul.f32 %v234_v37, %v222_v48  ;;  %v245_v3 = vmul.f32 %v234_v37, %v226_v49  ;;  %v246_v4 = vmul.f32 %v234_v37, %v230_v50 }
  0x96   :  { %v296_v59 = vpop.permute.xlu1 %295  ;;  %v172_v60 = vpop.permute.xlu0 %171 }
  0x97   :  { %v179_v61 = vmul.f32 %v172_v60, %v156_v43  ;;  %v180_v62 = vmul.f32 %v172_v60, %v160_v44  ;;  %v183_v63 = vmul.f32 %v172_v60, %v164_v45  ;;  %v184_v0 = vmul.f32 %v172_v60, %v168_v46 }
  0x98   :  { %v307_v15 = vmul.f32 %v296_v59, %v2422_v51  ;;  %v308_v21 = vmul.f32 %v296_v59, %v2425_v52  ;;  %v303_v22 = vmul.f32 %v296_v59, %v280_v53  ;;  %v304_v23 = vmul.f32 %v296_v59, %v284_v54 }
  0x99   :  { %v191_v5 = vadd.f32 %v183_v63, %v129_v57  ;;  %v192_v6 = vadd.f32 %v184_v0, %v130_v58  ;;  %v187_v7 = vadd.f32 %v179_v61, %v125_v55  ;;  %v188_v8 = vadd.f32 %v180_v62, %v126_v56 }
  0x9a   :  { %v177_v10 = vpop.permute.xlu1 %176  ;;  %v123_v14 = vpop.permute.xlu0 %122 }
  0x9b   :  { %v181_v24 = vmul.f32 %v177_v10, %v156_v43  ;;  %v182_v25 = vmul.f32 %v177_v10, %v160_v44  ;;  %v185_v26 = vmul.f32 %v177_v10, %v164_v45  ;;  %v186_v27 = vmul.f32 %v177_v10, %v168_v46 }
  0x9c   :  { %v127_v28 = vmul.f32 %v123_v14, %v102_v39  ;;  %v128_v29 = vmul.f32 %v123_v14, %v106_v40  ;;  %v131_v30 = vmul.f32 %v123_v14, %v110_v41  ;;  %v132_v31 = vmul.f32 %v123_v14, %v114_v42 }
  0x9d   :  { %v253_v32 = vadd.f32 %v245_v3, %v191_v5  ;;  %v254_v33 = vadd.f32 %v246_v4, %v192_v6  ;;  %v249_v34 = vadd.f32 %v241_v1, %v187_v7  ;;  %v250_v35 = vadd.f32 %v242_v2, %v188_v8 }
  0x9e   :  { %v301_v36 = vpop.permute.xlu1 %300  ;;  %v239_v37 = vpop.permute.xlu0 %238  ;;  %v189_v38 = vadd.f32 %v181_v24, %v127_v28  ;;  %v190_v55 = vadd.f32 %v182_v25, %v128_v29  ;;  %v193_v56 = vadd.f32 %v185_v26, %v131_v30  ;;  %v194_v57 = vadd.f32 %v186_v27, %v132_v31 }
  0x9f   :  { %v243_v58 = vmul.f32 %v239_v37, %v218_v47  ;;  %v244_v59 = vmul.f32 %v239_v37, %v222_v48  ;;  %v247_v43 = vmul.f32 %v239_v37, %v226_v49  ;;  %v248_v44 = vmul.f32 %v239_v37, %v230_v50 }
  0xa0   :  { %v2431_v45 = vadd.f32 %v307_v15, %v253_v32  ;;  %v2433_v39 = vadd.f32 %v308_v21, %v254_v33  ;;  %v2435_v40 = vadd.f32 %v303_v22, %v249_v34  ;;  %v2437_v41 = vadd.f32 %v304_v23, %v250_v35 }
  0xa1   :  { %v251_v42 = vadd.f32 %v243_v58, %v189_v38  ;;  %v252_v46 = vadd.f32 %v244_v59, %v190_v55  ;;  %v305_v60 = vmul.f32 %v301_v36, %v280_v53  ;;  %v306_v61 = vmul.f32 %v301_v36, %v284_v54  ;;  %v475_v55 = vld [vmem:[%s3676_s4 + $0x10] sm:$0xff]  ;;  %v477_v59 = vld [vmem:[%s3676_s4 + $0x20] sm:$0xff] }
  0xa2   :  { %v329_v62 = vadd.f32 %v2433_v39, %v2431_v45  ;;  %v323_v47 = vadd.f32 %v2437_v41, %v2435_v40  ;;  %v255_v48 = vadd.f32 %v247_v43, %v193_v56  ;;  %v256_v49 = vadd.f32 %v248_v44, %v194_v57  ;;  %v479_v56 = vld [vmem:[%s3676_s4 + $0x30] sm:$0xff]  ;;  %v473_v57 = vld [vmem:[%s3676_s4] sm:$0xff] }
  0xa3   :  { %v2443_v50 = vadd.f32 %v305_v60, %v251_v42  ;;  %v2445_v63 = vadd.f32 %v306_v61, %v252_v46  ;;  %v309_v0 = vmul.f32 %v301_v36, %v2422_v51  ;;  %v310_v1 = vmul.f32 %v301_v36, %v2425_v52  ;;  %v483_v58 = vld [vmem:[%s3676_s4 + $0x50] sm:$0xff]  ;;  %v481_v44 = vld [vmem:[%s3676_s4 + $0x40] sm:$0xff]  ;;  %v476_v42 = vld [vmem:[%s3676_s4 + $0x18] sm:$0xff] }
  0xa4   :  { %330 = vadd.xlane.f32.xlu1 %v329_v62  ;;  %324 = vadd.xlane.f32.xlu0 %v323_v47  ;;  %v487_v43 = vld [vmem:[%s3676_s4 + $0x70] sm:$0xff]  ;;  %v485_v46 = vld [vmem:[%s3676_s4 + $0x60] sm:$0xff]  ;;  %v478_v60 = vld [vmem:[%s3676_s4 + $0x28] sm:$0xff] }
  0xa5   :  { %v326_v53 = vadd.f32 %v2445_v63, %v2443_v50  ;;  %v2451_v54 = vadd.f32 %v309_v0, %v255_v48  ;;  %v2453_v2 = vadd.f32 %v310_v1, %v256_v49  ;;  %v474_v61 = vld [vmem:[%s3676_s4 + $0x8] sm:$0xff]  ;;  %v489_v47 = vld [vmem:[%s3676_s4 + $0x80] sm:$0xff]  ;;  %v480_v49 = vld [vmem:[%s3676_s4 + $0x38] sm:$0xff] }
  0xa6   :  { %v482_v62 = vld [vmem:[%s3676_s4 + $0x48] sm:$0xff]  ;;  %v484_v1 = vld [vmem:[%s3676_s4 + $0x58] sm:$0xff] }
  0xa7   :  { %v332_v3 = vadd.f32 %v2453_v2, %v2451_v54  ;;  %v486_v48 = vld [vmem:[%s3676_s4 + $0x68] sm:$0xff] }
  0xa8   :  { %327 = vadd.xlane.f32.xlu0 %v326_v53  ;;  %v490_v0 = vld [vmem:[%s3676_s4 + $0x88] sm:$0xff]  ;;  %v488_v53 = vld [vmem:[%s3676_s4 + $0x78] sm:$0xff] }
  0xac   :  { %333 = vadd.xlane.f32.xlu0 %v332_v3 }
 0x131   :  { %v331_v4 = vpop.xlane.xlu1 %330  ;;  %v325_v5 = vpop.xlane.xlu0 %324 }
 0x132   :  { %v335_v6 = vadd.f32 %v331_v4, %v325_v5 }
 0x134   :  { %v2457_v7 = vmul.f32 0.001953125, %v335_v6 }
 0x135   :  { %v328_v51 = vpop.xlane.xlu0 %327 }
 0x136   :  { %v343_v52 = vsub.f32 %v2431_v45, %v2457_v7  ;;  %v344_v8 = vsub.f32 %v2433_v39, %v2457_v7  ;;  %v339_v10 = vsub.f32 %v2435_v40, %v2457_v7  ;;  %v340_v14 = vsub.f32 %v2437_v41, %v2457_v7 }
 0x138   :  { %v351_v15 = vmul.f32 %v343_v52, %v343_v52  ;;  %v352_v21 = vmul.f32 %v344_v8, %v344_v8  ;;  %v347_v22 = vmul.f32 %v339_v10, %v339_v10  ;;  %v348_v23 = vmul.f32 %v340_v14, %v340_v14 }
 0x139   :  { %v334_v24 = vpop.xlane.xlu0 %333 }
 0x13a   :  { %v336_v25 = vadd.f32 %v334_v24, %v328_v51  ;;  %v361_v26 = vadd.f32 %v352_v21, %v351_v15  ;;  %v355_v27 = vadd.f32 %v348_v23, %v347_v22  ;;  %v319_v21 = vld [vmem:[%s3674_s2] sm:$0xff] }
 0x13b   :  { %v321_v24 = vld [vmem:[%s3675_s3] sm:$0xff] }
 0x13c   :  { %v2467_v28 = vmul.f32 0.001953125, %v336_v25  ;;  %362 = vadd.xlane.f32.xlu0 %v361_v26  ;;  %356 = vadd.xlane.f32.xlu1 %v355_v27  ;;  %v320_v27 = vld [vmem:[%s3674_s2 + $0x8] sm:$0xff]  ;;  %s2247_s2 = smov 17  }
 0x13e   :  { %v345_v29 = vsub.f32 %v2451_v54, %v2467_v28  ;;  %v346_v30 = vsub.f32 %v2453_v2, %v2467_v28  ;;  %v341_v31 = vsub.f32 %v2443_v50, %v2467_v28  ;;  %v342_v32 = vsub.f32 %v2445_v63, %v2467_v28 }
 0x140   :  { %v353_v33 = vmul.f32 %v345_v29, %v345_v29  ;;  %v354_v34 = vmul.f32 %v346_v30, %v346_v30  ;;  %v349_v35 = vmul.f32 %v341_v31, %v341_v31  ;;  %v350_v36 = vmul.f32 %v342_v32, %v342_v32  ;;  %v322_v31 = vld [vmem:[%s3675_s3 + $0x8] sm:$0xff]  ;;  %s2248_s3 = smov 16  }
 0x142   :  { %v364_v37 = vadd.f32 %v354_v34, %v353_v33  ;;  %v358_v38 = vadd.f32 %v350_v36, %v349_v35 }
 0x144   :  { %365 = vadd.xlane.f32.xlu0 %v364_v37  ;;  %359 = vadd.xlane.f32.xlu1 %v358_v38 }
 0x155   :  { %512 = vperm.xlu1 %2138, %v475_v55  }
 0x159   :  { %532 = vperm.xlu1 %2138, %v479_v56  }
 0x15a   :  { %502 = vperm.xlu0 %2137, %v473_v57  }
 0x15d   :  { %552 = vperm.xlu1 %2138, %v483_v58  }
 0x15e   :  { %522 = vperm.xlu0 %2137, %v477_v59  }
 0x161   :  { %572 = vperm.xlu1 %2138, %v487_v43  }
 0x162   :  { %542 = vperm.xlu0 %2137, %v481_v44  }
 0x165   :  { %517 = vperm.xlu1 %2138, %v476_v42  }
 0x166   :  { %562 = vperm.xlu0 %2137, %v485_v46  }
 0x169   :  { %527 = vperm.xlu1 %2138, %v478_v60  }
 0x16a   :  { %507 = vperm.xlu0 %2137, %v474_v61  }
 0x16d   :  { %547 = vperm.xlu1 %2138, %v482_v62  }
 0x16e   :  { %582 = vperm.xlu0 %2137, %v489_v47  }
 0x171   :  { %567 = vperm.xlu1 %2138, %v486_v48  }
 0x172   :  { %537 = vperm.xlu0 %2137, %v480_v49  }
 0x175   :  { %587 = vperm.xlu1 %2138, %v490_v0  }
 0x176   :  { %557 = vperm.xlu0 %2137, %v484_v1  }
 0x17a   :  { %577 = vperm.xlu0 %2137, %v488_v53  }
 0x1c9   :  { %v357_v3 = vpop.xlane.xlu1 %356  ;;  %v363_v4 = vpop.xlane.xlu0 %362 }
 0x1ca   :  { %v367_v5 = vadd.f32 %v363_v4, %v357_v3 }
 0x1cc   :  { %v369_v6 = vmul.f32 0.001953125, %v367_v5 }
 0x1ce   :  { %v371_v51 = vadd.f32 1e-05, %v369_v6 }
 0x1d0   :  { %2139 = vrsqrt.f32 %v371_v51 }
 0x1d1   :  { %v360_v52 = vpop.xlane.xlu1 %359  ;;  %v366_v8 = vpop.xlane.xlu0 %365 }
 0x1d2   :  { %v368_v10 = vadd.f32 %v366_v8, %v360_v52 }
 0x1d4   :  { %v370_v14 = vmul.f32 0.001953125, %v368_v10 }
 0x1d5   :  { %v2545_v34 = vpop.permute.xlu1 %512 }
 0x1d6   :  { %v372_v15 = vadd.f32 1e-05, %v370_v14 }
 0x1d8   :  { %2141 = vrsqrt.f32 %v372_v15 }
 0x1d9   :  { %v2549_v35 = vpop.permute.xlu1 %532 }
 0x1da   :  { %v2140_v22 = vpop.eup %2139 }
 0x1db   :  { %v375_v23 = vmul.f32 %v2140_v22, %v319_v21 }
 0x1dd   :  { %383 = vperm.xlu1 %2138, %v375_v23   ;;  %v377_v25 = vmul.f32 %v375_v23, %v2457_v7  ;;  %v2547_v7 = vpop.permute.xlu0 %502  ;;  %v2553_v37 = vpop.permute.xlu1 %552 }
 0x1df   :  { %v379_v26 = vsub.f32 %v321_v24, %v377_v25 }
 0x1e1   :  { %401 = vperm.xlu0 %2137, %v379_v26   ;;  %v2551_v36 = vpop.permute.xlu0 %522  ;;  %v2557_v55 = vpop.permute.xlu1 %572 }
 0x1e2   :  { %v2142_v29 = vpop.eup %2141 }
 0x1e3   :  { %v376_v30 = vmul.f32 %v2142_v29, %v320_v27 }
 0x1e5   :  { %388 = vperm.xlu1 %2138, %v376_v30   ;;  %v378_v32 = vmul.f32 %v376_v30, %v2467_v28  ;;  %v2555_v38 = vpop.permute.xlu0 %542  ;;  %v2561_v57 = vpop.permute.xlu1 %517 }
 0x1e6   :  { %3748 = vst [vmem:[#allocation16_spill] sm:$0xff] %v2561_v57 }
 0x1e7   :  { %v380_v33 = vsub.f32 %v322_v31, %v378_v32 }
 0x1e9   :  { %406 = vperm.xlu1 %2138, %v380_v33   ;;  %v2559_v56 = vpop.permute.xlu0 %562  ;;  %v2565_v58 = vpop.permute.xlu1 %527 }
 0x1ea   :  { %3750 = vst [vmem:[#allocation18_spill] sm:$0xff] %v2565_v58 }
 0x1ed   :  { %v2563_v28 = vpop.permute.xlu0 %507  ;;  %v2569_v43 = vpop.permute.xlu1 %547 }
 0x1ee   :  { %3749 = vst [vmem:[#allocation17_spill] sm:$0xff] %v2563_v28  ;;  %3751 = vst [vmem:[#allocation19_spill] sm:$0xff] %v2569_v43 }
 0x1f1   :  { %v2567_v59 = vpop.permute.xlu0 %582  ;;  %v2573_v42 = vpop.permute.xlu1 %567 }
 0x1f2   :  { %3753 = vst [vmem:[#allocation21_spill] sm:$0xff] %v2573_v42 }
 0x1f5   :  { %v2571_v44 = vpop.permute.xlu0 %537  ;;  %v2577_v60 = vpop.permute.xlu1 %587 }
 0x1f6   :  { %3752 = vst [vmem:[#allocation20_spill] sm:$0xff] %v2571_v44  ;;  %3755 = vst [vmem:[#allocation23_spill] sm:$0xff] %v2577_v60  ;;  %v2848_v44 = vrot.slane %v495_v16, %v2375_v13 }
 0x1f8   :  { %3774 = vst [vmem:[#allocation42_spill] sm:$0xff] %v2848_v44 }
 0x1f9   :  { %v2575_v46 = vpop.permute.xlu0 %557 }
 0x1fa   :  { %3754 = vst [vmem:[#allocation22_spill] sm:$0xff] %v2575_v46  ;;  %v2845_v46 = vrot.slane %v495_v16, %v2371_v11 }
 0x1fc   :  { %3773 = vst [vmem:[#allocation41_spill] sm:$0xff] %v2845_v46 }
 0x1fd   :  { %v2579_v61 = vpop.permute.xlu0 %577 }
 0x1fe   :  { %3756 = vst [vmem:[#allocation24_spill] sm:$0xff] %v2579_v61 }
 0x25c   :  { %v384_v62 = vpop.permute.xlu1 %383 }
 0x25d   :  { %v391_v47 = vmul.f32 %v384_v62, %v2435_v40  ;;  %v392_v48 = vmul.f32 %v384_v62, %v2437_v41  ;;  %v395_v49 = vmul.f32 %v384_v62, %v2431_v45  ;;  %v396_v0 = vmul.f32 %v384_v62, %v2433_v39 }
 0x260   :  { %v402_v1 = vpop.permute.xlu0 %401 }
 0x261   :  { %v409_v53 = vadd.f32 %v402_v1, %v391_v47  ;;  %v410_v3 = vadd.f32 %v402_v1, %v392_v48  ;;  %v413_v4 = vadd.f32 %v402_v1, %v395_v49  ;;  %v414_v5 = vadd.f32 %v402_v1, %v396_v0 }
 0x263   :  { %v2109_v6 = vmul.f32 -1.442695, %v409_v53  ;;  %v2110_v51 = vmul.f32 -1.442695, %v410_v3  ;;  %v2113_v52 = vmul.f32 -1.442695, %v413_v4 }
 0x264   :  { %v2114_v8 = vmul.f32 -1.442695, %v414_v5  ;;  %v389_v31 = vpop.permute.xlu1 %388 }
 0x265   :  { %2143 = vpow2.f32 %v2109_v6  ;;  %v397_v33 = vmul.f32 %v389_v31, %v2451_v54  ;;  %v393_v62 = vmul.f32 %v389_v31, %v2443_v50  ;;  %v398_v48 = vmul.f32 %v389_v31, %v2453_v2 }
 0x266   :  { %2145 = vpow2.f32 %v2110_v51  ;;  %v394_v0 = vmul.f32 %v389_v31, %v2445_v63 }
 0x267   :  { %2147 = vpow2.f32 %v2113_v52 }
 0x268   :  { %2149 = vpow2.f32 %v2114_v8  ;;  %v407_v32 = vpop.permute.xlu1 %406 }
 0x269   :  { %v415_v47 = vadd.f32 %v407_v32, %v397_v33  ;;  %v411_v49 = vadd.f32 %v407_v32, %v393_v62  ;;  %v416_v1 = vadd.f32 %v407_v32, %v398_v48 }
 0x26b   :  { %v2115_v54 = vmul.f32 -1.442695, %v415_v47  ;;  %v2111_v50 = vmul.f32 -1.442695, %v411_v49 }
 0x26f   :  { %v2144_v40 = vpop.eup %2143 }
 0x270   :  { %v2146_v10 = vpop.eup %2145  ;;  %v441_v41 = vadd.f32 1.0, %v2144_v40 }
 0x271   :  { %v2148_v14 = vpop.eup %2147  ;;  %v442_v45 = vadd.f32 1.0, %v2146_v10 }
 0x272   :  { %v2150_v15 = vpop.eup %2149  ;;  %v445_v39 = vadd.f32 1.0, %v2148_v14  ;;  %2151 = vrcp.f32 %v441_v41 }
 0x273   :  { %v446_v21 = vadd.f32 1.0, %v2150_v15  ;;  %2153 = vrcp.f32 %v442_v45 }
 0x274   :  { %2155 = vrcp.f32 %v445_v39 }
 0x275   :  { %2157 = vrcp.f32 %v446_v21 }
 0x276   :  { %2159 = vpow2.f32 %v2115_v54 }
 0x277   :  { %2161 = vpow2.f32 %v2111_v50 }
 0x27c   :  { %v2152_v22 = vpop.eup %2151 }
 0x27d   :  { %v2154_v23 = vpop.eup %2153  ;;  %v2585_v24 = vmul.f32 %v2152_v22, %v409_v53  ;;  %v412_v53 = vadd.f32 %v407_v32, %v394_v0 }
 0x27e   :  { %v2156_v25 = vpop.eup %2155  ;;  %v2591_v29 = vmul.f32 %v2154_v23, %v410_v3  ;;  %v2116_v3 = vmul.f32 -1.442695, %v416_v1 }
 0x27f   :  { %v2587_v26 = vmul.f32 %v2156_v25, %v413_v4  ;;  %725 = vrot.lane.b32.xlu0 %v2585_v24, %s2247_s2  ;;  %v2158_v27 = vpop.eup %2157  ;;  %v2112_v2 = vmul.f32 -1.442695, %v412_v53 }
 0x280   :  { %v2595_v30 = vmul.f32 %v2158_v27, %v414_v5  ;;  %2163 = vpow2.f32 %v2116_v3  ;;  %v2160_v63 = vpop.eup %2159 }
 0x281   :  { %729 = vrot.lane.b32.xlu1 %v2587_v26, %s2247_s2  ;;  %2165 = vpow2.f32 %v2112_v2  ;;  %v2162_v4 = vpop.eup %2161  ;;  %v447_v5 = vadd.f32 1.0, %v2160_v63 }
 0x282   :  { %v443_v51 = vadd.f32 1.0, %v2162_v4 }
 0x283   :  { %733 = vrot.lane.b32.xlu0 %v2591_v29, %s2247_s2  ;;  %2167 = vrcp.f32 %v447_v5 }
 0x284   :  { %2169 = vrcp.f32 %v443_v51  ;;  %v492_v51 = vld [vmem:[%s3677_s5 + $0x2] sm:$0x3] }
 0x285   :  { %737 = vrot.lane.b32.xlu1 %v2595_v30, %s2247_s2  ;;  %v2798_v9 = vrot.slane %v492_v51, %v2371_v11  ;;  %v2801_v20 = vrot.slane %v492_v51, %v2375_v13  ;;  %v497_v51 = vld [vmem:[%s3677_s5 + $0xc] sm:$0x3] }
 0x286   :  { %v2859_v28 = vrot.slane %v497_v51, %v2375_v13 }
 0x287   :  { %760 = vrot.lane.b32.xlu0 %v2585_v24, %s2248_s3  ;;  %3761 = vst [vmem:[#allocation29_spill] sm:$0xff] %v2798_v9  ;;  %3762 = vst [vmem:[#allocation30_spill] sm:$0xff] %v2801_v20  ;;  %v693_v16 = vmul.f32 %v2798_v9, %v2545_v34 }
 0x288   :  { %3777 = vst [vmem:[#allocation44_spill] sm:$0xff] %v2859_v28 }
 0x289   :  { %764 = vrot.lane.b32.xlu1 %v2587_v26, %s2248_s3 }
 0x28a   :  { %v2164_v6 = vpop.eup %2163 }
 0x28b   :  { %768 = vrot.lane.b32.xlu0 %v2591_v29, %s2248_s3  ;;  %v2166_v52 = vpop.eup %2165  ;;  %v448_v8 = vadd.f32 1.0, %v2164_v6 }
 0x28c   :  { %v444_v40 = vadd.f32 1.0, %v2166_v52  ;;  %v494_v52 = vld [vmem:[%s3677_s5 + $0x6] sm:$0x3] }
 0x28d   :  { %772 = vrot.lane.b32.xlu1 %v2595_v30, %s2248_s3  ;;  %2171 = vrcp.f32 %v448_v8  ;;  %v2168_v10 = vpop.eup %2167  ;;  %v2804_v18 = vrot.slane %v494_v52, %v2371_v11  ;;  %v2810_v12 = vrot.slane %v494_v52, %v2375_v13 }
 0x28e   :  { %2173 = vrcp.f32 %v444_v40  ;;  %v2170_v41 = vpop.eup %2169  ;;  %v2651_v14 = vmul.f32 %v2168_v10, %v415_v47  ;;  %v491_v40 = vld [vmem:[%s3677_s5] sm:$0x3]  ;;  %v496_v10 = vld [vmem:[%s3677_s5 + $0xa] sm:$0x3] }
 0x28f   :  { %805 = vrot.lane.b32.xlu0 %v2587_v26, %s2249_s25  ;;  %v2655_v15 = vmul.f32 %v2170_v41, %v411_v49  ;;  %v493_v41 = vld [vmem:[%s3677_s5 + $0x4] sm:$0x3]  ;;  %3763 = vst [vmem:[#allocation31_spill] sm:$0xff] %v2804_v18  ;;  %3764 = vst [vmem:[#allocation32_spill] sm:$0xff] %v2810_v12  ;;  %v2813_v19 = vrot.slane %v491_v40, %v2371_v11  ;;  %v2816_v17 = vrot.slane %v491_v40, %v2375_v13 }
 0x290   :  { %3757 = vst [vmem:[#allocation25_spill] sm:$0xff] %v2651_v14  ;;  %v2819_v60 = vrot.slane %v496_v10, %v2371_v11  ;;  %v2830_v52 = vrot.slane %v496_v10, %v2375_v13  ;;  %v2836_v40 = vrot.slane %v493_v41, %v2375_v13  ;;  %v3775_v10 = vlaneseq }
 0x291   :  { %801 = vrot.lane.b32.xlu1 %v2585_v24, %s2249_s25  ;;  %3758 = vst [vmem:[#allocation26_spill] sm:$0xff] %v2655_v15  ;;  %3765 = vst [vmem:[#allocation33_spill] sm:$0xff] %v2813_v19  ;;  %v2873_v57 = vmul.f32 %v2804_v18, %v2549_v35 }
 0x292   :  { %3766 = vst [vmem:[#allocation34_spill] sm:$0xff] %v2816_v17  ;;  %3767 = vst [vmem:[#allocation35_spill] sm:$0xff] %v2819_v60  ;;  %v2851_v42 = vand.u32 127, %v3775_v10  ;;  %v694_v10 = vmul.f32 %v2801_v20, %v2545_v34  ;;  %v2886_v34 = vmul.f32 %v2819_v60, %v2553_v37  ;;  %v2890_v18 = vmul.f32 %v2830_v52, %v2553_v37 }
 0x293   :  { %813 = vrot.lane.b32.xlu0 %v2595_v30, %s2249_s25  ;;  %3768 = vst [vmem:[#allocation36_spill] sm:$0xff] %v2830_v52  ;;  %3770 = vst [vmem:[#allocation38_spill] sm:$0xff] %v2836_v40  ;;  %v706_v60 = vmul.f32 %v2848_v44, %v2555_v38 }
 0x294   :  { %vm776_vm0 = vcmp.lt.s32.totalorder %v2851_v42, 16  ;;  %vm743_vm1 = vcmp.lt.s32.totalorder %v2851_v42, 17  ;;  %vm817_vm2 = vcmp.lt.s32.totalorder %v2851_v42, 15  ;;  %vm858_vm3 = vcmp.lt.s32.totalorder %v2851_v42, 1 }
 0x295   :  { %809 = vrot.lane.b32.xlu1 %v2591_v29, %s2249_s25  ;;  %vm915_vm4 = vcmp.lt.s32.totalorder %v2851_v42, 127  ;;  %vm956_vm5 = vcmp.lt.s32.totalorder %v2851_v42, 113  ;;  %vm997_vm6 = vcmp.lt.s32.totalorder %v2851_v42, 112  ;;  %vm1038_vm7 = vcmp.lt.s32.totalorder %v2851_v42, 111 }
 0x297   :  { %842 = vrot.lane.b32.xlu0 %v2585_v24, %s2250_s26  ;;  %v2172_v45 = vpop.eup %2171 }
 0x298   :  { %v2174_v39 = vpop.eup %2173  ;;  %v2659_v21 = vmul.f32 %v2172_v45, %v416_v1  ;;  %v498_v45 = vld [vmem:[%s3677_s5 + $0xe] sm:$0x3] }
 0x299   :  { %846 = vrot.lane.b32.xlu1 %v2587_v26, %s2250_s26  ;;  %v2663_v22 = vmul.f32 %v2174_v39, %v412_v53  ;;  %v2842_v61 = vrot.slane %v498_v45, %v2375_v13 }
 0x29a   :  { %3759 = vst [vmem:[#allocation27_spill] sm:$0xff] %v2659_v21 }
 0x29b   :  { %850 = vrot.lane.b32.xlu0 %v2591_v29, %s2250_s26  ;;  %3760 = vst [vmem:[#allocation28_spill] sm:$0xff] %v2663_v22  ;;  %3772 = vst [vmem:[#allocation40_spill] sm:$0xff] %v2842_v61 }
 0x29d   :  { %854 = vrot.lane.b32.xlu1 %v2595_v30, %s2250_s26 }
 0x29f   :  { %899 = vrot.lane.b32.xlu0 %v2585_v24, %s2251_s27 }
 0x2a1   :  { %903 = vrot.lane.b32.xlu1 %v2587_v26, %s2251_s27 }
 0x2a3   :  { %907 = vrot.lane.b32.xlu0 %v2591_v29, %s2251_s27 }
 0x2a5   :  { %911 = vrot.lane.b32.xlu1 %v2595_v30, %s2251_s27 }
 0x2a7   :  { %944 = vrot.lane.b32.xlu0 %v2587_v26, %s2252_s29 }
 0x2a9   :  { %940 = vrot.lane.b32.xlu1 %v2585_v24, %s2252_s29 }
 0x2ab   :  { %952 = vrot.lane.b32.xlu0 %v2595_v30, %s2252_s29 }
 0x2ad   :  { %948 = vrot.lane.b32.xlu1 %v2591_v29, %s2252_s29 }
 0x2af   :  { %981 = vrot.lane.b32.xlu0 %v2585_v24, %s2253_s15 }
 0x2b1   :  { %985 = vrot.lane.b32.xlu1 %v2587_v26, %s2253_s15 }
 0x2b3   :  { %989 = vrot.lane.b32.xlu0 %v2591_v29, %s2253_s15 }
 0x2b5   :  { %993 = vrot.lane.b32.xlu1 %v2595_v30, %s2253_s15 }
 0x2b7   :  { %731 = vrot.lane.b32.xlu0 %v2651_v14, %s2247_s2 }
 0x2b9   :  { %727 = vrot.lane.b32.xlu1 %v2655_v15, %s2247_s2 }
 0x2bb   :  { %739 = vrot.lane.b32.xlu0 %v2659_v21, %s2247_s2 }
 0x2bd   :  { %735 = vrot.lane.b32.xlu1 %v2663_v22, %s2247_s2 }
 0x2bf   :  { %766 = vrot.lane.b32.xlu0 %v2651_v14, %s2248_s3 }
 0x2c1   :  { %762 = vrot.lane.b32.xlu1 %v2655_v15, %s2248_s3 }
 0x2c3   :  { %774 = vrot.lane.b32.xlu0 %v2659_v21, %s2248_s3 }
 0x2c5   :  { %770 = vrot.lane.b32.xlu1 %v2663_v22, %s2248_s3 }
 0x2c7   :  { %1026 = vrot.lane.b32.xlu0 %v2587_v26, %s2254_s1 }
 0x2c9   :  { %1022 = vrot.lane.b32.xlu1 %v2585_v24, %s2254_s1 }
 0x2cb   :  { %1034 = vrot.lane.b32.xlu0 %v2595_v30, %s2254_s1 }
 0x2cd   :  { %1030 = vrot.lane.b32.xlu1 %v2591_v29, %s2254_s1 }
 0x2cf   :  { %803 = vrot.lane.b32.xlu0 %v2655_v15, %s2249_s25 }
 0x2d1   :  { %807 = vrot.lane.b32.xlu1 %v2651_v14, %s2249_s25 }
 0x2d3   :  { %811 = vrot.lane.b32.xlu0 %v2663_v22, %s2249_s25 }
 0x2d5   :  { %815 = vrot.lane.b32.xlu1 %v2659_v21, %s2249_s25 }
 0x2d7   :  { %848 = vrot.lane.b32.xlu0 %v2651_v14, %s2250_s26 }
 0x2d9   :  { %844 = vrot.lane.b32.xlu1 %v2655_v15, %s2250_s26 }
 0x2db   :  { %856 = vrot.lane.b32.xlu0 %v2659_v21, %s2250_s26 }
 0x2dd   :  { %852 = vrot.lane.b32.xlu1 %v2663_v22, %s2250_s26 }
 0x2df   :  { %901 = vrot.lane.b32.xlu0 %v2655_v15, %s2251_s27 }
 0x2e1   :  { %905 = vrot.lane.b32.xlu1 %v2651_v14, %s2251_s27 }
 0x2e3   :  { %909 = vrot.lane.b32.xlu0 %v2663_v22, %s2251_s27 }
 0x2e5   :  { %913 = vrot.lane.b32.xlu1 %v2659_v21, %s2251_s27 }
 0x2e7   :  { %942 = vrot.lane.b32.xlu0 %v2655_v15, %s2252_s29 }
 0x2e9   :  { %946 = vrot.lane.b32.xlu1 %v2651_v14, %s2252_s29 }
 0x2eb   :  { %950 = vrot.lane.b32.xlu0 %v2663_v22, %s2252_s29 }
 0x2ed   :  { %954 = vrot.lane.b32.xlu1 %v2659_v21, %s2252_s29 }
 0x2ef   :  { %983 = vrot.lane.b32.xlu0 %v2655_v15, %s2253_s15 }
 0x2f1   :  { %987 = vrot.lane.b32.xlu1 %v2651_v14, %s2253_s15  ;;  %v2721_v23 = vpop.permute.xlu0 %725 }
 0x2f3   :  { %v2723_v25 = vpop.permute.xlu1 %729  ;;  %991 = vrot.lane.b32.xlu0 %v2663_v22, %s2253_s15 }
 0x2f5   :  { %995 = vrot.lane.b32.xlu1 %v2659_v21, %s2253_s15  ;;  %v2729_v27 = vpop.permute.xlu0 %733 }
 0x2f7   :  { %v2731_v31 = vpop.permute.xlu1 %737  ;;  %1024 = vrot.lane.b32.xlu0 %v2655_v15, %s2254_s1  ;;  %v2839_v15 = vrot.slane %v498_v45, %v2371_v11 }
 0x2f9   :  { %1028 = vrot.lane.b32.xlu1 %v2651_v14, %s2254_s1  ;;  %v2737_v32 = vpop.permute.xlu0 %760  ;;  %3771 = vst [vmem:[#allocation39_spill] sm:$0xff] %v2839_v15 }
 0x2fb   :  { %v2739_v33 = vpop.permute.xlu1 %764  ;;  %1032 = vrot.lane.b32.xlu0 %v2663_v22, %s2254_s1  ;;  %v2833_v22 = vrot.slane %v493_v41, %v2371_v11  ;;  %v2856_v41 = vrot.slane %v497_v51, %v2371_v11 }
 0x2fd   :  { %1036 = vrot.lane.b32.xlu1 %v2659_v21, %s2254_s1  ;;  %v2745_v62 = vpop.permute.xlu0 %768  ;;  %v499_v21 = vld [vmem:[%s3677_s5 + $0x10] sm:$0x3]  ;;  %3769 = vst [vmem:[#allocation37_spill] sm:$0xff] %v2833_v22  ;;  %3776 = vst [vmem:[#allocation43_spill] sm:$0xff] %v2856_v41  ;;  %v697_v20 = vmul.f32 %v2833_v22, %v2551_v36  ;;  %s2065_s1 = sld [smem:[#allocation2]] }
 0x2fe   :  { %v2862_v45 = vrot.slane %v499_v21, %v2371_v11  ;;  %v2865_v58 = vrot.slane %v499_v21, %v2375_v13  ;;  %v702_v11 = vmul.f32 %v2810_v12, %v2549_v35  ;;  %v689_v21 = vmul.f32 %v2813_v19, %v2547_v7 }
 0x2ff   :  { %v2747_v47 = vpop.permute.xlu1 %772  ;;  %v690_v13 = vmul.f32 %v2816_v17, %v2547_v7  ;;  %v698_v35 = vmul.f32 %v2836_v40, %v2551_v36  ;;  %v2901_v7 = vmul.f32 %v2839_v15, %v2557_v55  ;;  %v2914_v36 = vmul.f32 %v2842_v61, %v2557_v55 }
 0x300   :  { %v779_v37 = vsel %vm776_vm0, %v2739_v33, %v2747_v47  ;;  %v783_v52 = vsel %vm776_vm0, %v2747_v47, %v2739_v33  ;;  %v705_v15 = vmul.f32 %v2845_v46, %v2555_v38  ;;  %v2922_v17 = vmul.f32 %v2856_v41, %v2559_v56 }
 0x301   :  { %v2749_v48 = vpop.permute.xlu0 %805  ;;  %v2928_v33 = vmul.f32 %v2859_v28, %v2559_v56  ;;  %v746_v55 = vsel %vm743_vm1, %v2723_v25, %v2731_v31  ;;  %v750_v38 = vsel %vm743_vm1, %v2731_v31, %v2723_v25  ;;  %v789_v47 = vmul.f32 %v783_v52, %v693_v16 }
 0x302   :  { %v790_v61 = vmul.f32 %v779_v37, %v694_v10  ;;  %v744_v25 = vsel %vm743_vm1, %v2721_v23, %v2729_v27  ;;  %v748_v31 = vsel %vm743_vm1, %v2729_v27, %v2721_v23  ;;  %v777_v52 = vsel %vm776_vm0, %v2737_v32, %v2745_v62 }
 0x303   :  { %v2751_v49 = vpop.permute.xlu1 %801  ;;  %v757_v37 = vmul.f32 %v746_v55, %v690_v13  ;;  %v786_v22 = vmul.f32 %v777_v52, %v694_v10 }
 0x305   :  { %v2753_v0 = vpop.permute.xlu0 %813  ;;  %v798_v46 = vadd.f32 %v790_v61, %v757_v37 }
 0x306   :  { %v820_v56 = vsel %vm817_vm2, %v2749_v48, %v2753_v0  ;;  %v824_v28 = vsel %vm817_vm2, %v2753_v0, %v2749_v48  ;;  %v781_v48 = vsel %vm776_vm0, %v2745_v62, %v2737_v32  ;;  %v756_v0 = vmul.f32 %v750_v38, %v689_v21 }
 0x307   :  { %v2755_v1 = vpop.permute.xlu1 %809  ;;  %v830_v62 = vmul.f32 %v824_v28, %v697_v20  ;;  %v831_v55 = vmul.f32 %v820_v56, %v698_v35  ;;  %v785_v40 = vmul.f32 %v781_v48, %v693_v16 }
 0x308   :  { %v818_v44 = vsel %vm817_vm2, %v2751_v49, %v2755_v1  ;;  %v822_v32 = vsel %vm817_vm2, %v2755_v1, %v2751_v49  ;;  %v797_v38 = vadd.f32 %v789_v47, %v756_v0  ;;  %v752_v49 = vmul.f32 %v748_v31, %v689_v21 }
 0x309   :  { %v2757_v54 = vpop.permute.xlu0 %842  ;;  %v753_v1 = vmul.f32 %v744_v25, %v690_v13  ;;  %v826_v61 = vmul.f32 %v822_v32, %v697_v20  ;;  %v827_v16 = vmul.f32 %v818_v44, %v698_v35  ;;  %v839_v56 = vadd.f32 %v831_v55, %v798_v46 }
 0x30a   :  { %v838_v47 = vadd.f32 %v830_v62, %v797_v38  ;;  %v793_v52 = vadd.f32 %v785_v40, %v752_v49  ;;  %v887_v13 = vmul.f32 %v705_v15, %v2587_v26  ;;  %v884_v20 = vmul.f32 %v706_v60, %v2591_v29 }
 0x30b   :  { %v2759_v53 = vpop.permute.xlu1 %846  ;;  %v794_v48 = vadd.f32 %v786_v22, %v753_v1  ;;  %v888_v46 = vmul.f32 %v706_v60, %v2595_v30 }
 0x30c   :  { %v834_v44 = vadd.f32 %v826_v61, %v793_v52 }
 0x30d   :  { %v2761_v50 = vpop.permute.xlu0 %850  ;;  %v835_v21 = vadd.f32 %v827_v16, %v794_v48 }
 0x30e   :  { %v863_v28 = vsel %vm858_vm3, %v2761_v50, %v2757_v54 }
 0x30f   :  { %v2763_v3 = vpop.permute.xlu1 %854  ;;  %v867_v0 = vmul.f32 %v863_v28, %v2873_v57 }
 0x310   :  { %v865_v23 = vsel %vm858_vm3, %v2763_v3, %v2759_v53 }
 0x311   :  { %v2765_v2 = vpop.permute.xlu0 %899  ;;  %v875_v26 = vadd.f32 %v867_v0, %v834_v44 }
 0x313   :  { %v2767_v63 = vpop.permute.xlu1 %903 }
 0x315   :  { %v2769_v4 = vpop.permute.xlu0 %907 }
 0x316   :  { %v916_v29 = vsel %vm915_vm4, %v2765_v2, %v2769_v4  ;;  %v920_v30 = vsel %vm915_vm4, %v2769_v4, %v2765_v2 }
 0x317   :  { %v2771_v5 = vpop.permute.xlu1 %911 }
 0x319   :  { %v2773_v6 = vpop.permute.xlu0 %944 }
 0x31b   :  { %v2781_v8 = vpop.permute.xlu1 %940 }
 0x31d   :  { %v2795_v39 = vpop.permute.xlu0 %952 }
 0x31e   :  { %v963_v40 = vsel %vm956_vm5, %v2795_v39, %v2773_v6 }
 0x31f   :  { %v2827_v14 = vpop.permute.xlu1 %948 }
 0x320   :  { %v957_v2 = vsel %vm956_vm5, %v2781_v8, %v2827_v14  ;;  %v961_v4 = vsel %vm956_vm5, %v2827_v14, %v2781_v8  ;;  %v970_v14 = vmul.f32 %v963_v40, %v2928_v33 }
 0x321   :  { %v2853_v43 = vpop.permute.xlu0 %981 }
 0x323   :  { %v2876_v51 = vpop.permute.xlu1 %985 }
 0x325   :  { %v2897_v12 = vpop.permute.xlu0 %989 }
 0x326   :  { %v998_v8 = vsel %vm997_vm6, %v2853_v43, %v2897_v12 }
 0x327   :  { %v2924_v19 = vpop.permute.xlu1 %993 }
 0x328   :  { %v1004_v32 = vsel %vm997_vm6, %v2924_v19, %v2876_v51 }
 0x329   :  { %v2947_v41 = vpop.permute.xlu0 %731  ;;  %v1011_v49 = vmul.f32 %v1004_v32, %v2914_v36  ;;  %v3780_v32 = vld [vmem:[#allocation16_spill] sm:$0xff] }
 0x32a   :  { %3778 = vst [vmem:[#allocation45_spill] sm:$0xff] %v2947_v41  ;;  %v861_v41 = vsel %vm858_vm3, %v2759_v53, %v2763_v3  ;;  %v871_v53 = vmul.f32 %v865_v23, %v2873_v57  ;;  %v922_v57 = vsel %vm915_vm4, %v2771_v5, %v2767_v63 }
 0x32b   :  { %v2973_v27 = vpop.permute.xlu1 %727  ;;  %v872_v3 = vmul.f32 %v861_v41, %v702_v11  ;;  %v883_v41 = vmul.f32 %v705_v15, %v2585_v24  ;;  %v929_v25 = vmul.f32 %v922_v57, %v2890_v18 }
 0x32c   :  { %3779 = vst [vmem:[#allocation46_spill] sm:$0xff] %v2973_v27  ;;  %v859_v27 = vsel %vm858_vm3, %v2757_v54, %v2761_v50  ;;  %v879_v54 = vadd.f32 %v871_v53, %v838_v47  ;;  %v965_v53 = vmul.f32 %v957_v2, %v2922_v17  ;;  %v1006_v47 = vmul.f32 %v998_v8, %v2901_v7  ;;  %v3782_v8 = vld [vmem:[#allocation30_spill] sm:$0xff] }
 0x32d   :  { %v2983_v9 = vpop.permute.xlu0 %739  ;;  %v868_v37 = vmul.f32 %v859_v27, %v702_v11  ;;  %v880_v50 = vadd.f32 %v872_v3, %v839_v56  ;;  %v918_v11 = vsel %vm915_vm4, %v2767_v63, %v2771_v5  ;;  %v959_v5 = vsel %vm956_vm5, %v2773_v6, %v2795_v39 }
 0x32e   :  { %v895_v22 = vadd.f32 %v887_v13, %v879_v54  ;;  %v928_v35 = vmul.f32 %v918_v11, %v2886_v34  ;;  %v924_v27 = vmul.f32 %v916_v29, %v2886_v34  ;;  %v925_v6 = vmul.f32 %v920_v30, %v2890_v18 }
 0x32f   :  { %v2994_v10 = vpop.permute.xlu1 %735  ;;  %v876_v60 = vadd.f32 %v868_v37, %v835_v21  ;;  %v896_v63 = vadd.f32 %v888_v46, %v880_v50  ;;  %v1000_v39 = vsel %vm997_vm6, %v2876_v51, %v2924_v19  ;;  %v969_v62 = vmul.f32 %v959_v5, %v2922_v17 }
 0x330   :  { %v1002_v18 = vsel %vm997_vm6, %v2897_v12, %v2853_v43  ;;  %v891_v38 = vadd.f32 %v883_v41, %v875_v26  ;;  %v966_v19 = vmul.f32 %v961_v4, %v2928_v33  ;;  %v936_v51 = vadd.f32 %v928_v35, %v895_v22 }
 0x331   :  { %v2999_v23 = vpop.permute.xlu0 %766  ;;  %v892_v55 = vadd.f32 %v884_v20, %v876_v60  ;;  %v937_v3 = vadd.f32 %v929_v25, %v896_v63  ;;  %v1010_v28 = vmul.f32 %v1000_v39, %v2901_v7  ;;  %v1007_v12 = vmul.f32 %v1002_v18, %v2914_v36 }
 0x332   :  { %v932_v61 = vadd.f32 %v924_v27, %v891_v38  ;;  %v721_v43 = vmul.f32 %v2862_v45, %v2567_v59  ;;  %v722_v17 = vmul.f32 %v2865_v58, %v2567_v59  ;;  %v977_v33 = vadd.f32 %v969_v62, %v936_v51  ;;  %v3781_v62 = vld [vmem:[#allocation29_spill] sm:$0xff] }
 0x333   :  { %v3005_v24 = vpop.permute.xlu1 %762  ;;  %v933_v16 = vadd.f32 %v925_v6, %v892_v55  ;;  %v978_v56 = vadd.f32 %v970_v14, %v937_v3  ;;  %v695_v14 = vmul.f32 %v3781_v62, %v3780_v32  ;;  %v696_v18 = vmul.f32 %v3782_v8, %v3780_v32  ;;  %v3784_v55 = vld [vmem:[#allocation37_spill] sm:$0xff] }
 0x334   :  { %v973_v52 = vadd.f32 %v965_v53, %v932_v61  ;;  %v1018_v7 = vadd.f32 %v1010_v28, %v977_v33  ;;  %v3785_v53 = vld [vmem:[#allocation38_spill] sm:$0xff]  ;;  %v3786_v3 = vld [vmem:[#allocation17_spill] sm:$0xff] }
 0x335   :  { %v3025_v15 = vpop.permute.xlu0 %774  ;;  %v974_v48 = vadd.f32 %v966_v19, %v933_v16  ;;  %v1019_v54 = vadd.f32 %v1011_v49, %v978_v56  ;;  %v3787_v28 = vld [vmem:[#allocation33_spill] sm:$0xff]  ;;  %v3791_v33 = vld [vmem:[#allocation42_spill] sm:$0xff] }
 0x336   :  { %v1014_v20 = vadd.f32 %v1006_v47, %v973_v52  ;;  %v691_v49 = vmul.f32 %v3787_v28, %v3786_v3  ;;  %v3793_v52 = vld [vmem:[#allocation43_spill] sm:$0xff] }
 0x337   :  { %v3045_v31 = vpop.permute.xlu1 %770  ;;  %v1015_v44 = vadd.f32 %v1007_v12, %v974_v48  ;;  %v3789_v12 = vld [vmem:[#allocation19_spill] sm:$0xff] }
 0x338   :  { %v778_v16 = vsel %vm776_vm0, %v3005_v24, %v3045_v31  ;;  %v782_v47 = vsel %vm776_vm0, %v3045_v31, %v3005_v24  ;;  %v708_v56 = vmul.f32 %v3791_v33, %v3789_v12  ;;  %v3797_v24 = vld [vmem:[#allocation32_spill] sm:$0xff] }
 0x339   :  { %v1027_v34 = vpop.permute.xlu0 %1026 }
 0x33b   :  { %v1023_v1 = vpop.permute.xlu1 %1022 }
 0x33d   :  { %v1035_v41 = vpop.permute.xlu0 %1034 }
 0x33e   :  { %v1041_v0 = vsel %vm1038_vm7, %v1027_v34, %v1035_v41  ;;  %v1045_v37 = vsel %vm1038_vm7, %v1035_v41, %v1027_v34  ;;  %v3783_v34 = vld [vmem:[#allocation18_spill] sm:$0xff]  ;;  %v3792_v41 = vld [vmem:[#allocation21_spill] sm:$0xff] }
 0x33f   :  { %v1031_v36 = vpop.permute.xlu1 %1030  ;;  %v1051_v50 = vmul.f32 %v1041_v0, %v721_v43  ;;  %v1052_v13 = vmul.f32 %v1045_v37, %v722_v17  ;;  %v699_v38 = vmul.f32 %v3784_v55, %v3783_v34  ;;  %v700_v19 = vmul.f32 %v3785_v53, %v3783_v34  ;;  %v3794_v0 = vld [vmem:[#allocation44_spill] sm:$0xff] }
 0x340   :  { %v1039_v59 = vsel %vm1038_vm7, %v1023_v1, %v1031_v36  ;;  %v1043_v21 = vsel %vm1038_vm7, %v1031_v36, %v1023_v1  ;;  %v3788_v1 = vld [vmem:[#allocation34_spill] sm:$0xff]  ;;  %v3129_v48 = vmul.f32 %v3793_v52, %v3792_v41  ;;  %v3133_v37 = vmul.f32 %v3794_v0, %v3792_v41  ;;  %v3796_v36 = vld [vmem:[#allocation31_spill] sm:$0xff] }
 0x341   :  { %v1047_v46 = vmul.f32 %v1039_v59, %v721_v43  ;;  %v1048_v11 = vmul.f32 %v1043_v21, %v722_v17  ;;  %v3085_v57 = vadd.f32 %v1051_v50, %v1018_v7  ;;  %v3087_v26 = vadd.f32 %v1052_v13, %v1019_v54  ;;  %v804_v60 = vpop.permute.xlu0 %803  ;;  %v3790_v43 = vld [vmem:[#allocation41_spill] sm:$0xff]  ;;  %v3795_v54 = vld [vmem:[#allocation20_spill] sm:$0xff]  ;;  %v3798_v13 = vld [vmem:[#allocation46_spill] sm:$0xff] }
 0x342   :  { %v692_v61 = vmul.f32 %v3788_v1, %v3786_v3  ;;  %v707_v17 = vmul.f32 %v3790_v43, %v3789_v12  ;;  %v703_v50 = vmul.f32 %v3796_v36, %v3795_v54  ;;  %v704_v31 = vmul.f32 %v3797_v24, %v3795_v54  ;;  %v3801_v36 = vld [vmem:[#allocation35_spill] sm:$0xff] }
 0x343   :  { %v3089_v29 = vadd.f32 %v1047_v46, %v1014_v20  ;;  %v3091_v30 = vadd.f32 %v1048_v11, %v1015_v44  ;;  %v808_v22 = vpop.permute.xlu1 %807  ;;  %v1073_v63 = vadd.f32 %v3087_v26, %v3085_v57  ;;  %v745_v20 = vsel %vm743_vm1, %v3798_v13, %v2994_v10 }
 0x344   :  { %v749_v44 = vsel %vm743_vm1, %v2994_v10, %v3798_v13  ;;  %v787_v59 = vmul.f32 %v782_v47, %v695_v14  ;;  %v788_v21 = vmul.f32 %v778_v16, %v696_v18  ;;  %v780_v10 = vsel %vm776_vm0, %v2999_v23, %v3025_v15 }
 0x345   :  { %1074 = vadd.xlane.f32.xlu1 %v1073_v63  ;;  %v812_v5 = vpop.permute.xlu0 %811  ;;  %v1067_v40 = vadd.f32 %v3091_v30, %v3089_v29  ;;  %v755_v8 = vmul.f32 %v745_v20, %v692_v61 }
 0x346   :  { %v819_v46 = vsel %vm817_vm2, %v804_v60, %v812_v5  ;;  %v823_v11 = vsel %vm817_vm2, %v812_v5, %v804_v60  ;;  %v784_v60 = vsel %vm776_vm0, %v3025_v15, %v2999_v23  ;;  %v754_v5 = vmul.f32 %v749_v44, %v691_v49 }
 0x347   :  { %v816_v35 = vpop.permute.xlu1 %815  ;;  %1068 = vadd.xlane.f32.xlu0 %v1067_v40  ;;  %v3799_v40 = vld [vmem:[#allocation45_spill] sm:$0xff]  ;;  %v828_v28 = vmul.f32 %v823_v11, %v699_v38  ;;  %v829_v1 = vmul.f32 %v819_v46, %v700_v19  ;;  %v796_v47 = vadd.f32 %v788_v21, %v755_v8  ;;  %v791_v23 = vmul.f32 %v784_v60, %v695_v14  ;;  %v3802_v14 = vld [vmem:[#allocation36_spill] sm:$0xff] }
 0x348   :  { %v747_v32 = vsel %vm743_vm1, %v3799_v40, %v2983_v9  ;;  %v751_v62 = vsel %vm743_vm1, %v2983_v9, %v3799_v40  ;;  %v821_v9 = vsel %vm817_vm2, %v808_v22, %v816_v35  ;;  %v825_v3 = vsel %vm817_vm2, %v816_v35, %v808_v22  ;;  %v3800_v35 = vld [vmem:[#allocation22_spill] sm:$0xff]  ;;  %v3803_v40 = vld [vmem:[#allocation24_spill] sm:$0xff] }
 0x349   :  { %v849_v25 = vpop.permute.xlu0 %848  ;;  %v795_v16 = vadd.f32 %v787_v59, %v754_v5  ;;  %v792_v15 = vmul.f32 %v780_v10, %v696_v18  ;;  %v759_v52 = vmul.f32 %v747_v32, %v692_v61  ;;  %v832_v0 = vmul.f32 %v825_v3, %v699_v38  ;;  %v3805_v38 = vld [vmem:[#allocation40_spill] sm:$0xff]  ;;  %v3806_v10 = vld [vmem:[#allocation26_spill] sm:$0xff] }
 0x34a   :  { %v833_v54 = vmul.f32 %v821_v9, %v700_v19  ;;  %v711_v24 = vmul.f32 %v3801_v36, %v3800_v35  ;;  %v712_v18 = vmul.f32 %v3802_v14, %v3800_v35  ;;  %v837_v20 = vadd.f32 %v829_v1, %v796_v47  ;;  %v3807_v5 = vld [vmem:[#allocation28_spill] sm:$0xff] }
 0x34b   :  { %v845_v2 = vpop.permute.xlu1 %844  ;;  %v836_v13 = vadd.f32 %v828_v28, %v795_v16  ;;  %v800_v59 = vadd.f32 %v792_v15, %v759_v52  ;;  %v720_v19 = vmul.f32 %v3805_v38, %v3803_v40  ;;  %v885_v60 = vmul.f32 %v707_v17, %v3806_v10 }
 0x34c   :  { %v886_v8 = vmul.f32 %v708_v56, %v3807_v5 }
 0x34d   :  { %v857_v4 = vpop.permute.xlu0 %856 }
 0x34e   :  { %v862_v41 = vsel %vm858_vm3, %v849_v25, %v857_v4 }
 0x34f   :  { %v853_v27 = vpop.permute.xlu1 %852  ;;  %v874_v46 = vmul.f32 %v862_v41, %v704_v31 }
 0x350   :  { %v860_v34 = vsel %vm858_vm3, %v845_v2, %v853_v27  ;;  %v864_v55 = vsel %vm858_vm3, %v853_v27, %v845_v2  ;;  %v866_v2 = vsel %vm858_vm3, %v857_v4, %v849_v25  ;;  %v758_v27 = vmul.f32 %v751_v62, %v691_v49  ;;  %v3804_v25 = vld [vmem:[#allocation39_spill] sm:$0xff] }
 0x351   :  { %v3097_v6 = vpop.permute.xlu0 %901  ;;  %v869_v43 = vmul.f32 %v864_v55, %v703_v50  ;;  %v870_v33 = vmul.f32 %v860_v34, %v704_v31  ;;  %v873_v21 = vmul.f32 %v866_v2, %v703_v50  ;;  %v719_v4 = vmul.f32 %v3804_v25, %v3803_v40  ;;  %v3808_v55 = vld [vmem:[#allocation25_spill] sm:$0xff]  ;;  %v3809_v50 = vld [vmem:[#allocation27_spill] sm:$0xff] }
 0x352   :  { %v799_v44 = vadd.f32 %v791_v23, %v758_v27  ;;  %v841_v62 = vadd.f32 %v833_v54, %v800_v59  ;;  %v889_v9 = vmul.f32 %v707_v17, %v3808_v55  ;;  %v890_v31 = vmul.f32 %v708_v56, %v3809_v50  ;;  %v3810_v25 = vld [vmem:[#allocation23_spill] sm:$0xff] }
 0x353   :  { %v3099_v39 = vpop.permute.xlu1 %905  ;;  %v877_v49 = vadd.f32 %v869_v43, %v836_v13  ;;  %v878_v61 = vadd.f32 %v870_v33, %v837_v20  ;;  %v723_v38 = vmul.f32 %v2862_v45, %v3810_v25 }
 0x354   :  { %v840_v32 = vadd.f32 %v832_v0, %v799_v44  ;;  %v882_v16 = vadd.f32 %v874_v46, %v841_v62 }
 0x355   :  { %v3109_v51 = vpop.permute.xlu0 %909  ;;  %v893_v23 = vadd.f32 %v885_v60, %v877_v49  ;;  %v894_v15 = vadd.f32 %v886_v8, %v878_v61  ;;  %v724_v49 = vmul.f32 %v2865_v58, %v3810_v25  ;;  %v1063_v25 = vld [vmem:[%s3678_s6] sm:$0xff] }
 0x356   :  { %v917_v3 = vsel %vm915_vm4, %v3097_v6, %v3109_v51  ;;  %v921_v28 = vsel %vm915_vm4, %v3109_v51, %v3097_v6  ;;  %v881_v1 = vadd.f32 %v873_v21, %v840_v32  ;;  %v898_v36 = vadd.f32 %v890_v31, %v882_v16 }
 0x357   :  { %v3135_v7 = vpop.permute.xlu1 %913  ;;  %v926_v51 = vmul.f32 %v917_v3, %v711_v24  ;;  %v927_v33 = vmul.f32 %v921_v28, %v712_v18 }
 0x358   :  { %v919_v47 = vsel %vm915_vm4, %v3099_v39, %v3135_v7  ;;  %v923_v17 = vsel %vm915_vm4, %v3135_v7, %v3099_v39 }
 0x359   :  { %v943_v63 = vpop.permute.xlu0 %942  ;;  %v930_v52 = vmul.f32 %v919_v47, %v711_v24  ;;  %v931_v39 = vmul.f32 %v923_v17, %v712_v18  ;;  %v934_v18 = vadd.f32 %v926_v51, %v893_v23  ;;  %v935_v13 = vadd.f32 %v927_v33, %v894_v15 }
 0x35b   :  { %v947_v53 = vpop.permute.xlu1 %946  ;;  %v939_v46 = vadd.f32 %v931_v39, %v898_v36 }
 0x35d   :  { %v951_v12 = vpop.permute.xlu0 %950 }
 0x35e   :  { %v958_v43 = vsel %vm956_vm5, %v943_v63, %v951_v12  ;;  %v962_v6 = vsel %vm956_vm5, %v951_v12, %v943_v63 }
 0x35f   :  { %v955_v22 = vpop.permute.xlu1 %954  ;;  %v967_v54 = vmul.f32 %v958_v43, %v3129_v48  ;;  %v968_v63 = vmul.f32 %v962_v6, %v3133_v37 }
 0x360   :  { %v960_v41 = vsel %vm956_vm5, %v947_v53, %v955_v22  ;;  %v964_v2 = vsel %vm956_vm5, %v955_v22, %v947_v53  ;;  %v897_v22 = vadd.f32 %v889_v9, %v881_v1 }
 0x361   :  { %v984_v11 = vpop.permute.xlu0 %983  ;;  %v971_v24 = vmul.f32 %v960_v41, %v3129_v48  ;;  %v972_v14 = vmul.f32 %v964_v2, %v3133_v37  ;;  %v975_v61 = vadd.f32 %v967_v54, %v934_v18  ;;  %v976_v32 = vadd.f32 %v968_v63, %v935_v13 }
 0x362   :  { %v938_v21 = vadd.f32 %v930_v52, %v897_v22 }
 0x363   :  { %v988_v34 = vpop.permute.xlu1 %987  ;;  %v980_v37 = vadd.f32 %v972_v14, %v939_v46 }
 0x364   :  { %v979_v62 = vadd.f32 %v971_v24, %v938_v21 }
 0x365   :  { %v992_v56 = vpop.permute.xlu0 %991 }
 0x366   :  { %v999_v7 = vsel %vm997_vm6, %v984_v11, %v992_v56  ;;  %v1003_v0 = vsel %vm997_vm6, %v992_v56, %v984_v11 }
 0x367   :  { %v996_v27 = vpop.permute.xlu1 %995  ;;  %v1008_v20 = vmul.f32 %v999_v7, %v719_v4  ;;  %v1009_v44 = vmul.f32 %v1003_v0, %v720_v19 }
 0x368   :  { %v1001_v12 = vsel %vm997_vm6, %v988_v34, %v996_v27  ;;  %v1005_v35 = vsel %vm997_vm6, %v996_v27, %v988_v34 }
 0x369   :  { %v1025_v53 = vpop.permute.xlu0 %1024  ;;  %v1012_v11 = vmul.f32 %v1001_v12, %v719_v4  ;;  %v1013_v40 = vmul.f32 %v1005_v35, %v720_v19  ;;  %v1016_v5 = vadd.f32 %v1008_v20, %v975_v61  ;;  %v1017_v4 = vadd.f32 %v1009_v44, %v976_v32  ;;  %v1065_v61 = vld [vmem:[%s3679_s7] sm:$0xff] }
 0x36b   :  { %v1029_v59 = vpop.permute.xlu1 %1028  ;;  %v1020_v45 = vadd.f32 %v1012_v11, %v979_v62  ;;  %v1021_v55 = vadd.f32 %v1013_v40, %v980_v37 }
 0x36d   :  { %v1033_v48 = vpop.permute.xlu0 %1032 }
 0x36e   :  { %v1040_v10 = vsel %vm1038_vm7, %v1025_v53, %v1033_v48  ;;  %v1044_v60 = vsel %vm1038_vm7, %v1033_v48, %v1025_v53 }
 0x36f   :  { %v1037_v19 = vpop.permute.xlu1 %1036  ;;  %v1049_v8 = vmul.f32 %v1040_v10, %v723_v38  ;;  %v1050_v34 = vmul.f32 %v1044_v60, %v724_v49 }
 0x370   :  { %v1042_v58 = vsel %vm1038_vm7, %v1029_v59, %v1037_v19  ;;  %v1046_v9 = vsel %vm1038_vm7, %v1037_v19, %v1029_v59 }
 0x371   :  { %v1053_v50 = vmul.f32 %v1042_v58, %v723_v38  ;;  %v1054_v31 = vmul.f32 %v1046_v9, %v724_v49  ;;  %v3241_v3 = vadd.f32 %v1049_v8, %v1016_v5  ;;  %v3243_v28 = vadd.f32 %v1050_v34, %v1017_v4  ;;  %v1064_v4 = vld [vmem:[%s3678_s6 + $0x8] sm:$0xff] }
 0x372   :  { %v1066_v34 = vld [vmem:[%s3679_s7 + $0x8] sm:$0xff] }
 0x373   :  { %v3245_v1 = vadd.f32 %v1053_v50, %v1020_v45  ;;  %v3247_v16 = vadd.f32 %v1054_v31, %v1021_v55  ;;  %v1070_v47 = vadd.f32 %v3243_v28, %v3241_v3 }
 0x375   :  { %1071 = vadd.xlane.f32.xlu0 %v1070_v47  ;;  %v1076_v17 = vadd.f32 %v3247_v16, %v3245_v1 }
 0x379   :  { %1077 = vadd.xlane.f32.xlu0 %v1076_v17 }
 0x3d2   :  { %v1075_v42 = vpop.xlane.xlu1 %1074 }
 0x3d4   :  { %v1069_v56 = vpop.xlane.xlu0 %1068 }
 0x3d5   :  { %v1079_v23 = vadd.f32 %v1075_v42, %v1069_v56 }
 0x3d7   :  { %v1081_v15 = vmul.f32 0.001953125, %v1079_v23 }
 0x3d9   :  { %v1087_v43 = vsub.f32 %v3085_v57, %v1081_v15  ;;  %v1088_v6 = vsub.f32 %v3087_v26, %v1081_v15  ;;  %v1083_v51 = vsub.f32 %v3089_v29, %v1081_v15  ;;  %v1084_v33 = vsub.f32 %v3091_v30, %v1081_v15 }
 0x3db   :  { %v1095_v41 = vmul.f32 %v1087_v43, %v1087_v43  ;;  %v1096_v2 = vmul.f32 %v1088_v6, %v1088_v6  ;;  %v1091_v27 = vmul.f32 %v1083_v51, %v1083_v51  ;;  %v1092_v52 = vmul.f32 %v1084_v33, %v1084_v33 }
 0x3dd   :  { %v1105_v39 = vadd.f32 %v1096_v2, %v1095_v41  ;;  %v1099_v7 = vadd.f32 %v1092_v52, %v1091_v27 }
 0x3df   :  { %1106 = vadd.xlane.f32.xlu0 %v1105_v39  ;;  %1100 = vadd.xlane.f32.xlu1 %v1099_v7 }
 0x402   :  { %v1072_v0 = vpop.xlane.xlu0 %1071 }
 0x406   :  { %v1078_v54 = vpop.xlane.xlu0 %1077 }
 0x407   :  { %v1080_v63 = vadd.f32 %v1078_v54, %v1072_v0 }
 0x409   :  { %v1082_v12 = vmul.f32 0.001953125, %v1080_v63 }
 0x40b   :  { %v1089_v35 = vsub.f32 %v3245_v1, %v1082_v12  ;;  %v1090_v53 = vsub.f32 %v3247_v16, %v1082_v12  ;;  %v1085_v22 = vsub.f32 %v3241_v3, %v1082_v12  ;;  %v1086_v36 = vsub.f32 %v3243_v28, %v1082_v12 }
 0x40d   :  { %v1097_v24 = vmul.f32 %v1089_v35, %v1089_v35  ;;  %v1098_v14 = vmul.f32 %v1090_v53, %v1090_v53  ;;  %v1093_v18 = vmul.f32 %v1085_v22, %v1085_v22  ;;  %v1094_v13 = vmul.f32 %v1086_v36, %v1086_v36  ;;  %v1178_v53 = vld [vmem:[%s3680_s8] sm:$0xf]  ;;  %v1179_v22 = vld [vmem:[%s3680_s8 + $0x4] sm:$0xf] }
 0x40f   :  { %v1108_v20 = vadd.f32 %v1098_v14, %v1097_v24  ;;  %v1102_v44 = vadd.f32 %v1094_v13, %v1093_v18 }
 0x411   :  { %1109 = vadd.xlane.f32.xlu0 %v1108_v20  ;;  %1103 = vadd.xlane.f32.xlu1 %v1102_v44  ;;  %v3813_v20 = vld [vmem:[#allocation12_spill] sm:$0xff] }
 0x46c   :  { %v1101_v59 = vpop.xlane.xlu1 %1100  ;;  %v1107_v21 = vpop.xlane.xlu0 %1106 }
 0x46d   :  { %v1111_v46 = vadd.f32 %v1107_v21, %v1101_v59  ;;  %v1180_v59 = vld [vmem:[%s3680_s8 + $0x8] sm:$0xf] }
 0x46f   :  { %v1113_v11 = vmul.f32 0.001953125, %v1111_v46 }
 0x471   :  { %v1115_v40 = vadd.f32 1e-05, %v1113_v11 }
 0x473   :  { %2175 = vrsqrt.f32 %v1115_v40 }
 0x47d   :  { %v2176_v38 = vpop.eup %2175 }
 0x47e   :  { %v1119_v49 = vmul.f32 %v2176_v38, %v1063_v25  ;;  %v3814_v25 = vld [vmem:[#allocation14_spill] sm:$0xff] }
 0x480   :  { %1127 = vperm.xlu1 %2138, %v1119_v49   ;;  %v1121_v32 = vmul.f32 %v1119_v49, %v1081_v15  ;;  %v1181_v49 = vld [vmem:[%s3680_s8 + $0xc] sm:$0xf] }
 0x482   :  { %v1123_v48 = vsub.f32 %v1065_v61, %v1121_v32 }
 0x484   :  { %1145 = vperm.xlu0 %2137, %v1123_v48  }
 0x49e   :  { %v1104_v62 = vpop.xlane.xlu1 %1103  ;;  %v1110_v37 = vpop.xlane.xlu0 %1109 }
 0x49f   :  { %v1112_v10 = vadd.f32 %v1110_v37, %v1104_v62  ;;  %v3815_v37 = vld [vmem:[#allocation9_spill] sm:$0xff] }
 0x4a1   :  { %v1114_v60 = vmul.f32 0.001953125, %v1112_v10 }
 0x4a3   :  { %v1116_v5 = vadd.f32 1e-05, %v1114_v60  ;;  %v1182_v60 = vld [vmem:[%s3680_s8 + $0x10] sm:$0xf] }
 0x4a5   :  { %2177 = vrsqrt.f32 %v1116_v5 }
 0x4af   :  { %v2178_v19 = vpop.eup %2177 }
 0x4b0   :  { %v1120_v8 = vmul.f32 %v2178_v19, %v1064_v4 }
 0x4b2   :  { %1132 = vperm.xlu1 %2138, %v1120_v8   ;;  %v1122_v45 = vmul.f32 %v1120_v8, %v1082_v12  ;;  %v3812_v12 = vld [vmem:[#allocation10_spill] sm:$0xff] }
 0x4b4   :  { %v1124_v55 = vsub.f32 %v1066_v34, %v1122_v45  ;;  %v3816_v45 = vld [vmem:[#allocation11_spill] sm:$0xff] }
 0x4b6   :  { %1150 = vperm.xlu1 %2138, %v1124_v55  }
 0x4ff   :  { %v1128_v58 = vpop.permute.xlu1 %1127 }
 0x500   :  { %v1135_v9 = vmul.f32 %v1128_v58, %v3089_v29  ;;  %v1136_v50 = vmul.f32 %v1128_v58, %v3091_v30  ;;  %v1139_v31 = vmul.f32 %v1128_v58, %v3085_v57  ;;  %v1140_v47 = vmul.f32 %v1128_v58, %v3087_v26  ;;  %v1527_v57 = vld [vmem:[%s3684_s12] sm:$0xf]  ;;  %v1528_v26 = vld [vmem:[%s3684_s12 + $0x4] sm:$0xf]  ;;  %v1183_v58 = vld [vmem:[%s3680_s8 + $0x14] sm:$0xf] }
 0x503   :  { %v1146_v17 = vpop.permute.xlu0 %1145 }
 0x504   :  { %v3277_v42 = vadd.f32 %v1146_v17, %v1135_v9  ;;  %v3279_v56 = vadd.f32 %v1146_v17, %v1136_v50  ;;  %v3281_v23 = vadd.f32 %v1146_v17, %v1139_v31  ;;  %v3283_v15 = vadd.f32 %v1146_v17, %v1140_v47 }
 0x506   :  { %v1167_v43 = vadd.f32 %v3283_v15, %v3281_v23  ;;  %v1161_v29 = vadd.f32 %v3279_v56, %v3277_v42 }
 0x508   :  { %1168 = vadd.xlane.f32.xlu1 %v1167_v43  ;;  %1162 = vadd.xlane.f32.xlu0 %v1161_v29  ;;  %v3817_v43 = vld [vmem:[#allocation13_spill] sm:$0xff] }
 0x519   :  { %1561 = vperm.xlu1 %2138, %v1527_v57   ;;  %v1184_v57 = vld [vmem:[%s3680_s8 + $0x18] sm:$0xf] }
 0x51d   :  { %1586 = vperm.xlu1 %2138, %v1528_v26  }
 0x531   :  { %v1133_v30 = vpop.permute.xlu1 %1132 }
 0x532   :  { %v1137_v6 = vmul.f32 %v1133_v30, %v3241_v3  ;;  %v1138_v51 = vmul.f32 %v1133_v30, %v3243_v28  ;;  %v1141_v41 = vmul.f32 %v1133_v30, %v3245_v1  ;;  %v1142_v2 = vmul.f32 %v1133_v30, %v3247_v16  ;;  %v3811_v16 = vld [vmem:[#allocation8_spill] sm:$0xff] }
 0x535   :  { %v1151_v33 = vpop.permute.xlu1 %1150 }
 0x536   :  { %v3299_v27 = vadd.f32 %v1151_v33, %v1137_v6  ;;  %v3301_v52 = vadd.f32 %v1151_v33, %v1138_v51  ;;  %v3303_v39 = vadd.f32 %v1151_v33, %v1141_v41  ;;  %v3305_v7 = vadd.f32 %v1151_v33, %v1142_v2  ;;  %v3818_v41 = vld [vmem:[#allocation15_spill] sm:$0xff] }
 0x538   :  { %v1164_v0 = vadd.f32 %v3301_v52, %v3299_v27  ;;  %v1170_v3 = vadd.f32 %v3305_v7, %v3303_v39 }
 0x53a   :  { %1165 = vadd.xlane.f32.xlu0 %v1164_v0  ;;  %v1185_v0 = vld [vmem:[%s3680_s8 + $0x1c] sm:$0xf] }
 0x53e   :  { %1171 = vadd.xlane.f32.xlu0 %v1170_v3 }
 0x595   :  { %v1163_v28 = vpop.xlane.xlu0 %1162  ;;  %v1169_v54 = vpop.xlane.xlu1 %1168 }
 0x596   :  { %v1174_v1 = vmul.f32 0.00390625, %v1163_v28  ;;  %v3319_v36 = vmul.f32 0.00390625, %v1169_v54 }
 0x598   :  { %v1197_v63 = vrot.slane %v1174_v1, %v3811_v16  ;;  %v1207_v35 = vrot.slane %v1174_v1, %v3812_v12  ;;  %v1201_v18 = vrot.slane %v3319_v36, %v3811_v16  ;;  %v1211_v13 = vrot.slane %v3319_v36, %v3812_v12 }
 0x599   :  { %v1219_v44 = vrot.slane %v1174_v1, %v3813_v20  ;;  %v1231_v38 = vrot.slane %v1174_v1, %v3814_v25  ;;  %v1223_v61 = vrot.slane %v3319_v36, %v3813_v20  ;;  %v1243_v10 = vrot.slane %v1174_v1, %v3815_v37 }
 0x59a   :  { %v1202_v24 = vmul.f32 %v1197_v63, %v1178_v53  ;;  %v1212_v14 = vmul.f32 %v1207_v35, %v1179_v22  ;;  %v1203_v46 = vmul.f32 %v1201_v18, %v1178_v53  ;;  %v1213_v11 = vmul.f32 %v1211_v13, %v1179_v22  ;;  %v1186_v22 = vld [vmem:[%s3680_s8 + $0x20] sm:$0xf] }
 0x59b   :  { %v1224_v40 = vmul.f32 %v1219_v44, %v1180_v59  ;;  %v1236_v62 = vmul.f32 %v1231_v38, %v1181_v49  ;;  %v1225_v5 = vmul.f32 %v1223_v61, %v1180_v59  ;;  %v1235_v4 = vrot.slane %v3319_v36, %v3814_v25  ;;  %v1187_v44 = vld [vmem:[%s3680_s8 + $0x24] sm:$0xf]  ;;  %v1188_v38 = vld [vmem:[%s3680_s8 + $0x28] sm:$0xf] }
 0x59c   :  { %v1214_v21 = vadd.f32 %v1212_v14, %v1202_v24  ;;  %v1215_v48 = vadd.f32 %v1213_v11, %v1203_v46  ;;  %v1248_v34 = vmul.f32 %v1243_v10, %v1182_v60  ;;  %v1255_v55 = vrot.slane %v1174_v1, %v3816_v45 }
 0x59d   :  { %v1237_v9 = vmul.f32 %v1235_v4, %v1181_v49  ;;  %v1247_v50 = vrot.slane %v3319_v36, %v3815_v37  ;;  %v1267_v29 = vrot.slane %v1174_v1, %v3817_v43  ;;  %v1259_v30 = vrot.slane %v3319_v36, %v3816_v45 }
 0x59e   :  { %v1226_v32 = vadd.f32 %v1224_v40, %v1214_v21  ;;  %v1227_v8 = vadd.f32 %v1225_v5, %v1215_v48  ;;  %v1260_v17 = vmul.f32 %v1255_v55, %v1183_v58  ;;  %v1279_v2 = vrot.slane %v1174_v1, %v3818_v41 }
 0x59f   :  { %v1249_v26 = vmul.f32 %v1247_v50, %v1182_v60  ;;  %v1272_v33 = vmul.f32 %v1267_v29, %v1184_v57  ;;  %v1261_v3 = vmul.f32 %v1259_v30, %v1183_v58  ;;  %v1271_v28 = vrot.slane %v3319_v36, %v3817_v43  ;;  %v1190_v60 = vld [vmem:[%s3680_s8 + $0x30] sm:$0xf]  ;;  %v1191_v58 = vld [vmem:[%s3680_s8 + $0x34] sm:$0xf] }
 0x5a0   :  { %v1238_v19 = vadd.f32 %v1236_v62, %v1226_v32  ;;  %v1239_v47 = vadd.f32 %v1237_v9, %v1227_v8  ;;  %v1284_v24 = vmul.f32 %v1279_v2, %v1185_v0  ;;  %v1283_v13 = vrot.slane %v3319_v36, %v3818_v41  ;;  %v1189_v62 = vld [vmem:[%s3680_s8 + $0x2c] sm:$0xf] }
 0x5a1   :  { %v1273_v18 = vmul.f32 %v1271_v28, %v1184_v57  ;;  %v1192_v57 = vld [vmem:[%s3680_s8 + $0x38] sm:$0xf] }
 0x5a2   :  { %v1250_v31 = vadd.f32 %v1248_v34, %v1238_v19  ;;  %v1251_v51 = vadd.f32 %v1249_v26, %v1239_v47  ;;  %v1285_v36 = vmul.f32 %v1283_v13, %v1185_v0  ;;  %v1193_v0 = vld [vmem:[%s3680_s8 + $0x3c] sm:$0xf]  ;;  %s2123_s8 = sld [smem:[#allocation2 + $0x1]] }
 0x5a4   :  { %v1262_v6 = vadd.f32 %v1260_v17, %v1250_v31  ;;  %v1263_v53 = vadd.f32 %v1261_v3, %v1251_v51 }
 0x5a6   :  { %v1274_v63 = vadd.f32 %v1272_v33, %v1262_v6  ;;  %v1275_v40 = vadd.f32 %v1273_v18, %v1263_v53 }
 0x5a8   :  { %v1286_v21 = vadd.f32 %v1284_v24, %v1274_v63  ;;  %v1287_v34 = vadd.f32 %v1285_v36, %v1275_v40 }
 0x5c7   :  { %v1166_v54 = vpop.xlane.xlu0 %1165 }
 0x5c8   :  { %v1175_v35 = vmul.f32 0.00390625, %v1166_v54 }
 0x5ca   :  { %v1291_v14 = vrot.slane %v1175_v35, %v3811_v16  ;;  %v1303_v1 = vrot.slane %v1175_v35, %v3812_v12  ;;  %v1315_v11 = vrot.slane %v1175_v35, %v3813_v20  ;;  %v1327_v32 = vrot.slane %v1175_v35, %v3814_v25 }
 0x5cb   :  { %v1172_v59 = vpop.xlane.xlu0 %1171  ;;  %v1339_v10 = vrot.slane %v1175_v35, %v3815_v37  ;;  %v1351_v55 = vrot.slane %v1175_v35, %v3816_v45  ;;  %v1363_v29 = vrot.slane %v1175_v35, %v3817_v43  ;;  %v1375_v2 = vrot.slane %v1175_v35, %v3818_v41 }
 0x5cc   :  { %v1296_v46 = vmul.f32 %v1291_v14, %v1186_v22  ;;  %v1308_v61 = vmul.f32 %v1303_v1, %v1187_v44  ;;  %v1177_v48 = vmul.f32 0.00390625, %v1172_v59  ;;  %v1320_v4 = vmul.f32 %v1315_v11, %v1188_v38 }
 0x5cd   :  { %v1332_v50 = vmul.f32 %v1327_v32, %v1189_v62  ;;  %v1344_v17 = vmul.f32 %v1339_v10, %v1190_v60  ;;  %v1356_v33 = vmul.f32 %v1351_v55, %v1191_v58  ;;  %v1368_v53 = vmul.f32 %v1363_v29, %v1192_v57  ;;  %v1405_v29 = vld [vmem:[%s3682_s10 + $0x20] sm:$0xff] }
 0x5ce   :  { %v1298_v49 = vadd.f32 %v1296_v46, %v1286_v21  ;;  %v1295_v19 = vrot.slane %v1177_v48, %v3811_v16  ;;  %v1307_v8 = vrot.slane %v1177_v48, %v3812_v12  ;;  %v1319_v47 = vrot.slane %v1177_v48, %v3813_v20  ;;  %v1384_v21 = vld [vmem:[%s3681_s9] sm:$0xf] }
 0x5cf   :  { %v1331_v51 = vrot.slane %v1177_v48, %v3814_v25  ;;  %v1343_v63 = vrot.slane %v1177_v48, %v3815_v37  ;;  %v1355_v1 = vrot.slane %v1177_v48, %v3816_v45  ;;  %v1380_v18 = vmul.f32 %v1375_v2, %v1193_v0  ;;  %v1407_v2 = vld [vmem:[%s3682_s10 + $0x30] sm:$0xff] }
 0x5d0   :  { %v1310_v5 = vadd.f32 %v1308_v61, %v1298_v49  ;;  %v1297_v31 = vmul.f32 %v1295_v19, %v1186_v22  ;;  %v1309_v6 = vmul.f32 %v1307_v8, %v1187_v44  ;;  %v1321_v54 = vmul.f32 %v1319_v47, %v1188_v38 }
 0x5d1   :  { %v1333_v14 = vmul.f32 %v1331_v51, %v1189_v62  ;;  %v1345_v59 = vmul.f32 %v1343_v63, %v1190_v60  ;;  %v1367_v35 = vrot.slane %v1177_v48, %v3817_v43  ;;  %v1357_v40 = vmul.f32 %v1355_v1, %v1191_v58 }
 0x5d2   :  { %v1322_v9 = vadd.f32 %v1320_v4, %v1310_v5  ;;  %v1299_v30 = vadd.f32 %v1297_v31, %v1287_v34  ;;  %v1379_v38 = vrot.slane %v1177_v48, %v3818_v41  ;;  %v1401_v48 = vld [vmem:[%s3682_s10] sm:$0xff] }
 0x5d3   :  { %v1369_v32 = vmul.f32 %v1367_v35, %v1192_v57 }
 0x5d4   :  { %v1334_v26 = vadd.f32 %v1332_v50, %v1322_v9  ;;  %v1311_v28 = vadd.f32 %v1309_v6, %v1299_v30  ;;  %v1381_v10 = vmul.f32 %v1379_v38, %v1193_v0  ;;  %v1403_v50 = vld [vmem:[%s3682_s10 + $0x10] sm:$0xff]  ;;  %v1402_v6 = vld [vmem:[%s3682_s10 + $0x8] sm:$0xff] }
 0x5d6   :  { %v1346_v3 = vadd.f32 %v1344_v17, %v1334_v26  ;;  %v1323_v24 = vadd.f32 %v1321_v54, %v1311_v28 }
 0x5d8   :  { %v1358_v22 = vadd.f32 %v1356_v33, %v1346_v3  ;;  %v1335_v44 = vadd.f32 %v1333_v14, %v1323_v24  ;;  %v1404_v33 = vld [vmem:[%s3682_s10 + $0x18] sm:$0xff] }
 0x5da   :  { %v1370_v13 = vadd.f32 %v1368_v53, %v1358_v22  ;;  %v1347_v11 = vadd.f32 %v1345_v59, %v1335_v44 }
 0x5dc   :  { %v1382_v46 = vadd.f32 %v1380_v18, %v1370_v13  ;;  %v1359_v61 = vadd.f32 %v1357_v40, %v1347_v11  ;;  %v1469_v11 = vld [vmem:[%s3683_s11] sm:$0xff] }
 0x5de   :  { %v1385_v49 = vadd.f32 %v1384_v21, %v1382_v46  ;;  %v1371_v62 = vadd.f32 %v1369_v32, %v1359_v61  ;;  %v1408_v32 = vld [vmem:[%s3682_s10 + $0x38] sm:$0xff] }
 0x5e0   :  { %v2117_v36 = vmul.f32 -1.442695, %v1385_v49  ;;  %v1383_v5 = vadd.f32 %v1381_v10, %v1371_v62 }
 0x5e2   :  { %2179 = vpow2.f32 %v2117_v36  ;;  %v1386_v60 = vadd.f32 %v1384_v21, %v1383_v5  ;;  %v1406_v21 = vld [vmem:[%s3682_s10 + $0x28] sm:$0xff] }
 0x5e4   :  { %v2118_v4 = vmul.f32 -1.442695, %v1386_v60 }
 0x5e6   :  { %2181 = vpow2.f32 %v2118_v4 }
 0x5ec   :  { %v2180_v19 = vpop.eup %2179 }
 0x5ed   :  { %v1393_v8 = vadd.f32 1.0, %v2180_v19 }
 0x5ef   :  { %2183 = vrcp.f32 %v1393_v8 }
 0x5f0   :  { %v2182_v34 = vpop.eup %2181 }
 0x5f1   :  { %v1394_v55 = vadd.f32 1.0, %v2182_v34 }
 0x5f3   :  { %2185 = vrcp.f32 %v1394_v55 }
 0x5f9   :  { %v2184_v58 = vpop.eup %2183 }
 0x5fa   :  { %v1399_v9 = vmul.f32 %v2184_v58, %v1385_v49  ;;  %v1470_v58 = vld [vmem:[%s3683_s11 + $0x8] sm:$0xff] }
 0x5fc   :  { %v1412_v31 = vrot.slane %v1399_v9, %v3811_v16  ;;  %v1424_v47 = vrot.slane %v1399_v9, %v3812_v12  ;;  %v1440_v17 = vrot.slane %v1399_v9, %v3813_v20  ;;  %v1456_v51 = vrot.slane %v1399_v9, %v3814_v25 }
 0x5fd   :  { %v2186_v30 = vpop.eup %2185 }
 0x5fe   :  { %v1417_v57 = vmul.f32 %v1412_v31, %v1401_v48  ;;  %v1429_v26 = vmul.f32 %v1424_v47, %v1403_v50  ;;  %v1400_v3 = vmul.f32 %v2186_v30, %v1386_v60  ;;  %v1445_v28 = vmul.f32 %v1440_v17, %v1405_v29 }
 0x5ff   :  { %v1418_v54 = vmul.f32 %v1412_v31, %v1402_v6  ;;  %v1430_v24 = vmul.f32 %v1424_v47, %v1404_v33  ;;  %v1461_v14 = vmul.f32 %v1456_v51, %v1407_v2  ;;  %v1446_v19 = vmul.f32 %v1440_v17, %v1406_v21 }
 0x600   :  { %v1433_v0 = vadd.f32 %v1429_v26, %v1417_v57  ;;  %v1416_v63 = vrot.slane %v1400_v3, %v3811_v16  ;;  %v1428_v53 = vrot.slane %v1400_v3, %v3812_v12  ;;  %v1444_v22 = vrot.slane %v1400_v3, %v3813_v20 }
 0x601   :  { %v1460_v1 = vrot.slane %v1400_v3, %v3814_v25  ;;  %v1434_v36 = vadd.f32 %v1430_v24, %v1418_v54  ;;  %v1462_v31 = vmul.f32 %v1456_v51, %v1408_v32  ;;  %v1530_v51 = vld [vmem:[%s3684_s12 + $0xc] sm:$0xf] }
 0x602   :  { %v1449_v18 = vadd.f32 %v1445_v28, %v1433_v0  ;;  %v1419_v13 = vmul.f32 %v1416_v63, %v1401_v48  ;;  %v1420_v44 = vmul.f32 %v1416_v63, %v1402_v6  ;;  %v1431_v59 = vmul.f32 %v1428_v53, %v1403_v50 }
 0x603   :  { %v1432_v35 = vmul.f32 %v1428_v53, %v1404_v33  ;;  %v1447_v46 = vmul.f32 %v1444_v22, %v1405_v29  ;;  %v1448_v49 = vmul.f32 %v1444_v22, %v1406_v21  ;;  %v1463_v62 = vmul.f32 %v1460_v1, %v1407_v2  ;;  %v1532_v53 = vld [vmem:[%s3684_s12 + $0x14] sm:$0xf]  ;;  %v1529_v22 = vld [vmem:[%s3684_s12 + $0x8] sm:$0xf]  ;;  %v1535_v21 = vld [vmem:[%s3684_s12 + $0x20] sm:$0xf] }
 0x604   :  { %v1435_v40 = vadd.f32 %v1431_v59, %v1419_v13  ;;  %v1465_v61 = vadd.f32 %v1461_v14, %v1449_v18  ;;  %v1464_v10 = vmul.f32 %v1460_v1, %v1408_v32  ;;  %v1450_v50 = vadd.f32 %v1446_v19, %v1434_v36  ;;  %v1531_v14 = vld [vmem:[%s3684_s12 + $0x10] sm:$0xf]  ;;  %v1534_v18 = vld [vmem:[%s3684_s12 + $0x1c] sm:$0xf]  ;;  %v1533_v13 = vld [vmem:[%s3684_s12 + $0x18] sm:$0xf] }
 0x605   :  { %v1436_v38 = vadd.f32 %v1432_v35, %v1420_v44  ;;  %v1536_v44 = vld [vmem:[%s3684_s12 + $0x24] sm:$0xf]  ;;  %v1538_v35 = vld [vmem:[%s3684_s12 + $0x2c] sm:$0xf] }
 0x606   :  { %v1471_v5 = vadd.f32 %v1469_v11, %v1465_v61  ;;  %v1451_v60 = vadd.f32 %v1447_v46, %v1435_v40  ;;  %v1466_v57 = vadd.f32 %v1462_v31, %v1450_v50  ;;  %v1540_v46 = vld [vmem:[%s3684_s12 + $0x34] sm:$0xf]  ;;  %v1542_v40 = vld [vmem:[%s3684_s12 + $0x3c] sm:$0xf]  ;;  %v1562_v61 = vpop.permute.xlu1 %1561 }
 0x607   :  { %v1452_v4 = vadd.f32 %v1448_v49, %v1436_v38  ;;  %v1539_v38 = vld [vmem:[%s3684_s12 + $0x30] sm:$0xf]  ;;  %v1541_v49 = vld [vmem:[%s3684_s12 + $0x38] sm:$0xf] }
 0x608   :  { %v2119_v8 = vmul.f32 -1.442695, %v1471_v5  ;;  %v1467_v34 = vadd.f32 %v1463_v62, %v1451_v60  ;;  %v1472_v26 = vadd.f32 %v1470_v58, %v1466_v57 }
 0x609   :  { %v1468_v55 = vadd.f32 %v1464_v10, %v1452_v4 }
 0x60a   :  { %2187 = vpow2.f32 %v2119_v8  ;;  %v1473_v9 = vadd.f32 %v1469_v11, %v1467_v34  ;;  %v2120_v6 = vmul.f32 -1.442695, %v1472_v26  ;;  %v1537_v11 = vld [vmem:[%s3684_s12 + $0x28] sm:$0xf]  ;;  %v1587_v32 = vpop.permute.xlu1 %1586 }
 0x60b   :  { %v1474_v48 = vadd.f32 %v1470_v58, %v1468_v55 }
 0x60c   :  { %v2121_v47 = vmul.f32 -1.442695, %v1473_v9 }
 0x60d   :  { %v2122_v29 = vmul.f32 -1.442695, %v1474_v48 }
 0x60e   :  { %2189 = vpow2.f32 %v2121_v47 }
 0x60f   :  { %2191 = vpow2.f32 %v2122_v29 }
 0x614   :  { %v2188_v30 = vpop.eup %2187 }
 0x615   :  { %v1487_v17 = vadd.f32 1.0, %v2188_v30 }
 0x617   :  { %2193 = vrcp.f32 %v1487_v17 }
 0x618   :  { %v2190_v33 = vpop.eup %2189  ;;  %2195 = vpow2.f32 %v2120_v6 }
 0x619   :  { %v1489_v2 = vadd.f32 1.0, %v2190_v33  ;;  %v2192_v0 = vpop.eup %2191 }
 0x61a   :  { %v1490_v3 = vadd.f32 1.0, %v2192_v0 }
 0x61b   :  { %2197 = vrcp.f32 %v1489_v2 }
 0x61c   :  { %2199 = vrcp.f32 %v1490_v3 }
 0x621   :  { %v2194_v28 = vpop.eup %2193 }
 0x622   :  { %1501 = vperm.xlu1 %2138, %v2194_v28   ;;  %v2196_v54 = vpop.eup %2195 }
 0x623   :  { %v1488_v24 = vadd.f32 1.0, %v2196_v54 }
 0x625   :  { %v2198_v63 = vpop.eup %2197  ;;  %2201 = vrcp.f32 %v1488_v24 }
 0x626   :  { %1644 = vperm.xlu1 %2138, %v1530_v51   ;;  %1511 = vperm.xlu0 %2137, %v2198_v63   ;;  %v2200_v1 = vpop.eup %2199 }
 0x62a   :  { %1702 = vperm.xlu1 %2138, %v1532_v53   ;;  %1615 = vperm.xlu0 %2137, %v1529_v22  }
 0x62e   :  { %1516 = vperm.xlu1 %2138, %v2200_v1   ;;  %1673 = vperm.xlu0 %2137, %v1531_v14  }
 0x62f   :  { %v2202_v59 = vpop.eup %2201 }
 0x632   :  { %1760 = vperm.xlu1 %2138, %v1534_v18   ;;  %1731 = vperm.xlu0 %2137, %v1533_v13  }
 0x636   :  { %1818 = vperm.xlu1 %2138, %v1536_v44   ;;  %1506 = vperm.xlu0 %2137, %v2202_v59  }
 0x63a   :  { %1876 = vperm.xlu1 %2138, %v1538_v35   ;;  %1789 = vperm.xlu0 %2137, %v1535_v21  }
 0x63e   :  { %1934 = vperm.xlu1 %2138, %v1540_v46   ;;  %1847 = vperm.xlu0 %2137, %v1537_v11  }
 0x642   :  { %1992 = vperm.xlu1 %2138, %v1542_v40   ;;  %1905 = vperm.xlu0 %2137, %v1539_v38  }
 0x646   :  { %1963 = vperm.xlu0 %2137, %v1541_v49  }
 0x6a1   :  { %v1502_v36 = vpop.permute.xlu1 %1501 }
 0x6a2   :  { %v3485_v62 = vmul.f32 %v1502_v36, %v3277_v42  ;;  %v3488_v10 = vmul.f32 %v1502_v36, %v3279_v56 }
 0x6a4   :  { %v1546_v4 = vrot.slane %v3485_v62, %v3811_v16  ;;  %v1550_v19 = vrot.slane %v3488_v10, %v3811_v16  ;;  %v1571_v8 = vrot.slane %v3485_v62, %v3812_v12  ;;  %v1575_v34 = vrot.slane %v3488_v10, %v3812_v12 }
 0x6a5   :  { %v1645_v5 = vpop.permute.xlu1 %1644  ;;  %v1512_v60 = vpop.permute.xlu0 %1511  ;;  %v1629_v42 = vrot.slane %v3485_v62, %v3814_v25  ;;  %v1633_v56 = vrot.slane %v3488_v10, %v3814_v25  ;;  %v1600_v51 = vrot.slane %v3485_v62, %v3813_v20  ;;  %v1604_v54 = vrot.slane %v3488_v10, %v3813_v20 }
 0x6a6   :  { %v3503_v55 = vmul.f32 %v1512_v60, %v3281_v23  ;;  %v3506_v58 = vmul.f32 %v1512_v60, %v3283_v15  ;;  %v1564_v9 = vmul.f32 %v1562_v61, %v1546_v4  ;;  %v1565_v48 = vmul.f32 %v1562_v61, %v1550_v19 }
 0x6a7   :  { %v1589_v50 = vmul.f32 %v1587_v32, %v1571_v8  ;;  %v1590_v31 = vmul.f32 %v1587_v32, %v1575_v34  ;;  %v1647_v15 = vmul.f32 %v1645_v5, %v1629_v42  ;;  %v1648_v17 = vmul.f32 %v1645_v5, %v1633_v56 }
 0x6a8   :  { %v1554_v47 = vrot.slane %v3503_v55, %v3811_v16  ;;  %v1558_v29 = vrot.slane %v3506_v58, %v3811_v16  ;;  %v1579_v26 = vrot.slane %v3503_v55, %v3812_v12  ;;  %v1583_v23 = vrot.slane %v3506_v58, %v3812_v12 }
 0x6a9   :  { %v1703_v57 = vpop.permute.xlu1 %1702  ;;  %v1616_v30 = vpop.permute.xlu0 %1615  ;;  %v1593_v6 = vadd.f32 %v1589_v50, %v1564_v9  ;;  %v1594_v33 = vadd.f32 %v1590_v31, %v1565_v48  ;;  %v1608_v63 = vrot.slane %v3503_v55, %v3813_v20  ;;  %v1612_v53 = vrot.slane %v3506_v58, %v3813_v20 }
 0x6aa   :  { %v1566_v2 = vmul.f32 %v1562_v61, %v1554_v47  ;;  %v1567_v0 = vmul.f32 %v1562_v61, %v1558_v29  ;;  %v1591_v3 = vmul.f32 %v1587_v32, %v1579_v26  ;;  %v1592_v28 = vmul.f32 %v1587_v32, %v1583_v23 }
 0x6ab   :  { %v1637_v14 = vrot.slane %v3503_v55, %v3814_v25  ;;  %v1641_v1 = vrot.slane %v3506_v58, %v3814_v25  ;;  %v1618_v13 = vmul.f32 %v1616_v30, %v1600_v51  ;;  %v1619_v44 = vmul.f32 %v1616_v30, %v1604_v54 }
 0x6ac   :  { %v1595_v22 = vadd.f32 %v1591_v3, %v1566_v2  ;;  %v1596_v24 = vadd.f32 %v1592_v28, %v1567_v0  ;;  %v1620_v59 = vmul.f32 %v1616_v30, %v1608_v63  ;;  %v1621_v35 = vmul.f32 %v1616_v30, %v1612_v53 }
 0x6ad   :  { %v1674_v18 = vpop.permute.xlu0 %1673  ;;  %v1517_v21 = vpop.permute.xlu1 %1516  ;;  %v1695_v46 = vrot.slane %v3503_v55, %v3816_v45  ;;  %v1699_v11 = vrot.slane %v3506_v58, %v3816_v45  ;;  %v1649_v40 = vmul.f32 %v1645_v5, %v1637_v14  ;;  %v1650_v38 = vmul.f32 %v1645_v5, %v1641_v1 }
 0x6ae   :  { %v1622_v49 = vadd.f32 %v1618_v13, %v1593_v6  ;;  %v1623_v61 = vadd.f32 %v1619_v44, %v1594_v33  ;;  %v1624_v32 = vadd.f32 %v1620_v59, %v1595_v22  ;;  %v1625_v36 = vadd.f32 %v1621_v35, %v1596_v24 }
 0x6af   :  { %v1658_v60 = vrot.slane %v3485_v62, %v3815_v37  ;;  %v1662_v4 = vrot.slane %v3488_v10, %v3815_v37  ;;  %v1666_v19 = vrot.slane %v3503_v55, %v3815_v37  ;;  %v1670_v8 = vrot.slane %v3506_v58, %v3815_v37 }
 0x6b0   :  { %v1651_v42 = vadd.f32 %v1647_v15, %v1622_v49  ;;  %v1652_v56 = vadd.f32 %v1648_v17, %v1623_v61  ;;  %v1653_v5 = vadd.f32 %v1649_v40, %v1624_v32  ;;  %v1654_v9 = vadd.f32 %v1650_v38, %v1625_v36 }
 0x6b1   :  { %v1732_v34 = vpop.permute.xlu0 %1731  ;;  %v1676_v48 = vmul.f32 %v1674_v18, %v1658_v60  ;;  %v1677_v50 = vmul.f32 %v1674_v18, %v1662_v4  ;;  %v1678_v31 = vmul.f32 %v1674_v18, %v1666_v19  ;;  %v1679_v47 = vmul.f32 %v1674_v18, %v1670_v8  ;;  %v1761_v23 = vpop.permute.xlu1 %1760 }
 0x6b2   :  { %v1687_v29 = vrot.slane %v3485_v62, %v3816_v45  ;;  %v1691_v26 = vrot.slane %v3488_v10, %v3816_v45  ;;  %v1707_v3 = vmul.f32 %v1703_v57, %v1695_v46  ;;  %v1708_v28 = vmul.f32 %v1703_v57, %v1699_v11 }
 0x6b3   :  { %v1680_v30 = vadd.f32 %v1676_v48, %v1651_v42  ;;  %v1681_v6 = vadd.f32 %v1677_v50, %v1652_v56  ;;  %v1682_v33 = vadd.f32 %v1678_v31, %v1653_v5  ;;  %v1683_v2 = vadd.f32 %v1679_v47, %v1654_v9 }
 0x6b4   :  { %v1705_v15 = vmul.f32 %v1703_v57, %v1687_v29  ;;  %v1706_v17 = vmul.f32 %v1703_v57, %v1691_v26  ;;  %v3545_v51 = vmul.f32 %v1517_v21, %v3303_v39  ;;  %v3548_v54 = vmul.f32 %v1517_v21, %v3305_v7 }
 0x6b5   :  { %v1507_v0 = vpop.permute.xlu0 %1506  ;;  %v1745_v63 = vrot.slane %v3485_v62, %v3818_v41  ;;  %v1749_v53 = vrot.slane %v3488_v10, %v3818_v41  ;;  %v1753_v22 = vrot.slane %v3503_v55, %v3818_v41  ;;  %v1757_v24 = vrot.slane %v3506_v58, %v3818_v41  ;;  %v1819_v21 = vpop.permute.xlu1 %1818 }
 0x6b6   :  { %v1716_v57 = vrot.slane %v3485_v62, %v3817_v43  ;;  %v1720_v39 = vrot.slane %v3488_v10, %v3817_v43  ;;  %v1709_v7 = vadd.f32 %v1705_v15, %v1680_v30  ;;  %v1710_v14 = vadd.f32 %v1706_v17, %v1681_v6 }
 0x6b7   :  { %v1711_v1 = vadd.f32 %v1707_v3, %v1682_v33  ;;  %v1712_v18 = vadd.f32 %v1708_v28, %v1683_v2  ;;  %v1724_v13 = vrot.slane %v3503_v55, %v3817_v43  ;;  %v1728_v44 = vrot.slane %v3506_v58, %v3817_v43 }
 0x6b8   :  { %v1734_v59 = vmul.f32 %v1732_v34, %v1716_v57  ;;  %v1735_v35 = vmul.f32 %v1732_v34, %v1720_v39  ;;  %v1763_v46 = vmul.f32 %v1761_v23, %v1745_v63  ;;  %v1764_v11 = vmul.f32 %v1761_v23, %v1749_v53 }
 0x6b9   :  { %v3567_v62 = vmul.f32 %v1507_v0, %v3299_v27  ;;  %v3570_v10 = vmul.f32 %v1507_v0, %v3301_v52  ;;  %v1790_v40 = vpop.permute.xlu0 %1789  ;;  %v1736_v38 = vmul.f32 %v1732_v34, %v1724_v13  ;;  %v1737_v49 = vmul.f32 %v1732_v34, %v1728_v44  ;;  %v1877_v5 = vpop.permute.xlu1 %1876 }
 0x6ba   :  { %v1811_v55 = vrot.slane %v3545_v51, %v3812_v12  ;;  %v1815_v58 = vrot.slane %v3548_v54, %v3812_v12  ;;  %v1765_v61 = vmul.f32 %v1761_v23, %v1753_v22  ;;  %v1766_v32 = vmul.f32 %v1761_v23, %v1757_v24 }
 0x6bb   :  { %v1738_v36 = vadd.f32 %v1734_v59, %v1709_v7  ;;  %v1739_v60 = vadd.f32 %v1735_v35, %v1710_v14  ;;  %v1740_v4 = vadd.f32 %v1736_v38, %v1711_v1  ;;  %v1741_v19 = vadd.f32 %v1737_v49, %v1712_v18 }
 0x6bc   :  { %v1823_v27 = vmul.f32 %v1819_v21, %v1811_v55  ;;  %v1824_v8 = vmul.f32 %v1819_v21, %v1815_v58  ;;  %v1869_v52 = vrot.slane %v3545_v51, %v3814_v25  ;;  %v1873_v34 = vrot.slane %v3548_v54, %v3814_v25 }
 0x6bd   :  { %v1774_v42 = vrot.slane %v3567_v62, %v3811_v16  ;;  %v1778_v56 = vrot.slane %v3570_v10, %v3811_v16  ;;  %v1861_v9 = vrot.slane %v3567_v62, %v3814_v25  ;;  %v1865_v48 = vrot.slane %v3570_v10, %v3814_v25  ;;  %v1848_v30 = vpop.permute.xlu0 %1847 }
 0x6be   :  { %v1782_v50 = vrot.slane %v3545_v51, %v3811_v16  ;;  %v1786_v31 = vrot.slane %v3548_v54, %v3811_v16  ;;  %v1767_v47 = vadd.f32 %v1763_v46, %v1738_v36  ;;  %v1768_v29 = vadd.f32 %v1764_v11, %v1739_v60 }
 0x6bf   :  { %v1792_v26 = vmul.f32 %v1790_v40, %v1774_v42  ;;  %v1793_v23 = vmul.f32 %v1790_v40, %v1778_v56  ;;  %v1769_v6 = vadd.f32 %v1765_v61, %v1740_v4  ;;  %v1770_v33 = vadd.f32 %v1766_v32, %v1741_v19 }
 0x6c0   :  { %v1794_v2 = vmul.f32 %v1790_v40, %v1782_v50  ;;  %v1795_v0 = vmul.f32 %v1790_v40, %v1786_v31  ;;  %v1881_v15 = vmul.f32 %v1877_v5, %v1869_v52  ;;  %v1882_v17 = vmul.f32 %v1877_v5, %v1873_v34  ;;  %v1935_v40 = vpop.permute.xlu1 %1934 }
 0x6c1   :  { %v1796_v3 = vadd.f32 %v1792_v26, %v1767_v47  ;;  %v1797_v28 = vadd.f32 %v1793_v23, %v1768_v29  ;;  %v1803_v53 = vrot.slane %v3567_v62, %v3812_v12  ;;  %v1807_v16 = vrot.slane %v3570_v10, %v3812_v12  ;;  %v1906_v35 = vpop.permute.xlu0 %1905 }
 0x6c2   :  { %v1798_v25 = vadd.f32 %v1794_v2, %v1769_v6  ;;  %v1799_v63 = vadd.f32 %v1795_v0, %v1770_v33  ;;  %v1832_v22 = vrot.slane %v3567_v62, %v3813_v20  ;;  %v1836_v24 = vrot.slane %v3570_v10, %v3813_v20 }
 0x6c3   :  { %v1840_v57 = vrot.slane %v3545_v51, %v3813_v20  ;;  %v1844_v39 = vrot.slane %v3548_v54, %v3813_v20  ;;  %v1821_v7 = vmul.f32 %v1819_v21, %v1803_v53  ;;  %v1822_v14 = vmul.f32 %v1819_v21, %v1807_v16 }
 0x6c4   :  { %v1827_v1 = vadd.f32 %v1823_v27, %v1798_v25  ;;  %v1828_v18 = vadd.f32 %v1824_v8, %v1799_v63  ;;  %v1850_v13 = vmul.f32 %v1848_v30, %v1832_v22  ;;  %v1851_v44 = vmul.f32 %v1848_v30, %v1836_v24 }
 0x6c5   :  { %v1852_v59 = vmul.f32 %v1848_v30, %v1840_v57  ;;  %v1853_v12 = vmul.f32 %v1848_v30, %v1844_v39  ;;  %v1927_v46 = vrot.slane %v3545_v51, %v3816_v45  ;;  %v1931_v11 = vrot.slane %v3548_v54, %v3816_v45 }
 0x6c6   :  { %v1825_v38 = vadd.f32 %v1821_v7, %v1796_v3  ;;  %v1826_v49 = vadd.f32 %v1822_v14, %v1797_v28  ;;  %v1919_v20 = vrot.slane %v3567_v62, %v3816_v45  ;;  %v1923_v21 = vrot.slane %v3570_v10, %v3816_v45 }
 0x6c7   :  { %v1856_v55 = vadd.f32 %v1852_v59, %v1827_v1  ;;  %v1857_v58 = vadd.f32 %v1853_v12, %v1828_v18  ;;  %v1879_v61 = vmul.f32 %v1877_v5, %v1861_v9  ;;  %v1880_v32 = vmul.f32 %v1877_v5, %v1865_v48  ;;  %v1964_v48 = vpop.permute.xlu0 %1963 }
 0x6c8   :  { %v1854_v36 = vadd.f32 %v1850_v13, %v1825_v38  ;;  %v1855_v60 = vadd.f32 %v1851_v44, %v1826_v49  ;;  %v1937_v4 = vmul.f32 %v1935_v40, %v1919_v20  ;;  %v1938_v19 = vmul.f32 %v1935_v40, %v1923_v21 }
 0x6c9   :  { %v1939_v27 = vmul.f32 %v1935_v40, %v1927_v46  ;;  %v1940_v8 = vmul.f32 %v1935_v40, %v1931_v11  ;;  %v1890_v42 = vrot.slane %v3567_v62, %v3815_v37  ;;  %v1894_v56 = vrot.slane %v3570_v10, %v3815_v37 }
 0x6ca   :  { %v1883_v52 = vadd.f32 %v1879_v61, %v1854_v36  ;;  %v1884_v34 = vadd.f32 %v1880_v32, %v1855_v60  ;;  %v1885_v50 = vadd.f32 %v1881_v15, %v1856_v55  ;;  %v1886_v45 = vadd.f32 %v1882_v17, %v1857_v58  ;;  %v1993_v17 = vpop.permute.xlu1 %1992 }
 0x6cb   :  { %v1898_v9 = vrot.slane %v3545_v51, %v3815_v37  ;;  %v1902_v5 = vrot.slane %v3548_v54, %v3815_v37  ;;  %v1908_v31 = vmul.f32 %v1906_v35, %v1890_v42  ;;  %v1909_v47 = vmul.f32 %v1906_v35, %v1894_v56 }
 0x6cc   :  { %v1948_v29 = vrot.slane %v3567_v62, %v3817_v43  ;;  %v1952_v26 = vrot.slane %v3570_v10, %v3817_v43  ;;  %v1956_v6 = vrot.slane %v3545_v51, %v3817_v43  ;;  %v1960_v33 = vrot.slane %v3548_v54, %v3817_v43 }
 0x6cd   :  { %v1910_v23 = vmul.f32 %v1906_v35, %v1898_v9  ;;  %v1911_v30 = vmul.f32 %v1906_v35, %v1902_v5  ;;  %v1912_v2 = vadd.f32 %v1908_v31, %v1883_v52  ;;  %v1913_v37 = vadd.f32 %v1909_v47, %v1884_v34 }
 0x6ce   :  { %v1966_v0 = vmul.f32 %v1964_v48, %v1948_v29  ;;  %v1967_v15 = vmul.f32 %v1964_v48, %v1952_v26  ;;  %v1968_v25 = vmul.f32 %v1964_v48, %v1956_v6  ;;  %v1969_v63 = vmul.f32 %v1964_v48, %v1960_v33  ;;  %v2003_v6 = vld [vmem:[%s3685_s13] sm:$0xf] }
 0x6cf   :  { %v1914_v3 = vadd.f32 %v1910_v23, %v1885_v50  ;;  %v1915_v28 = vadd.f32 %v1911_v30, %v1886_v45  ;;  %v1977_v53 = vrot.slane %v3567_v62, %v3818_v41  ;;  %v1981_v16 = vrot.slane %v3570_v10, %v3818_v41 }
 0x6d0   :  { %v1941_v22 = vadd.f32 %v1937_v4, %v1912_v2  ;;  %v1942_v24 = vadd.f32 %v1938_v19, %v1913_v37  ;;  %v1985_v43 = vrot.slane %v3545_v51, %v3818_v41  ;;  %v1989_v57 = vrot.slane %v3548_v54, %v3818_v41  ;;  %v2004_v37 = vld [vmem:[%s3686_s14] sm:$0xf]  ;;  %s2255_s14 = smov [#allocation5]  }
 0x6d1   :  { %v1943_v39 = vadd.f32 %v1939_v27, %v1914_v3  ;;  %v1944_v7 = vadd.f32 %v1940_v8, %v1915_v28  ;;  %v1995_v14 = vmul.f32 %v1993_v17, %v1977_v53  ;;  %v1996_v1 = vmul.f32 %v1993_v17, %v1981_v16  ;;  %v2205_v28 = vld [vmem:[%s3742_s28] sm:$0xff]  ;;  %s2097_s17 = sshll.u32 %s2255_s14, 4  ;;  %s2098_s17 = int_to_ptr.vmem [resolvable:$true] %s2097_s17 }
 0x6d2   :  { %v1970_v18 = vadd.f32 %v1966_v0, %v1941_v22  ;;  %v1971_v13 = vadd.f32 %v1967_v15, %v1942_v24  ;;  %v1997_v44 = vmul.f32 %v1993_v17, %v1985_v43  ;;  %v1998_v59 = vmul.f32 %v1993_v17, %v1989_v57  ;;  %p2224_p6 = scmp.lt.s32.totalorder %s2098_s17, %s2098_s17 }
 0x6d3   :  { %v1972_v62 = vadd.f32 %v1968_v25, %v1943_v39  ;;  %v1973_v12 = vadd.f32 %v1969_v63, %v1944_v7  ;;  %v2066_v17 = vstv %s2065_s1  ;;  %v2079_v3 = vstv %s2123_s8  ;;  %v2206_v63 = vld [vmem:[%s3742_s28 + $0x8] sm:$0xff]  ;;  %s2219_s28 = scalar_lea.vmem %s2098_s17, 256 }
 0x6d4   :  { %v1999_v35 = vadd.f32 %v1995_v14, %v1970_v18  ;;  %v2000_v10 = vadd.f32 %v1996_v1, %v1971_v13  ;;  %v2067_v25 = vmul.f32 %v2205_v28, %v2066_v17  ;;  %v2080_v53 = vmul.f32 %v2206_v63, %v2079_v3  ;;  %p2220_p5 = scmp.ne.s32.totalorder %s2098_s17, %s2219_s28  ;;  %p2225_p7 = scmp.lt.s32.totalorder %s2219_s28, %s2219_s28 }
 0x6d5   :  { %v2001_v46 = vadd.f32 %v1997_v44, %v1972_v62  ;;  %v2002_v11 = vadd.f32 %v1998_v59, %v1973_v12 }
 0x6d6   :  { %v2006_v40 = vsel %vm2005_vm8, %v1999_v35, 0.0  ;;  %v2007_v51 = vsel %vm2005_vm8, %v2000_v10, 0.0  ;;  %v2069_v22 = vcombine.high %v2067_v25, %v2067_v25  ;;  %v2082_v24 = vcombine.high %v2080_v53, %v2080_v53  ;;  %p2226_p8 = por %p2225_p7, %p2224_p6 }
 0x6d7   :  { %v2011_v41 = vsel %vm2005_vm8, %v2001_v46, 0.0  ;;  %v2012_v54 = vsel %vm2005_vm8, %v2002_v11, 0.0  ;;  %v2008_v38 = vadd.f32 %v2007_v51, %v2006_v40 }
 0x6d8   :  { %v2013_v49 = vadd.f32 %v2012_v54, %v2011_v41  ;;  %p2227_p9 = pnand %p2226_p8, %p2220_p5 }
 0x6d9   :  { %2009 = vadd.xlane.f32.xlu0 %v2008_v38 }
 0x6da   :  { %2014 = vadd.xlane.f32.xlu1 %v2013_v49 }
 0x766   :  { %v2010_v20 = vpop.xlane.xlu0 %2009 }
 0x767   :  { %v2015_v21 = vpop.xlane.xlu1 %2014  ;;  %v2016_v55 = vsel %vm2005_vm8, %v2010_v20, 0.0 }
 0x768   :  { %v2017_v58 = vsel %vm2005_vm8, %v2015_v21, 0.0 }
 0x769   :  { %v2018_v61 = vadd.f32 %v2017_v58, %v2016_v55 }
 0x76b   :  { %v2019_v32 = vmul.f32 0.001953125, %v2018_v61 }
 0x76d   :  { %v2020_v36 = vsub.f32 %v1999_v35, %v2019_v32  ;;  %v2021_v60 = vsub.f32 %v2000_v10, %v2019_v32  ;;  %v2022_v4 = vsub.f32 %v2001_v46, %v2019_v32  ;;  %v2023_v19 = vsub.f32 %v2002_v11, %v2019_v32 }
 0x76f   :  { %v2024_v27 = vmul.f32 %v2020_v36, %v2020_v36  ;;  %v2025_v8 = vmul.f32 %v2021_v60, %v2021_v60  ;;  %v2026_v52 = vmul.f32 %v2022_v4, %v2022_v4  ;;  %v2027_v34 = vmul.f32 %v2023_v19, %v2023_v19 }
 0x771   :  { %v2028_v42 = vsel %vm2005_vm8, %v2024_v27, 0.0  ;;  %v2029_v56 = vsel %vm2005_vm8, %v2025_v8, 0.0  ;;  %v2033_v45 = vsel %vm2005_vm8, %v2026_v52, 0.0  ;;  %v2034_v9 = vsel %vm2005_vm8, %v2027_v34, 0.0 }
 0x772   :  { %v2030_v50 = vadd.f32 %v2029_v56, %v2028_v42  ;;  %v2035_v5 = vadd.f32 %v2034_v9, %v2033_v45 }
 0x774   :  { %2031 = vadd.xlane.f32.xlu0 %v2030_v50 }
 0x778   :  { %2036 = vadd.xlane.f32.xlu0 %v2035_v5 }
 0x801   :  { %v2032_v48 = vpop.xlane.xlu0 %2031 }
 0x802   :  { %v2038_v47 = vsel %vm2005_vm8, %v2032_v48, 0.0 }
 0x805   :  { %v2037_v31 = vpop.xlane.xlu0 %2036 }
 0x806   :  { %v2039_v29 = vsel %vm2005_vm8, %v2037_v31, 0.0 }
 0x807   :  { %v2040_v26 = vadd.f32 %v2039_v29, %v2038_v47 }
 0x809   :  { %v2041_v23 = vmul.f32 0.001953125, %v2040_v26 }
 0x80b   :  { %v2042_v30 = vadd.f32 1e-05, %v2041_v23 }
 0x80d   :  { %2203 = vrsqrt.f32 %v2042_v30 }
 0x817   :  { %v2204_v33 = vpop.eup %2203 }
 0x818   :  { %v2044_v2 = vmul.f32 %v2204_v33, %v2003_v6 }
 0x81a   :  { %2049 = vperm.xlu1 %2138, %v2044_v2   ;;  %v2045_v0 = vmul.f32 %v2044_v2, %v2019_v32 }
 0x81c   :  { %v2046_v15 = vsub.f32 %v2004_v37, %v2045_v0 }
 0x81e   :  { %2058 = vperm.xlu0 %2137, %v2046_v15  }
 0x899   :  { %v2050_v16 = vpop.permute.xlu1 %2049 }
 0x89a   :  { %v2052_v43 = vmul.f32 %v2050_v16, %v1999_v35  ;;  %v2053_v57 = vmul.f32 %v2050_v16, %v2000_v10  ;;  %v2054_v39 = vmul.f32 %v2050_v16, %v2001_v46  ;;  %v2055_v7 = vmul.f32 %v2050_v16, %v2002_v11 }
 0x89d   :  { %v2059_v14 = vpop.permute.xlu0 %2058 }
 0x89e   :  { %v2061_v1 = vadd.f32 %v2059_v14, %v2052_v43  ;;  %v2062_v18 = vadd.f32 %v2059_v14, %v2053_v57  ;;  %v2063_v13 = vadd.f32 %v2059_v14, %v2054_v39  ;;  %v2064_v44 = vadd.f32 %v2059_v14, %v2055_v7 }
 0x8a0   :  { %v2071_v59 = vadd.f32 %v2067_v25, %v2061_v1  ;;  %v2072_v62 = vadd.f32 %v2069_v22, %v2062_v18  ;;  %v2084_v12 = vadd.f32 %v2080_v53, %v2063_v13  ;;  %v2085_v40 = vadd.f32 %v2082_v24, %v2064_v44 }
 0x8a2   :  { %v2075_v51 = vcombine.low %v2071_v59, %v2072_v62  ;;  %v2088_v41 = vcombine.low %v2084_v12, %v2085_v40 }
 0x8a4   :  { %2077 = vst [vmem:[#allocation5] sm:$0xff] %v2075_v51  ;;  %2091 = vst [vmem:[#allocation5 + $0x8] sm:$0xff] %v2088_v41 }
 0x8a5   :  { %2230 = shalt.err (!%p2227_p9)
}
 0x8a6   :  { %s2231_s4 = scalar_lea.hbm %s3688_s16, 256 }
 0x8a7   :  { %p2232_p10 = scmp.ne.s32.totalorder %s3688_s16, %s2231_s4  ;;  %p2235_p11 = scmp.lt.u32.totalorder %s2231_s4, %s3688_s16 }
 0x8a9   :  { %p2237_p12 = pnand %p2235_p11, %p2232_p10 }
 0x8ab   :  { %2240 = shalt.err (!%p2237_p12)
}
 0x8ac   :  { %s2256_s22 = smov 128   ;;  %s2257_s23 = smov 8  }
 0x8ad   :  { %2103 = dma.vmem_to_hbm [thread:$0]  %s2098_s17, 256, %s3688_s16, [#allocation3], %s2256_s22, %s2256_s22, %s2257_s23  }
 0x8ae   :  { %2243 = dma.done.wait [#allocation3], 256  }
 0x8af   :  { %2244 = vsyncadd [#allocation3], 4294967040 }
 0x8b0   :  { %2107 = vsyncpa [#allocation3], 1 }
 0x8b1   :  { %2108 = vsyncpa [#allocation4], 1 }

</bundles_post_ra>
